<compile_context>
chip_gen: v6e
topology: v6e:2x2x1
jax: 0.10.0
libtpu: 0.0.40
codegen_flags: <defaults>
</compile_context>

<pallas_src>
import functools

import jax
import jax.numpy as jnp
from jax.experimental import pallas as pl
from jax.experimental.pallas import tpu as pltpu


# ------------------------------ fused kernel ------------------------------

def _convblock_kernel(x_ref, w1e_ref, w1o_ref, b1_ref, w2_ref, b2_ref,
                      wf1_ref, bf1_ref, wf2_ref, bf2_ref, o_ref,
                      *, Nb, H, W, K):
    f32, bf16 = jnp.float32, jnp.bfloat16
    We = W // 2                       # columns per parity slab        (8)
    H1 = H - K + 1                    # conv1 output height            (12)
    Hp = H1 // 2                      # pooled height                  (6)
    H2 = Hp - K + 1                   # conv2 output height            (2)
    W2 = (W - K + 1) // 2 - K + 1     # conv2 output width             (2)
    M1 = H1 * We                      # conv1 rows per image           (96)
    M2 = H2 * We                      # conv2 rows per image           (16)
    BM1 = Nb * M1
    BM2 = Nb * M2
    KC = x_ref.shape[-1]              # 5*Cin (row-tap-stacked channels)
    C1 = w1e_ref.shape[-1]
    C2 = w2_ref.shape[-1]
    ncol_e = (K + 1) // 2             # even-j column offsets          (3)
    ncol_o = K // 2                   # odd-j  column offsets          (2)

    def mm(a, w):                     # bf16 MXU matmul, f32 accumulation
        return jnp.dot(a, w, preferred_element_type=f32)

    def tap(parity, shift):
        # Row-shifted window of the row-tap-stacked slab, batch folded into M:
        # (Nb, 1, M1, 5*Cin) -> (Nb*M1, 5*Cin).  M1 % 8 == 0 so the fold is
        # sublane-aligned (free).
        v = x_ref[:, parity:parity + 1, shift:shift + M1, :]
        return v.reshape(BM1, KC)

    # ---- conv1 (5x5 valid): 10 matmuls with K = 5*Cin, separate accumulators
    #      for even / odd output columns so the max-pool needs no gather ----
    acc_e = jnp.zeros((BM1, C1), f32)
    acc_o = jnp.zeros((BM1, C1), f32)
    for c in range(ncol_e):           # taps with even j = 2c
        w = w1e_ref[c]
        acc_e = acc_e + mm(tap(0, c), w)
        acc_o = acc_o + mm(tap(1, c), w)
    for c in range(ncol_o):           # taps with odd j = 2c+1
        w = w1o_ref[c]
        acc_e = acc_e + mm(tap(1, c), w)
        acc_o = acc_o + mm(tap(0, c + 1), w)
    b1 = b1_ref[...]                  # (1, C1) f32
    y_e = jnp.maximum(acc_e + b1, 0.0)
    y_o = jnp.maximum(acc_o + b1, 0.0)

    # ---- fused max_pool2d(2): width pool = elementwise parity max, height
    #      pool = max of adjacent We-row blocks.  Pure value math. ----
    wmax = jnp.maximum(y_e, y_o)                               # (BM1, C1)
    yp = jnp.max(wmax.reshape(Nb * Hp, 2, We, C1), axis=1)     # (Nb*Hp, We, C1)
    yp = yp.reshape(Nb, Hp * We, C1)
    yp = jnp.concatenate([yp, jnp.zeros((Nb, We, C1), f32)], axis=1)
    yp = yp.astype(bf16)                                       # (Nb, Hp*We+We, C1)

    # ---- conv2 (5x5 valid): 25 batched shifted matmuls on the pooled slab ----
    acc2 = jnp.zeros((BM2, C2), f32)
    for i in range(K):
        for j in range(K):
            s = i * We + j
            acc2 = acc2 + mm(yp[:, s:s + M2, :].reshape(BM2, C1),
                             w2_ref[i * K + j])
    y2 = jnp.maximum(acc2 + b2_ref[...], 0.0)                  # rows: h2*We + w

    # ---- adaptive_avg_pool2d(1) over the valid H2 x W2 positions ----
    g = jnp.sum(y2.reshape(Nb, H2, We, C2)[:, :, :W2, :], axis=(1, 2))
    g = g * (1.0 / (H2 * W2))                                  # (Nb, C2)

    # ---- fc1 + ReLU, fc2 (batched over the Nb images in this step) ----
    h1 = jnp.maximum(mm(g.astype(bf16), wf1_ref[...]) + bf1_ref[...], 0.0)
    # TODO(synk): training-mode dropout (p=0.5) would use pltpu.prng_*; it is
    # the identity at inference time, which is what forward() is matched to.
    out = mm(h1.astype(bf16), wf2_ref[...]) + bf2_ref[...]     # (Nb, Npad)
    o_ref[...] = out[None].astype(o_ref.dtype)                 # (1, Nb, Npad)


# --------------------------------- wrapper --------------------------------

def convblock2v2_forward(params, x_nchw):
    """Matches ConvBlock2v2.forward (inference).  x_nchw: (B, Cin, H, W)."""
    K = 5
    x = jnp.transpose(x_nchw, (0, 2, 3, 1)).astype(jnp.bfloat16)   # NHWC, bf16
    B, H, W, Cin = x.shape
    assert H % 2 == 0 and W % 2 == 0, "max_pool2d(2) needs even conv1 output"
    We = W // 2
    H1, W1v = H - K + 1, W - K + 1
    Hp, Wp = H1 // 2, W1v // 2
    H2, W2 = Hp - K + 1, Wp - K + 1
    assert Hp >= K and Wp >= K, "spatial size too small for conv2"
    assert We >= K - 1, "zero-pad rows must cover conv2's max row shift"
    # Valid conv2/GAP outputs must never read the wrap-around garbage columns
    # (wp >= Wp) nor the zero-pad rows of the pooled slab (review item):
    assert W2 + (K - 1) <= Wp and Wp <= We
    M1 = H1 * We
    rows5 = M1 + We                  # rows of the row-tap-stacked slabs

    # --- batch blocking: Nb images per grid step; keep >= 2 steps when B >= 2
    #     so v7x can split the grid across both TensorCores. ---
    Nb = 1 if B <= 1 else min(8, (B + 1) // 2)
    nsteps = -(-B // Nb)
    Bp = nsteps * Nb

    # --- layout plumbing (bf16): column-parity split, zero row pad, then
    #     stack the K row taps along channels so conv1 runs with K = 5*Cin. ---
    xe = x[:, :, 0::2, :].reshape(B, H * We, Cin)
    xo = x[:, :, 1::2, :].reshape(B, H * We, Cin)
    xp = jnp.stack([xe, xo], axis=1)                              # (B,2,H*We,Cin)
    xp = jnp.pad(xp, ((0, Bp - B), (0, 0), (0, We), (0, 0)))
    x5 = jnp.concatenate(
        [xp[:, :, i * We:i * We + rows5, :] for i in range(K)], axis=-1)
    # x5: (Bp, 2, rows5, K*Cin), one merged input array -> one DMA per step.

    C1 = params["b1"].shape[0]
    C2 = params["b2"].shape[0]
    F1 = params["b_fc1"].shape[0]
    Nout = params["b_fc2"].shape[0]
    Npad = ((Nout + 127) // 128) * 128       # lane-dense output store

    # Conv1 weights fused over the 5 row taps (same order as the activation
    # stacking); conv2 weights stay per-tap.  MXU operands bf16, biases f32.
    w1 = params["w1"]                                             # (K,K,Cin,C1)
    w1e = jnp.stack([jnp.concatenate([w1[i, 2 * c] for i in range(K)], axis=0)
                     for c in range((K + 1) // 2)]).astype(jnp.bfloat16)
    w1o = jnp.stack([jnp.concatenate([w1[i, 2 * c + 1] for i in range(K)], axis=0)
                     for c in range(K // 2)]).astype(jnp.bfloat16)
    w2 = params["w2"].reshape(K * K, C1, C2).astype(jnp.bfloat16)
    wf1 = params["w_fc1"].astype(jnp.bfloat16)                    # (C2, F1)
    wf2 = jnp.pad(params["w_fc2"],
                  ((0, 0), (0, Npad - Nout))).astype(jnp.bfloat16)
    b1 = params["b1"].reshape(1, C1).astype(jnp.float32)
    b2 = params["b2"].reshape(1, C2).astype(jnp.float32)
    bf1 = params["b_fc1"].reshape(1, F1).astype(jnp.float32)
    bf2 = jnp.pad(params["b_fc2"],
                  (0, Npad - Nout)).reshape(1, Npad).astype(jnp.float32)

    def full_spec(a):   # whole array resident in VMEM, fetched once
        return pl.BlockSpec(a.shape, lambda b, n=a.ndim: (0,) * n)

    # Advisory cost estimate (real fc dims, per review).
    macs = Bp * (2 * K * K * M1 * Cin * C1 + K * K * (H2 * We) * C1 * C2
                 + C2 * F1 + F1 * Npad)
    bytes_accessed = int(x5.size * 2 + nsteps * Nb * Npad * 4
                         + (w1e.size + w1o.size + w2.size
                            + wf1.size + wf2.size) * 2
                         + (b1.size + b2.size + bf1.size + bf2.size) * 4)

    grid_spec = pltpu.PrefetchScalarGridSpec(
        num_scalar_prefetch=0,
        grid=(nsteps,),
        in_specs=[pl.BlockSpec((Nb, 2, rows5, K * Cin), lambda b: (b, 0, 0, 0)),
                  full_spec(w1e), full_spec(w1o), full_spec(b1),
                  full_spec(w2), full_spec(b2),
                  full_spec(wf1), full_spec(bf1), full_spec(wf2), full_spec(bf2)],
        out_specs=pl.BlockSpec((1, Nb, Npad), lambda b: (b, 0, 0)),
    )
    out = pl.pallas_call(
        functools.partial(_convblock_kernel, Nb=Nb, H=H, W=W, K=K),
        out_shape=jax.ShapeDtypeStruct((nsteps, Nb, Npad), jnp.float32),
        grid_spec=grid_spec,
        compiler_params=pltpu.CompilerParams(
            dimension_semantics=("parallel",)),
        cost_estimate=pl.CostEstimate(flops=2 * macs, transcendentals=0,
                                      bytes_accessed=bytes_accessed),
    )(x5, w1e, w1o, b1, w2, b2, wf1, bf1, wf2, bf2)
    return out.reshape(Bp, Npad)[:B, :Nout]


# ------------------------- params / reference / test ----------------------

def init_params(key, in_channel=32, out_channel=2):
    """Deterministic synthetic parameters with the shapes implied by __init__."""
    ks = jax.random.split(key, 8)

    def nrm(k, shape, scale=0.05):
        return (scale * jax.random.normal(k, shape)).astype(jnp.float32)

    return dict(
        w1=nrm(ks[0], (5, 5, in_channel, 32)),   # HWIO
        b1=nrm(ks[1], (32,)),
        w2=nrm(ks[2], (5, 5, 32, 32)),
        b2=nrm(ks[3], (32,)),
        w_fc1=nrm(ks[4], (32, 32)),              # (in, out)
        b_fc1=nrm(ks[5], (32,)),
        w_fc2=nrm(ks[6], (32, out_channel)),
        b_fc2=nrm(ks[7], (out_channel,)),
    )


def reference_forward(params, x_nchw):
    """Pure-JAX/XLA reference (independent of the Pallas path)."""
    x = jnp.transpose(x_nchw, (0, 2, 3, 1))
    y = jax.lax.conv_general_dilated(
        x, params["w1"], (1, 1), "VALID",
        dimension_numbers=("NHWC", "HWIO", "NHWC"),
        precision=jax.lax.Precision.HIGHEST) + params["b1"]
    y = jnp.maximum(y, 0.0)
    y = jax.lax.reduce_window(y, -jnp.inf, jax.lax.max,
                              (1, 2, 2, 1), (1, 2, 2, 1), "VALID")
    y = jax.lax.conv_general_dilated(
        y, params["w2"], (1, 1), "VALID",
        dimension_numbers=("NHWC", "HWIO", "NHWC"),
        precision=jax.lax.Precision.HIGHEST) + params["b2"]
    y = jnp.maximum(y, 0.0)
    g = jnp.mean(y, axis=(1, 2))
    h = jnp.maximum(g @ params["w_fc1"] + params["b_fc1"], 0.0)
    return h @ params["w_fc2"] + params["b_fc2"]


if __name__ == "__main__":
    key = jax.random.PRNGKey(0)
    pkey, xkey = jax.random.split(key)

    params = init_params(pkey, in_channel=32, out_channel=2)
    # PyTorch-convention NCHW input: batch=2, channels=32, spatial 16x16.
    x = jax.random.normal(xkey, (2, 32, 16, 16), dtype=jnp.float32)

    out = jax.jit(convblock2v2_forward)(params, x)
    out = jax.block_until_ready(out)
    assert out.shape == (2, 2), out.shape

    ref = reference_forward(params, x)
    # bf16 MXU operands vs the f32 HIGHEST reference: ~1e-2 differences expected.
    assert jnp.allclose(out, ref, rtol=2e-2, atol=2e-2), (out, ref)

    print("KERNEL_OK")
</pallas_src>

<mosaic_0001>
module attributes {stable_mosaic.version = 11 : i64} {
  func.func @_convblock_kernel(%arg0: i32, %arg1: memref<1x2x104x160xbf16, #tpu.memory_space<vmem>>, %arg2: memref<3x160x32xbf16, #tpu.memory_space<vmem>>, %arg3: memref<2x160x32xbf16, #tpu.memory_space<vmem>>, %arg4: memref<1x32xf32, #tpu.memory_space<vmem>>, %arg5: memref<25x32x32xbf16, #tpu.memory_space<vmem>>, %arg6: memref<1x32xf32, #tpu.memory_space<vmem>>, %arg7: memref<32x32xbf16, #tpu.memory_space<vmem>>, %arg8: memref<1x32xf32, #tpu.memory_space<vmem>>, %arg9: memref<32x128xbf16, #tpu.memory_space<vmem>>, %arg10: memref<1x128xf32, #tpu.memory_space<vmem>>, %arg11: memref<1x1x128xf32, #tpu.memory_space<vmem>>) attributes {dimension_semantics = [#tpu.dimension_semantics<parallel>], iteration_bounds = array<i64: 2>, scalar_prefetch = 0 : i64, scratch_operands = 0 : i64, tpu.core_type = #tpu.core_type<tc>, window_params = [{transform_indices = @transform_0, window_bounds = array<i64: 1, 2, 104, 160>}, {pipeline_mode = #tpu.pipeline_mode<synchronous>, transform_indices = @transform_1, window_bounds = array<i64: 3, 160, 32>}, {pipeline_mode = #tpu.pipeline_mode<synchronous>, transform_indices = @transform_2, window_bounds = array<i64: 2, 160, 32>}, {pipeline_mode = #tpu.pipeline_mode<synchronous>, transform_indices = @transform_3, window_bounds = array<i64: 1, 32>}, {pipeline_mode = #tpu.pipeline_mode<synchronous>, transform_indices = @transform_4, window_bounds = array<i64: 25, 32, 32>}, {pipeline_mode = #tpu.pipeline_mode<synchronous>, transform_indices = @transform_5, window_bounds = array<i64: 1, 32>}, {pipeline_mode = #tpu.pipeline_mode<synchronous>, transform_indices = @transform_6, window_bounds = array<i64: 32, 32>}, {pipeline_mode = #tpu.pipeline_mode<synchronous>, transform_indices = @transform_7, window_bounds = array<i64: 1, 32>}, {pipeline_mode = #tpu.pipeline_mode<synchronous>, transform_indices = @transform_8, window_bounds = array<i64: 32, 128>}, {pipeline_mode = #tpu.pipeline_mode<synchronous>, transform_indices = @transform_9, window_bounds = array<i64: 1, 128>}, {transform_indices = @transform_10, window_bounds = array<i64: 1, 1, 128>}]} {
    %cst = arith.constant 0.000000e+00 : f32
    %0 = vector.broadcast %cst : f32 to vector<96x32xf32>
    %cst_0 = arith.constant 0.000000e+00 : f32
    %1 = vector.broadcast %cst_0 : f32 to vector<96x32xf32>
    %c0 = arith.constant 0 : index
    %c0_1 = arith.constant 0 : index
    %c0_2 = arith.constant 0 : index
    %2 = vector.load %arg2[%c0, %c0_1, %c0_2] : memref<3x160x32xbf16, #tpu.memory_space<vmem>>, vector<1x160x32xbf16>
    %3 = vector.shape_cast %2 : vector<1x160x32xbf16> to vector<160x32xbf16>
    %c0_3 = arith.constant 0 : index
    %c0_4 = arith.constant 0 : index
    %c0_5 = arith.constant 0 : index
    %c0_6 = arith.constant 0 : index
    %4 = vector.load %arg1[%c0_3, %c0_4, %c0_5, %c0_6] : memref<1x2x104x160xbf16, #tpu.memory_space<vmem>>, vector<1x1x96x160xbf16>
    %5 = vector.shape_cast %4 : vector<1x1x96x160xbf16> to vector<96x160xbf16>
    %cst_7 = arith.constant dense<0.000000e+00> : vector<96x32xf32>
    %6 = tpu.matmul %5, %3, %cst_7 {dimension_numbers = #tpu.dot_dimension_numbers<[1], [0], [0], [1], [0, 0, 1, 1], [], []>} : vector<96x160xbf16>, vector<160x32xbf16>, vector<96x32xf32> -> vector<96x32xf32>
    %7 = arith.addf %0, %6 : vector<96x32xf32>
    %c0_8 = arith.constant 0 : index
    %c1 = arith.constant 1 : index
    %c0_9 = arith.constant 0 : index
    %c0_10 = arith.constant 0 : index
    %8 = vector.load %arg1[%c0_8, %c1, %c0_9, %c0_10] : memref<1x2x104x160xbf16, #tpu.memory_space<vmem>>, vector<1x1x96x160xbf16>
    %9 = vector.shape_cast %8 : vector<1x1x96x160xbf16> to vector<96x160xbf16>
    %cst_11 = arith.constant dense<0.000000e+00> : vector<96x32xf32>
    %10 = tpu.matmul %9, %3, %cst_11 {dimension_numbers = #tpu.dot_dimension_numbers<[1], [0], [0], [1], [0, 0, 1, 1], [], []>} : vector<96x160xbf16>, vector<160x32xbf16>, vector<96x32xf32> -> vector<96x32xf32>
    %11 = arith.addf %1, %10 : vector<96x32xf32>
    %c1_12 = arith.constant 1 : index
    %c0_13 = arith.constant 0 : index
    %c0_14 = arith.constant 0 : index
    %12 = vector.load %arg2[%c1_12, %c0_13, %c0_14] : memref<3x160x32xbf16, #tpu.memory_space<vmem>>, vector<1x160x32xbf16>
    %13 = vector.shape_cast %12 : vector<1x160x32xbf16> to vector<160x32xbf16>
    %c0_15 = arith.constant 0 : index
    %c0_16 = arith.constant 0 : index
    %c1_17 = arith.constant 1 : index
    %c0_18 = arith.constant 0 : index
    %14 = vector.load %arg1[%c0_15, %c0_16, %c1_17, %c0_18] : memref<1x2x104x160xbf16, #tpu.memory_space<vmem>>, vector<1x1x96x160xbf16>
    %15 = vector.shape_cast %14 : vector<1x1x96x160xbf16> to vector<96x160xbf16>
    %cst_19 = arith.constant dense<0.000000e+00> : vector<96x32xf32>
    %16 = tpu.matmul %15, %13, %cst_19 {dimension_numbers = #tpu.dot_dimension_numbers<[1], [0], [0], [1], [0, 0, 1, 1], [], []>} : vector<96x160xbf16>, vector<160x32xbf16>, vector<96x32xf32> -> vector<96x32xf32>
    %17 = arith.addf %7, %16 : vector<96x32xf32>
    %c0_20 = arith.constant 0 : index
    %c1_21 = arith.constant 1 : index
    %c1_22 = arith.constant 1 : index
    %c0_23 = arith.constant 0 : index
    %18 = vector.load %arg1[%c0_20, %c1_21, %c1_22, %c0_23] : memref<1x2x104x160xbf16, #tpu.memory_space<vmem>>, vector<1x1x96x160xbf16>
    %19 = vector.shape_cast %18 : vector<1x1x96x160xbf16> to vector<96x160xbf16>
    %cst_24 = arith.constant dense<0.000000e+00> : vector<96x32xf32>
    %20 = tpu.matmul %19, %13, %cst_24 {dimension_numbers = #tpu.dot_dimension_numbers<[1], [0], [0], [1], [0, 0, 1, 1], [], []>} : vector<96x160xbf16>, vector<160x32xbf16>, vector<96x32xf32> -> vector<96x32xf32>
    %21 = arith.addf %11, %20 : vector<96x32xf32>
    %c2 = arith.constant 2 : index
    %c0_25 = arith.constant 0 : index
    %c0_26 = arith.constant 0 : index
    %22 = vector.load %arg2[%c2, %c0_25, %c0_26] : memref<3x160x32xbf16, #tpu.memory_space<vmem>>, vector<1x160x32xbf16>
    %23 = vector.shape_cast %22 : vector<1x160x32xbf16> to vector<160x32xbf16>
    %c0_27 = arith.constant 0 : index
    %c0_28 = arith.constant 0 : index
    %c2_29 = arith.constant 2 : index
    %c0_30 = arith.constant 0 : index
    %24 = vector.load %arg1[%c0_27, %c0_28, %c2_29, %c0_30] : memref<1x2x104x160xbf16, #tpu.memory_space<vmem>>, vector<1x1x96x160xbf16>
    %25 = vector.shape_cast %24 : vector<1x1x96x160xbf16> to vector<96x160xbf16>
    %cst_31 = arith.constant dense<0.000000e+00> : vector<96x32xf32>
    %26 = tpu.matmul %25, %23, %cst_31 {dimension_numbers = #tpu.dot_dimension_numbers<[1], [0], [0], [1], [0, 0, 1, 1], [], []>} : vector<96x160xbf16>, vector<160x32xbf16>, vector<96x32xf32> -> vector<96x32xf32>
    %27 = arith.addf %17, %26 : vector<96x32xf32>
    %c0_32 = arith.constant 0 : index
    %c1_33 = arith.constant 1 : index
    %c2_34 = arith.constant 2 : index
    %c0_35 = arith.constant 0 : index
    %28 = vector.load %arg1[%c0_32, %c1_33, %c2_34, %c0_35] : memref<1x2x104x160xbf16, #tpu.memory_space<vmem>>, vector<1x1x96x160xbf16>
    %29 = vector.shape_cast %28 : vector<1x1x96x160xbf16> to vector<96x160xbf16>
    %cst_36 = arith.constant dense<0.000000e+00> : vector<96x32xf32>
    %30 = tpu.matmul %29, %23, %cst_36 {dimension_numbers = #tpu.dot_dimension_numbers<[1], [0], [0], [1], [0, 0, 1, 1], [], []>} : vector<96x160xbf16>, vector<160x32xbf16>, vector<96x32xf32> -> vector<96x32xf32>
    %31 = arith.addf %21, %30 : vector<96x32xf32>
    %c0_37 = arith.constant 0 : index
    %c0_38 = arith.constant 0 : index
    %c0_39 = arith.constant 0 : index
    %32 = vector.load %arg3[%c0_37, %c0_38, %c0_39] : memref<2x160x32xbf16, #tpu.memory_space<vmem>>, vector<1x160x32xbf16>
    %33 = vector.shape_cast %32 : vector<1x160x32xbf16> to vector<160x32xbf16>
    %c0_40 = arith.constant 0 : index
    %c1_41 = arith.constant 1 : index
    %c0_42 = arith.constant 0 : index
    %c0_43 = arith.constant 0 : index
    %34 = vector.load %arg1[%c0_40, %c1_41, %c0_42, %c0_43] : memref<1x2x104x160xbf16, #tpu.memory_space<vmem>>, vector<1x1x96x160xbf16>
    %35 = vector.shape_cast %34 : vector<1x1x96x160xbf16> to vector<96x160xbf16>
    %cst_44 = arith.constant dense<0.000000e+00> : vector<96x32xf32>
    %36 = tpu.matmul %35, %33, %cst_44 {dimension_numbers = #tpu.dot_dimension_numbers<[1], [0], [0], [1], [0, 0, 1, 1], [], []>} : vector<96x160xbf16>, vector<160x32xbf16>, vector<96x32xf32> -> vector<96x32xf32>
    %37 = arith.addf %27, %36 : vector<96x32xf32>
    %c0_45 = arith.constant 0 : index
    %c0_46 = arith.constant 0 : index
    %c1_47 = arith.constant 1 : index
    %c0_48 = arith.constant 0 : index
    %38 = vector.load %arg1[%c0_45, %c0_46, %c1_47, %c0_48] : memref<1x2x104x160xbf16, #tpu.memory_space<vmem>>, vector<1x1x96x160xbf16>
    %39 = vector.shape_cast %38 : vector<1x1x96x160xbf16> to vector<96x160xbf16>
    %cst_49 = arith.constant dense<0.000000e+00> : vector<96x32xf32>
    %40 = tpu.matmul %39, %33, %cst_49 {dimension_numbers = #tpu.dot_dimension_numbers<[1], [0], [0], [1], [0, 0, 1, 1], [], []>} : vector<96x160xbf16>, vector<160x32xbf16>, vector<96x32xf32> -> vector<96x32xf32>
    %41 = arith.addf %31, %40 : vector<96x32xf32>
    %c1_50 = arith.constant 1 : index
    %c0_51 = arith.constant 0 : index
    %c0_52 = arith.constant 0 : index
    %42 = vector.load %arg3[%c1_50, %c0_51, %c0_52] : memref<2x160x32xbf16, #tpu.memory_space<vmem>>, vector<1x160x32xbf16>
    %43 = vector.shape_cast %42 : vector<1x160x32xbf16> to vector<160x32xbf16>
    %c0_53 = arith.constant 0 : index
    %c1_54 = arith.constant 1 : index
    %c1_55 = arith.constant 1 : index
    %c0_56 = arith.constant 0 : index
    %44 = vector.load %arg1[%c0_53, %c1_54, %c1_55, %c0_56] : memref<1x2x104x160xbf16, #tpu.memory_space<vmem>>, vector<1x1x96x160xbf16>
    %45 = vector.shape_cast %44 : vector<1x1x96x160xbf16> to vector<96x160xbf16>
    %cst_57 = arith.constant dense<0.000000e+00> : vector<96x32xf32>
    %46 = tpu.matmul %45, %43, %cst_57 {dimension_numbers = #tpu.dot_dimension_numbers<[1], [0], [0], [1], [0, 0, 1, 1], [], []>} : vector<96x160xbf16>, vector<160x32xbf16>, vector<96x32xf32> -> vector<96x32xf32>
    %47 = arith.addf %37, %46 : vector<96x32xf32>
    %c0_58 = arith.constant 0 : index
    %c0_59 = arith.constant 0 : index
    %c2_60 = arith.constant 2 : index
    %c0_61 = arith.constant 0 : index
    %48 = vector.load %arg1[%c0_58, %c0_59, %c2_60, %c0_61] : memref<1x2x104x160xbf16, #tpu.memory_space<vmem>>, vector<1x1x96x160xbf16>
    %49 = vector.shape_cast %48 : vector<1x1x96x160xbf16> to vector<96x160xbf16>
    %cst_62 = arith.constant dense<0.000000e+00> : vector<96x32xf32>
    %50 = tpu.matmul %49, %43, %cst_62 {dimension_numbers = #tpu.dot_dimension_numbers<[1], [0], [0], [1], [0, 0, 1, 1], [], []>} : vector<96x160xbf16>, vector<160x32xbf16>, vector<96x32xf32> -> vector<96x32xf32>
    %51 = arith.addf %41, %50 : vector<96x32xf32>
    %c0_63 = arith.constant 0 : index
    %c0_64 = arith.constant 0 : index
    %52 = vector.load %arg4[%c0_63, %c0_64] : memref<1x32xf32, #tpu.memory_space<vmem>>, vector<1x32xf32>
    %53 = vector.broadcast %52 : vector<1x32xf32> to vector<96x32xf32>
    %54 = arith.addf %47, %53 : vector<96x32xf32>
    %cst_65 = arith.constant 0.000000e+00 : f32
    %55 = vector.broadcast %cst_65 : f32 to vector<96x32xf32>
    %56 = arith.maximumf %54, %55 : vector<96x32xf32>
    %57 = vector.broadcast %52 : vector<1x32xf32> to vector<96x32xf32>
    %58 = arith.addf %51, %57 : vector<96x32xf32>
    %cst_66 = arith.constant 0.000000e+00 : f32
    %59 = vector.broadcast %cst_66 : f32 to vector<96x32xf32>
    %60 = arith.maximumf %58, %59 : vector<96x32xf32>
    %61 = arith.maximumf %56, %60 : vector<96x32xf32>
    %62 = vector.shape_cast %61 : vector<96x32xf32> to vector<6x2x8x32xf32>
    %cst_67 = arith.constant dense<0xFF800000> : vector<6x8x32xf32>
    %63 = vector.multi_reduction <maximumf>, %62, %cst_67 [1] : vector<6x2x8x32xf32> to vector<6x8x32xf32>
    %64 = vector.shape_cast %63 : vector<6x8x32xf32> to vector<1x48x32xf32>
    %cst_68 = arith.constant 0.000000e+00 : f32
    %65 = vector.broadcast %cst_68 : f32 to vector<1x8x32xf32>
    %66 = tpu.concatenate %64, %65 in 1 : vector<1x48x32xf32>, vector<1x8x32xf32> -> vector<1x56x32xf32>
    %67 = arith.truncf %66 : vector<1x56x32xf32> to vector<1x56x32xbf16>
    %cst_69 = arith.constant 0.000000e+00 : f32
    %68 = vector.broadcast %cst_69 : f32 to vector<16x32xf32>
    %69 = vector.extract_strided_slice %67 {offsets = [0, 0, 0], sizes = [1, 16, 32], strides = [1, 1, 1]} : vector<1x56x32xbf16> to vector<1x16x32xbf16>
    %70 = vector.shape_cast %69 : vector<1x16x32xbf16> to vector<16x32xbf16>
    %c0_70 = arith.constant 0 : index
    %c0_71 = arith.constant 0 : index
    %c0_72 = arith.constant 0 : index
    %71 = vector.load %arg5[%c0_70, %c0_71, %c0_72] : memref<25x32x32xbf16, #tpu.memory_space<vmem>>, vector<1x32x32xbf16>
    %72 = vector.shape_cast %71 : vector<1x32x32xbf16> to vector<32x32xbf16>
    %cst_73 = arith.constant dense<0.000000e+00> : vector<16x32xf32>
    %73 = tpu.matmul %70, %72, %cst_73 {dimension_numbers = #tpu.dot_dimension_numbers<[1], [0], [0], [1], [0, 0, 1, 1], [], []>} : vector<16x32xbf16>, vector<32x32xbf16>, vector<16x32xf32> -> vector<16x32xf32>
    %74 = arith.addf %68, %73 : vector<16x32xf32>
    %75 = vector.extract_strided_slice %67 {offsets = [0, 1, 0], sizes = [1, 16, 32], strides = [1, 1, 1]} : vector<1x56x32xbf16> to vector<1x16x32xbf16>
    %76 = vector.shape_cast %75 : vector<1x16x32xbf16> to vector<16x32xbf16>
    %c1_74 = arith.constant 1 : index
    %c0_75 = arith.constant 0 : index
    %c0_76 = arith.constant 0 : index
    %77 = vector.load %arg5[%c1_74, %c0_75, %c0_76] : memref<25x32x32xbf16, #tpu.memory_space<vmem>>, vector<1x32x32xbf16>
    %78 = vector.shape_cast %77 : vector<1x32x32xbf16> to vector<32x32xbf16>
    %cst_77 = arith.constant dense<0.000000e+00> : vector<16x32xf32>
    %79 = tpu.matmul %76, %78, %cst_77 {dimension_numbers = #tpu.dot_dimension_numbers<[1], [0], [0], [1], [0, 0, 1, 1], [], []>} : vector<16x32xbf16>, vector<32x32xbf16>, vector<16x32xf32> -> vector<16x32xf32>
    %80 = arith.addf %74, %79 : vector<16x32xf32>
    %81 = vector.extract_strided_slice %67 {offsets = [0, 2, 0], sizes = [1, 16, 32], strides = [1, 1, 1]} : vector<1x56x32xbf16> to vector<1x16x32xbf16>
    %82 = vector.shape_cast %81 : vector<1x16x32xbf16> to vector<16x32xbf16>
    %c2_78 = arith.constant 2 : index
    %c0_79 = arith.constant 0 : index
    %c0_80 = arith.constant 0 : index
    %83 = vector.load %arg5[%c2_78, %c0_79, %c0_80] : memref<25x32x32xbf16, #tpu.memory_space<vmem>>, vector<1x32x32xbf16>
    %84 = vector.shape_cast %83 : vector<1x32x32xbf16> to vector<32x32xbf16>
    %cst_81 = arith.constant dense<0.000000e+00> : vector<16x32xf32>
    %85 = tpu.matmul %82, %84, %cst_81 {dimension_numbers = #tpu.dot_dimension_numbers<[1], [0], [0], [1], [0, 0, 1, 1], [], []>} : vector<16x32xbf16>, vector<32x32xbf16>, vector<16x32xf32> -> vector<16x32xf32>
    %86 = arith.addf %80, %85 : vector<16x32xf32>
    %87 = vector.extract_strided_slice %67 {offsets = [0, 3, 0], sizes = [1, 16, 32], strides = [1, 1, 1]} : vector<1x56x32xbf16> to vector<1x16x32xbf16>
    %88 = vector.shape_cast %87 : vector<1x16x32xbf16> to vector<16x32xbf16>
    %c3 = arith.constant 3 : index
    %c0_82 = arith.constant 0 : index
    %c0_83 = arith.constant 0 : index
    %89 = vector.load %arg5[%c3, %c0_82, %c0_83] : memref<25x32x32xbf16, #tpu.memory_space<vmem>>, vector<1x32x32xbf16>
    %90 = vector.shape_cast %89 : vector<1x32x32xbf16> to vector<32x32xbf16>
    %cst_84 = arith.constant dense<0.000000e+00> : vector<16x32xf32>
    %91 = tpu.matmul %88, %90, %cst_84 {dimension_numbers = #tpu.dot_dimension_numbers<[1], [0], [0], [1], [0, 0, 1, 1], [], []>} : vector<16x32xbf16>, vector<32x32xbf16>, vector<16x32xf32> -> vector<16x32xf32>
    %92 = arith.addf %86, %91 : vector<16x32xf32>
    %93 = vector.extract_strided_slice %67 {offsets = [0, 4, 0], sizes = [1, 16, 32], strides = [1, 1, 1]} : vector<1x56x32xbf16> to vector<1x16x32xbf16>
    %94 = vector.shape_cast %93 : vector<1x16x32xbf16> to vector<16x32xbf16>
    %c4 = arith.constant 4 : index
    %c0_85 = arith.constant 0 : index
    %c0_86 = arith.constant 0 : index
    %95 = vector.load %arg5[%c4, %c0_85, %c0_86] : memref<25x32x32xbf16, #tpu.memory_space<vmem>>, vector<1x32x32xbf16>
    %96 = vector.shape_cast %95 : vector<1x32x32xbf16> to vector<32x32xbf16>
    %cst_87 = arith.constant dense<0.000000e+00> : vector<16x32xf32>
    %97 = tpu.matmul %94, %96, %cst_87 {dimension_numbers = #tpu.dot_dimension_numbers<[1], [0], [0], [1], [0, 0, 1, 1], [], []>} : vector<16x32xbf16>, vector<32x32xbf16>, vector<16x32xf32> -> vector<16x32xf32>
    %98 = arith.addf %92, %97 : vector<16x32xf32>
    %99 = vector.extract_strided_slice %67 {offsets = [0, 8, 0], sizes = [1, 16, 32], strides = [1, 1, 1]} : vector<1x56x32xbf16> to vector<1x16x32xbf16>
    %100 = vector.shape_cast %99 : vector<1x16x32xbf16> to vector<16x32xbf16>
    %c5 = arith.constant 5 : index
    %c0_88 = arith.constant 0 : index
    %c0_89 = arith.constant 0 : index
    %101 = vector.load %arg5[%c5, %c0_88, %c0_89] : memref<25x32x32xbf16, #tpu.memory_space<vmem>>, vector<1x32x32xbf16>
    %102 = vector.shape_cast %101 : vector<1x32x32xbf16> to vector<32x32xbf16>
    %cst_90 = arith.constant dense<0.000000e+00> : vector<16x32xf32>
    %103 = tpu.matmul %100, %102, %cst_90 {dimension_numbers = #tpu.dot_dimension_numbers<[1], [0], [0], [1], [0, 0, 1, 1], [], []>} : vector<16x32xbf16>, vector<32x32xbf16>, vector<16x32xf32> -> vector<16x32xf32>
    %104 = arith.addf %98, %103 : vector<16x32xf32>
    %105 = vector.extract_strided_slice %67 {offsets = [0, 9, 0], sizes = [1, 16, 32], strides = [1, 1, 1]} : vector<1x56x32xbf16> to vector<1x16x32xbf16>
    %106 = vector.shape_cast %105 : vector<1x16x32xbf16> to vector<16x32xbf16>
    %c6 = arith.constant 6 : index
    %c0_91 = arith.constant 0 : index
    %c0_92 = arith.constant 0 : index
    %107 = vector.load %arg5[%c6, %c0_91, %c0_92] : memref<25x32x32xbf16, #tpu.memory_space<vmem>>, vector<1x32x32xbf16>
    %108 = vector.shape_cast %107 : vector<1x32x32xbf16> to vector<32x32xbf16>
    %cst_93 = arith.constant dense<0.000000e+00> : vector<16x32xf32>
    %109 = tpu.matmul %106, %108, %cst_93 {dimension_numbers = #tpu.dot_dimension_numbers<[1], [0], [0], [1], [0, 0, 1, 1], [], []>} : vector<16x32xbf16>, vector<32x32xbf16>, vector<16x32xf32> -> vector<16x32xf32>
    %110 = arith.addf %104, %109 : vector<16x32xf32>
    %111 = vector.extract_strided_slice %67 {offsets = [0, 10, 0], sizes = [1, 16, 32], strides = [1, 1, 1]} : vector<1x56x32xbf16> to vector<1x16x32xbf16>
    %112 = vector.shape_cast %111 : vector<1x16x32xbf16> to vector<16x32xbf16>
    %c7 = arith.constant 7 : index
    %c0_94 = arith.constant 0 : index
    %c0_95 = arith.constant 0 : index
    %113 = vector.load %arg5[%c7, %c0_94, %c0_95] : memref<25x32x32xbf16, #tpu.memory_space<vmem>>, vector<1x32x32xbf16>
    %114 = vector.shape_cast %113 : vector<1x32x32xbf16> to vector<32x32xbf16>
    %cst_96 = arith.constant dense<0.000000e+00> : vector<16x32xf32>
    %115 = tpu.matmul %112, %114, %cst_96 {dimension_numbers = #tpu.dot_dimension_numbers<[1], [0], [0], [1], [0, 0, 1, 1], [], []>} : vector<16x32xbf16>, vector<32x32xbf16>, vector<16x32xf32> -> vector<16x32xf32>
    %116 = arith.addf %110, %115 : vector<16x32xf32>
    %117 = vector.extract_strided_slice %67 {offsets = [0, 11, 0], sizes = [1, 16, 32], strides = [1, 1, 1]} : vector<1x56x32xbf16> to vector<1x16x32xbf16>
    %118 = vector.shape_cast %117 : vector<1x16x32xbf16> to vector<16x32xbf16>
    %c8 = arith.constant 8 : index
    %c0_97 = arith.constant 0 : index
    %c0_98 = arith.constant 0 : index
    %119 = vector.load %arg5[%c8, %c0_97, %c0_98] : memref<25x32x32xbf16, #tpu.memory_space<vmem>>, vector<1x32x32xbf16>
    %120 = vector.shape_cast %119 : vector<1x32x32xbf16> to vector<32x32xbf16>
    %cst_99 = arith.constant dense<0.000000e+00> : vector<16x32xf32>
    %121 = tpu.matmul %118, %120, %cst_99 {dimension_numbers = #tpu.dot_dimension_numbers<[1], [0], [0], [1], [0, 0, 1, 1], [], []>} : vector<16x32xbf16>, vector<32x32xbf16>, vector<16x32xf32> -> vector<16x32xf32>
    %122 = arith.addf %116, %121 : vector<16x32xf32>
    %123 = vector.extract_strided_slice %67 {offsets = [0, 12, 0], sizes = [1, 16, 32], strides = [1, 1, 1]} : vector<1x56x32xbf16> to vector<1x16x32xbf16>
    %124 = vector.shape_cast %123 : vector<1x16x32xbf16> to vector<16x32xbf16>
    %c9 = arith.constant 9 : index
    %c0_100 = arith.constant 0 : index
    %c0_101 = arith.constant 0 : index
    %125 = vector.load %arg5[%c9, %c0_100, %c0_101] : memref<25x32x32xbf16, #tpu.memory_space<vmem>>, vector<1x32x32xbf16>
    %126 = vector.shape_cast %125 : vector<1x32x32xbf16> to vector<32x32xbf16>
    %cst_102 = arith.constant dense<0.000000e+00> : vector<16x32xf32>
    %127 = tpu.matmul %124, %126, %cst_102 {dimension_numbers = #tpu.dot_dimension_numbers<[1], [0], [0], [1], [0, 0, 1, 1], [], []>} : vector<16x32xbf16>, vector<32x32xbf16>, vector<16x32xf32> -> vector<16x32xf32>
    %128 = arith.addf %122, %127 : vector<16x32xf32>
    %129 = vector.extract_strided_slice %67 {offsets = [0, 16, 0], sizes = [1, 16, 32], strides = [1, 1, 1]} : vector<1x56x32xbf16> to vector<1x16x32xbf16>
    %130 = vector.shape_cast %129 : vector<1x16x32xbf16> to vector<16x32xbf16>
    %c10 = arith.constant 10 : index
    %c0_103 = arith.constant 0 : index
    %c0_104 = arith.constant 0 : index
    %131 = vector.load %arg5[%c10, %c0_103, %c0_104] : memref<25x32x32xbf16, #tpu.memory_space<vmem>>, vector<1x32x32xbf16>
    %132 = vector.shape_cast %131 : vector<1x32x32xbf16> to vector<32x32xbf16>
    %cst_105 = arith.constant dense<0.000000e+00> : vector<16x32xf32>
    %133 = tpu.matmul %130, %132, %cst_105 {dimension_numbers = #tpu.dot_dimension_numbers<[1], [0], [0], [1], [0, 0, 1, 1], [], []>} : vector<16x32xbf16>, vector<32x32xbf16>, vector<16x32xf32> -> vector<16x32xf32>
    %134 = arith.addf %128, %133 : vector<16x32xf32>
    %135 = vector.extract_strided_slice %67 {offsets = [0, 17, 0], sizes = [1, 16, 32], strides = [1, 1, 1]} : vector<1x56x32xbf16> to vector<1x16x32xbf16>
    %136 = vector.shape_cast %135 : vector<1x16x32xbf16> to vector<16x32xbf16>
    %c11 = arith.constant 11 : index
    %c0_106 = arith.constant 0 : index
    %c0_107 = arith.constant 0 : index
    %137 = vector.load %arg5[%c11, %c0_106, %c0_107] : memref<25x32x32xbf16, #tpu.memory_space<vmem>>, vector<1x32x32xbf16>
    %138 = vector.shape_cast %137 : vector<1x32x32xbf16> to vector<32x32xbf16>
    %cst_108 = arith.constant dense<0.000000e+00> : vector<16x32xf32>
    %139 = tpu.matmul %136, %138, %cst_108 {dimension_numbers = #tpu.dot_dimension_numbers<[1], [0], [0], [1], [0, 0, 1, 1], [], []>} : vector<16x32xbf16>, vector<32x32xbf16>, vector<16x32xf32> -> vector<16x32xf32>
    %140 = arith.addf %134, %139 : vector<16x32xf32>
    %141 = vector.extract_strided_slice %67 {offsets = [0, 18, 0], sizes = [1, 16, 32], strides = [1, 1, 1]} : vector<1x56x32xbf16> to vector<1x16x32xbf16>
    %142 = vector.shape_cast %141 : vector<1x16x32xbf16> to vector<16x32xbf16>
    %c12 = arith.constant 12 : index
    %c0_109 = arith.constant 0 : index
    %c0_110 = arith.constant 0 : index
    %143 = vector.load %arg5[%c12, %c0_109, %c0_110] : memref<25x32x32xbf16, #tpu.memory_space<vmem>>, vector<1x32x32xbf16>
    %144 = vector.shape_cast %143 : vector<1x32x32xbf16> to vector<32x32xbf16>
    %cst_111 = arith.constant dense<0.000000e+00> : vector<16x32xf32>
    %145 = tpu.matmul %142, %144, %cst_111 {dimension_numbers = #tpu.dot_dimension_numbers<[1], [0], [0], [1], [0, 0, 1, 1], [], []>} : vector<16x32xbf16>, vector<32x32xbf16>, vector<16x32xf32> -> vector<16x32xf32>
    %146 = arith.addf %140, %145 : vector<16x32xf32>
    %147 = vector.extract_strided_slice %67 {offsets = [0, 19, 0], sizes = [1, 16, 32], strides = [1, 1, 1]} : vector<1x56x32xbf16> to vector<1x16x32xbf16>
    %148 = vector.shape_cast %147 : vector<1x16x32xbf16> to vector<16x32xbf16>
    %c13 = arith.constant 13 : index
    %c0_112 = arith.constant 0 : index
    %c0_113 = arith.constant 0 : index
    %149 = vector.load %arg5[%c13, %c0_112, %c0_113] : memref<25x32x32xbf16, #tpu.memory_space<vmem>>, vector<1x32x32xbf16>
    %150 = vector.shape_cast %149 : vector<1x32x32xbf16> to vector<32x32xbf16>
    %cst_114 = arith.constant dense<0.000000e+00> : vector<16x32xf32>
    %151 = tpu.matmul %148, %150, %cst_114 {dimension_numbers = #tpu.dot_dimension_numbers<[1], [0], [0], [1], [0, 0, 1, 1], [], []>} : vector<16x32xbf16>, vector<32x32xbf16>, vector<16x32xf32> -> vector<16x32xf32>
    %152 = arith.addf %146, %151 : vector<16x32xf32>
    %153 = vector.extract_strided_slice %67 {offsets = [0, 20, 0], sizes = [1, 16, 32], strides = [1, 1, 1]} : vector<1x56x32xbf16> to vector<1x16x32xbf16>
    %154 = vector.shape_cast %153 : vector<1x16x32xbf16> to vector<16x32xbf16>
    %c14 = arith.constant 14 : index
    %c0_115 = arith.constant 0 : index
    %c0_116 = arith.constant 0 : index
    %155 = vector.load %arg5[%c14, %c0_115, %c0_116] : memref<25x32x32xbf16, #tpu.memory_space<vmem>>, vector<1x32x32xbf16>
    %156 = vector.shape_cast %155 : vector<1x32x32xbf16> to vector<32x32xbf16>
    %cst_117 = arith.constant dense<0.000000e+00> : vector<16x32xf32>
    %157 = tpu.matmul %154, %156, %cst_117 {dimension_numbers = #tpu.dot_dimension_numbers<[1], [0], [0], [1], [0, 0, 1, 1], [], []>} : vector<16x32xbf16>, vector<32x32xbf16>, vector<16x32xf32> -> vector<16x32xf32>
    %158 = arith.addf %152, %157 : vector<16x32xf32>
    %159 = vector.extract_strided_slice %67 {offsets = [0, 24, 0], sizes = [1, 16, 32], strides = [1, 1, 1]} : vector<1x56x32xbf16> to vector<1x16x32xbf16>
    %160 = vector.shape_cast %159 : vector<1x16x32xbf16> to vector<16x32xbf16>
    %c15 = arith.constant 15 : index
    %c0_118 = arith.constant 0 : index
    %c0_119 = arith.constant 0 : index
    %161 = vector.load %arg5[%c15, %c0_118, %c0_119] : memref<25x32x32xbf16, #tpu.memory_space<vmem>>, vector<1x32x32xbf16>
    %162 = vector.shape_cast %161 : vector<1x32x32xbf16> to vector<32x32xbf16>
    %cst_120 = arith.constant dense<0.000000e+00> : vector<16x32xf32>
    %163 = tpu.matmul %160, %162, %cst_120 {dimension_numbers = #tpu.dot_dimension_numbers<[1], [0], [0], [1], [0, 0, 1, 1], [], []>} : vector<16x32xbf16>, vector<32x32xbf16>, vector<16x32xf32> -> vector<16x32xf32>
    %164 = arith.addf %158, %163 : vector<16x32xf32>
    %165 = vector.extract_strided_slice %67 {offsets = [0, 25, 0], sizes = [1, 16, 32], strides = [1, 1, 1]} : vector<1x56x32xbf16> to vector<1x16x32xbf16>
    %166 = vector.shape_cast %165 : vector<1x16x32xbf16> to vector<16x32xbf16>
    %c16 = arith.constant 16 : index
    %c0_121 = arith.constant 0 : index
    %c0_122 = arith.constant 0 : index
    %167 = vector.load %arg5[%c16, %c0_121, %c0_122] : memref<25x32x32xbf16, #tpu.memory_space<vmem>>, vector<1x32x32xbf16>
    %168 = vector.shape_cast %167 : vector<1x32x32xbf16> to vector<32x32xbf16>
    %cst_123 = arith.constant dense<0.000000e+00> : vector<16x32xf32>
    %169 = tpu.matmul %166, %168, %cst_123 {dimension_numbers = #tpu.dot_dimension_numbers<[1], [0], [0], [1], [0, 0, 1, 1], [], []>} : vector<16x32xbf16>, vector<32x32xbf16>, vector<16x32xf32> -> vector<16x32xf32>
    %170 = arith.addf %164, %169 : vector<16x32xf32>
    %171 = vector.extract_strided_slice %67 {offsets = [0, 26, 0], sizes = [1, 16, 32], strides = [1, 1, 1]} : vector<1x56x32xbf16> to vector<1x16x32xbf16>
    %172 = vector.shape_cast %171 : vector<1x16x32xbf16> to vector<16x32xbf16>
    %c17 = arith.constant 17 : index
    %c0_124 = arith.constant 0 : index
    %c0_125 = arith.constant 0 : index
    %173 = vector.load %arg5[%c17, %c0_124, %c0_125] : memref<25x32x32xbf16, #tpu.memory_space<vmem>>, vector<1x32x32xbf16>
    %174 = vector.shape_cast %173 : vector<1x32x32xbf16> to vector<32x32xbf16>
    %cst_126 = arith.constant dense<0.000000e+00> : vector<16x32xf32>
    %175 = tpu.matmul %172, %174, %cst_126 {dimension_numbers = #tpu.dot_dimension_numbers<[1], [0], [0], [1], [0, 0, 1, 1], [], []>} : vector<16x32xbf16>, vector<32x32xbf16>, vector<16x32xf32> -> vector<16x32xf32>
    %176 = arith.addf %170, %175 : vector<16x32xf32>
    %177 = vector.extract_strided_slice %67 {offsets = [0, 27, 0], sizes = [1, 16, 32], strides = [1, 1, 1]} : vector<1x56x32xbf16> to vector<1x16x32xbf16>
    %178 = vector.shape_cast %177 : vector<1x16x32xbf16> to vector<16x32xbf16>
    %c18 = arith.constant 18 : index
    %c0_127 = arith.constant 0 : index
    %c0_128 = arith.constant 0 : index
    %179 = vector.load %arg5[%c18, %c0_127, %c0_128] : memref<25x32x32xbf16, #tpu.memory_space<vmem>>, vector<1x32x32xbf16>
    %180 = vector.shape_cast %179 : vector<1x32x32xbf16> to vector<32x32xbf16>
    %cst_129 = arith.constant dense<0.000000e+00> : vector<16x32xf32>
    %181 = tpu.matmul %178, %180, %cst_129 {dimension_numbers = #tpu.dot_dimension_numbers<[1], [0], [0], [1], [0, 0, 1, 1], [], []>} : vector<16x32xbf16>, vector<32x32xbf16>, vector<16x32xf32> -> vector<16x32xf32>
    %182 = arith.addf %176, %181 : vector<16x32xf32>
    %183 = vector.extract_strided_slice %67 {offsets = [0, 28, 0], sizes = [1, 16, 32], strides = [1, 1, 1]} : vector<1x56x32xbf16> to vector<1x16x32xbf16>
    %184 = vector.shape_cast %183 : vector<1x16x32xbf16> to vector<16x32xbf16>
    %c19 = arith.constant 19 : index
    %c0_130 = arith.constant 0 : index
    %c0_131 = arith.constant 0 : index
    %185 = vector.load %arg5[%c19, %c0_130, %c0_131] : memref<25x32x32xbf16, #tpu.memory_space<vmem>>, vector<1x32x32xbf16>
    %186 = vector.shape_cast %185 : vector<1x32x32xbf16> to vector<32x32xbf16>
    %cst_132 = arith.constant dense<0.000000e+00> : vector<16x32xf32>
    %187 = tpu.matmul %184, %186, %cst_132 {dimension_numbers = #tpu.dot_dimension_numbers<[1], [0], [0], [1], [0, 0, 1, 1], [], []>} : vector<16x32xbf16>, vector<32x32xbf16>, vector<16x32xf32> -> vector<16x32xf32>
    %188 = arith.addf %182, %187 : vector<16x32xf32>
    %189 = vector.extract_strided_slice %67 {offsets = [0, 32, 0], sizes = [1, 16, 32], strides = [1, 1, 1]} : vector<1x56x32xbf16> to vector<1x16x32xbf16>
    %190 = vector.shape_cast %189 : vector<1x16x32xbf16> to vector<16x32xbf16>
    %c20 = arith.constant 20 : index
    %c0_133 = arith.constant 0 : index
    %c0_134 = arith.constant 0 : index
    %191 = vector.load %arg5[%c20, %c0_133, %c0_134] : memref<25x32x32xbf16, #tpu.memory_space<vmem>>, vector<1x32x32xbf16>
    %192 = vector.shape_cast %191 : vector<1x32x32xbf16> to vector<32x32xbf16>
    %cst_135 = arith.constant dense<0.000000e+00> : vector<16x32xf32>
    %193 = tpu.matmul %190, %192, %cst_135 {dimension_numbers = #tpu.dot_dimension_numbers<[1], [0], [0], [1], [0, 0, 1, 1], [], []>} : vector<16x32xbf16>, vector<32x32xbf16>, vector<16x32xf32> -> vector<16x32xf32>
    %194 = arith.addf %188, %193 : vector<16x32xf32>
    %195 = vector.extract_strided_slice %67 {offsets = [0, 33, 0], sizes = [1, 16, 32], strides = [1, 1, 1]} : vector<1x56x32xbf16> to vector<1x16x32xbf16>
    %196 = vector.shape_cast %195 : vector<1x16x32xbf16> to vector<16x32xbf16>
    %c21 = arith.constant 21 : index
    %c0_136 = arith.constant 0 : index
    %c0_137 = arith.constant 0 : index
    %197 = vector.load %arg5[%c21, %c0_136, %c0_137] : memref<25x32x32xbf16, #tpu.memory_space<vmem>>, vector<1x32x32xbf16>
    %198 = vector.shape_cast %197 : vector<1x32x32xbf16> to vector<32x32xbf16>
    %cst_138 = arith.constant dense<0.000000e+00> : vector<16x32xf32>
    %199 = tpu.matmul %196, %198, %cst_138 {dimension_numbers = #tpu.dot_dimension_numbers<[1], [0], [0], [1], [0, 0, 1, 1], [], []>} : vector<16x32xbf16>, vector<32x32xbf16>, vector<16x32xf32> -> vector<16x32xf32>
    %200 = arith.addf %194, %199 : vector<16x32xf32>
    %201 = vector.extract_strided_slice %67 {offsets = [0, 34, 0], sizes = [1, 16, 32], strides = [1, 1, 1]} : vector<1x56x32xbf16> to vector<1x16x32xbf16>
    %202 = vector.shape_cast %201 : vector<1x16x32xbf16> to vector<16x32xbf16>
    %c22 = arith.constant 22 : index
    %c0_139 = arith.constant 0 : index
    %c0_140 = arith.constant 0 : index
    %203 = vector.load %arg5[%c22, %c0_139, %c0_140] : memref<25x32x32xbf16, #tpu.memory_space<vmem>>, vector<1x32x32xbf16>
    %204 = vector.shape_cast %203 : vector<1x32x32xbf16> to vector<32x32xbf16>
    %cst_141 = arith.constant dense<0.000000e+00> : vector<16x32xf32>
    %205 = tpu.matmul %202, %204, %cst_141 {dimension_numbers = #tpu.dot_dimension_numbers<[1], [0], [0], [1], [0, 0, 1, 1], [], []>} : vector<16x32xbf16>, vector<32x32xbf16>, vector<16x32xf32> -> vector<16x32xf32>
    %206 = arith.addf %200, %205 : vector<16x32xf32>
    %207 = vector.extract_strided_slice %67 {offsets = [0, 35, 0], sizes = [1, 16, 32], strides = [1, 1, 1]} : vector<1x56x32xbf16> to vector<1x16x32xbf16>
    %208 = vector.shape_cast %207 : vector<1x16x32xbf16> to vector<16x32xbf16>
    %c23 = arith.constant 23 : index
    %c0_142 = arith.constant 0 : index
    %c0_143 = arith.constant 0 : index
    %209 = vector.load %arg5[%c23, %c0_142, %c0_143] : memref<25x32x32xbf16, #tpu.memory_space<vmem>>, vector<1x32x32xbf16>
    %210 = vector.shape_cast %209 : vector<1x32x32xbf16> to vector<32x32xbf16>
    %cst_144 = arith.constant dense<0.000000e+00> : vector<16x32xf32>
    %211 = tpu.matmul %208, %210, %cst_144 {dimension_numbers = #tpu.dot_dimension_numbers<[1], [0], [0], [1], [0, 0, 1, 1], [], []>} : vector<16x32xbf16>, vector<32x32xbf16>, vector<16x32xf32> -> vector<16x32xf32>
    %212 = arith.addf %206, %211 : vector<16x32xf32>
    %213 = vector.extract_strided_slice %67 {offsets = [0, 36, 0], sizes = [1, 16, 32], strides = [1, 1, 1]} : vector<1x56x32xbf16> to vector<1x16x32xbf16>
    %214 = vector.shape_cast %213 : vector<1x16x32xbf16> to vector<16x32xbf16>
    %c24 = arith.constant 24 : index
    %c0_145 = arith.constant 0 : index
    %c0_146 = arith.constant 0 : index
    %215 = vector.load %arg5[%c24, %c0_145, %c0_146] : memref<25x32x32xbf16, #tpu.memory_space<vmem>>, vector<1x32x32xbf16>
    %216 = vector.shape_cast %215 : vector<1x32x32xbf16> to vector<32x32xbf16>
    %cst_147 = arith.constant dense<0.000000e+00> : vector<16x32xf32>
    %217 = tpu.matmul %214, %216, %cst_147 {dimension_numbers = #tpu.dot_dimension_numbers<[1], [0], [0], [1], [0, 0, 1, 1], [], []>} : vector<16x32xbf16>, vector<32x32xbf16>, vector<16x32xf32> -> vector<16x32xf32>
    %218 = arith.addf %212, %217 : vector<16x32xf32>
    %c0_148 = arith.constant 0 : index
    %c0_149 = arith.constant 0 : index
    %219 = vector.load %arg6[%c0_148, %c0_149] : memref<1x32xf32, #tpu.memory_space<vmem>>, vector<1x32xf32>
    %220 = vector.broadcast %219 : vector<1x32xf32> to vector<16x32xf32>
    %221 = arith.addf %218, %220 : vector<16x32xf32>
    %cst_150 = arith.constant 0.000000e+00 : f32
    %222 = vector.broadcast %cst_150 : f32 to vector<16x32xf32>
    %223 = arith.maximumf %221, %222 : vector<16x32xf32>
    %224 = vector.shape_cast %223 : vector<16x32xf32> to vector<1x2x8x32xf32>
    %225 = vector.extract_strided_slice %224 {offsets = [0, 0, 0, 0], sizes = [1, 2, 2, 32], strides = [1, 1, 1, 1]} : vector<1x2x8x32xf32> to vector<1x2x2x32xf32>
    %cst_151 = arith.constant dense<0.000000e+00> : vector<1x32xf32>
    %226 = vector.multi_reduction <add>, %225, %cst_151 [1, 2] : vector<1x2x2x32xf32> to vector<1x32xf32>
    %cst_152 = arith.constant 2.500000e-01 : f32
    %227 = vector.broadcast %cst_152 : f32 to vector<1x32xf32>
    %228 = arith.mulf %226, %227 : vector<1x32xf32>
    %229 = arith.truncf %228 : vector<1x32xf32> to vector<1x32xbf16>
    %c0_153 = arith.constant 0 : index
    %c0_154 = arith.constant 0 : index
    %230 = vector.load %arg7[%c0_153, %c0_154] : memref<32x32xbf16, #tpu.memory_space<vmem>>, vector<32x32xbf16>
    %cst_155 = arith.constant dense<0.000000e+00> : vector<1x32xf32>
    %231 = tpu.matmul %229, %230, %cst_155 {dimension_numbers = #tpu.dot_dimension_numbers<[1], [0], [0], [1], [0, 0, 1, 1], [], []>} : vector<1x32xbf16>, vector<32x32xbf16>, vector<1x32xf32> -> vector<1x32xf32>
    %c0_156 = arith.constant 0 : index
    %c0_157 = arith.constant 0 : index
    %232 = vector.load %arg8[%c0_156, %c0_157] : memref<1x32xf32, #tpu.memory_space<vmem>>, vector<1x32xf32>
    %233 = arith.addf %231, %232 : vector<1x32xf32>
    %cst_158 = arith.constant 0.000000e+00 : f32
    %234 = vector.broadcast %cst_158 : f32 to vector<1x32xf32>
    %235 = arith.maximumf %233, %234 : vector<1x32xf32>
    %236 = arith.truncf %235 : vector<1x32xf32> to vector<1x32xbf16>
    %c0_159 = arith.constant 0 : index
    %c0_160 = arith.constant 0 : index
    %237 = vector.load %arg9[%c0_159, %c0_160] : memref<32x128xbf16, #tpu.memory_space<vmem>>, vector<32x128xbf16>
    %cst_161 = arith.constant dense<0.000000e+00> : vector<1x128xf32>
    %238 = tpu.matmul %236, %237, %cst_161 {dimension_numbers = #tpu.dot_dimension_numbers<[1], [0], [0], [1], [0, 0, 1, 1], [], []>} : vector<1x32xbf16>, vector<32x128xbf16>, vector<1x128xf32> -> vector<1x128xf32>
    %c0_162 = arith.constant 0 : index
    %c0_163 = arith.constant 0 : index
    %239 = vector.load %arg10[%c0_162, %c0_163] : memref<1x128xf32, #tpu.memory_space<vmem>>, vector<1x128xf32>
    %240 = arith.addf %238, %239 : vector<1x128xf32>
    %241 = vector.shape_cast %240 : vector<1x128xf32> to vector<1x1x128xf32>
    %c0_164 = arith.constant 0 : index
    %c0_165 = arith.constant 0 : index
    %c0_166 = arith.constant 0 : index
    %242 = vector.load %arg11[%c0_164, %c0_165, %c0_166] : memref<1x1x128xf32, #tpu.memory_space<vmem>>, vector<1x1x128xf32>
    tpu.vector_store %arg11[%c0_164, %c0_165, %c0_166], %241 {strides = array<i32>} : memref<1x1x128xf32, #tpu.memory_space<vmem>>, vector<1x1x128xf32>,
    return
  }
  func.func @transform_0(%arg0: i32) -> (i32, i32, i32, i32) {
    %c0_i32 = arith.constant 0 : i32
    %c0_i32_0 = arith.constant 0 : i32
    %c0_i32_1 = arith.constant 0 : i32
    %c0_i32_2 = arith.constant 0 : i32
    return %arg0, %c0_i32, %c0_i32_0, %c0_i32_1 : i32, i32, i32, i32
  }
  func.func @transform_1(%arg0: i32) -> (i32, i32, i32) {
    %c0_i32 = arith.constant 0 : i32
    %c0_i32_0 = arith.constant 0 : i32
    %c0_i32_1 = arith.constant 0 : i32
    %c0_i32_2 = arith.constant 0 : i32
    return %c0_i32, %c0_i32_0, %c0_i32_1 : i32, i32, i32
  }
  func.func @transform_2(%arg0: i32) -> (i32, i32, i32) {
    %c0_i32 = arith.constant 0 : i32
    %c0_i32_0 = arith.constant 0 : i32
    %c0_i32_1 = arith.constant 0 : i32
    %c0_i32_2 = arith.constant 0 : i32
    return %c0_i32, %c0_i32_0, %c0_i32_1 : i32, i32, i32
  }
  func.func @transform_3(%arg0: i32) -> (i32, i32) {
    %c0_i32 = arith.constant 0 : i32
    %c0_i32_0 = arith.constant 0 : i32
    %c0_i32_1 = arith.constant 0 : i32
    return %c0_i32, %c0_i32_0 : i32, i32
  }
  func.func @transform_4(%arg0: i32) -> (i32, i32, i32) {
    %c0_i32 = arith.constant 0 : i32
    %c0_i32_0 = arith.constant 0 : i32
    %c0_i32_1 = arith.constant 0 : i32
    %c0_i32_2 = arith.constant 0 : i32
    return %c0_i32, %c0_i32_0, %c0_i32_1 : i32, i32, i32
  }
  func.func @transform_5(%arg0: i32) -> (i32, i32) {
    %c0_i32 = arith.constant 0 : i32
    %c0_i32_0 = arith.constant 0 : i32
    %c0_i32_1 = arith.constant 0 : i32
    return %c0_i32, %c0_i32_0 : i32, i32
  }
  func.func @transform_6(%arg0: i32) -> (i32, i32) {
    %c0_i32 = arith.constant 0 : i32
    %c0_i32_0 = arith.constant 0 : i32
    %c0_i32_1 = arith.constant 0 : i32
    return %c0_i32, %c0_i32_0 : i32, i32
  }
  func.func @transform_7(%arg0: i32) -> (i32, i32) {
    %c0_i32 = arith.constant 0 : i32
    %c0_i32_0 = arith.constant 0 : i32
    %c0_i32_1 = arith.constant 0 : i32
    return %c0_i32, %c0_i32_0 : i32, i32
  }
  func.func @transform_8(%arg0: i32) -> (i32, i32) {
    %c0_i32 = arith.constant 0 : i32
    %c0_i32_0 = arith.constant 0 : i32
    %c0_i32_1 = arith.constant 0 : i32
    return %c0_i32, %c0_i32_0 : i32, i32
  }
  func.func @transform_9(%arg0: i32) -> (i32, i32) {
    %c0_i32 = arith.constant 0 : i32
    %c0_i32_0 = arith.constant 0 : i32
    %c0_i32_1 = arith.constant 0 : i32
    return %c0_i32, %c0_i32_0 : i32, i32
  }
  func.func @transform_10(%arg0: i32) -> (i32, i32, i32) {
    %c0_i32 = arith.constant 0 : i32
    %c0_i32_0 = arith.constant 0 : i32
    %c0_i32_1 = arith.constant 0 : i32
    return %arg0, %c0_i32, %c0_i32_0 : i32, i32, i32
  }
}

</mosaic_0001>

<bundles_post_ra>
// kernel: convblock2v2_forward.1
= control target key start
LH: loop header
LB: loop body
LE: loop exit
PB: predicated region body
PF: predicated region fallthrough
CT: control target
= control target key end

     0   :  { %15 = vsyncpa [#allocation3], 0  ;;  %s6948_s0 = inlined_call_operand.vmem [shape: bf16[2,2,104,160], index: 0, kind: input, shape index: {}]   ;;  %s6949_s1 = inlined_call_operand.vmem [shape: bf16[3,160,32], index: 1, kind: input, shape index: {}]   ;;  %s6950_s2 = inlined_call_operand.vmem [shape: bf16[2,160,32], index: 2, kind: input, shape index: {}]   ;;  %s6951_s3 = inlined_call_operand.vmem [shape: f32[1,32], index: 3, kind: input, shape index: {}]   ;;  %s6952_s4 = inlined_call_operand.vmem [shape: bf16[25,32,32], index: 4, kind: input, shape index: {}]   ;;  %s6953_s5 = inlined_call_operand.vmem [shape: f32[1,32], index: 5, kind: input, shape index: {}]   ;;  %s6954_s6 = inlined_call_operand.vmem [shape: bf16[32,32], index: 6, kind: input, shape index: {}]   ;;  %s6955_s7 = inlined_call_operand.vmem [shape: f32[1,32], index: 7, kind: input, shape index: {}]   ;;  %s6956_s8 = inlined_call_operand.vmem [shape: bf16[32,128], index: 8, kind: input, shape index: {}]   ;;  %s6957_s9 = inlined_call_operand.vmem [shape: f32[1,128], index: 9, kind: input, shape index: {}]   ;;  %s6958_s10 = inlined_call_operand.hbm [shape: f32[2,1,128], index: 10, kind: output, shape index: {}]  }
   0x1   :  { %17 = vsyncpa [#allocation3 + $0x1], 0  ;;  %s5264_s13 = smov 0   ;;  %s5266_s14 = smov 0  }
   0x2   :  { %s5268_s15 = smov 0   ;;  %s5270_s16 = smov 0  }
   0x3 LB: > { %s5285_s17 = sadd.s32 4294967295, %s5202_s16   ;;  %s4226_s18 = sadd.s32 4294967294, %s5202_s16   ;;  %s5202_s16 = sphi %s5270_s16, %s6970_s16   ;;  %s5198_s15 = sphi %s5268_s15, %s6969_s15   ;;  %s5194_s14 = sphi %s5266_s14, %s6968_s14   ;;  %s5190_s13 = sphi %s5264_s13, %s6967_s13  }
   0x4   : > { %s5289_s19 = sadd.s32 1, %s5202_s16   ;;  %s245_s20 = sadd.s32 1, %s5198_s15 }
   0x5   : > { %s242_s21 = ssub.s32 %s5202_s16, %s5289_s19  ;;  %p255_p0 = scmp.ne.s32.totalorder %s5198_s15, %s5194_s14 }
   0x6   : > { %p243_p1 = scmp.eq.s32.totalorder %s242_s21, 0  ;;  %p256_p2 = scmp.eq.s32.totalorder %s5285_s17, 1 }
   0x7   : > { %p261_p3 = scmp.ne.s32.totalorder %s5194_s14, %s5190_s13  ;;  %p262_p4 = scmp.eq.s32.totalorder %s4226_s18, 1 }
   0x8   : > { %s5300_s22 = scalar_select %p243_p1, %s5198_s15, %s245_s20  }
   0x9   : > { %p5302_p5 = por %p256_p2, %p255_p0  ;;  %p5306_p6 = por %p262_p4, %p261_p3 }
   0xa   : > { %p4229_p7 = scmp.ge.s32.totalorder %s5202_s16, 1  ;;  %p315_p8 = scmp.lt.s32.totalorder %s5202_s16, 3 }
   0xc   : > { %p316_p9 = pnand %p4229_p7, %p315_p8 }
   0xd   : > { %p352_p10 = scmp.lt.s32.totalorder (!%p316_p9), %s5285_s17, 1  ;;  %s350_s30 = sand.u32 (!%p316_p9), 1, %s5194_s14  }
   0xe   : > { %319 = sbr.rel (%p316_p9) target bundleno = 1217 (0x4c1), region = 60  ;;  %s4650_s18 = sshll.u32 (!%p316_p9), %s5285_s17, 4 }
   0xf   : > { %s351_s20 = scalar_lea.vmem (!%p316_p9), [#allocation2], %s350_s30  ;;  %s4159_s28 = scalar_lea.sflag (!%p316_p9), [#allocation3], %s350_s30 }
  0x10   : > { %s4171_s21 = sshll.u32 (!%p316_p9), %s351_s20, 4  ;;  %s6909_s21 = int_to_ptr.vmem [resolvable:$true] %s4171_s21 }
  0x11   : > { %s5142_s29 = scalar_lea.vmem (!%p316_p9), %s6909_s21, 16 }
  0x12   : > { %p5143_p11 = scmp.ne.s32.totalorder (!%p316_p9), %s6909_s21, %s5142_s29 }
  0x13   : > { %v5315_v0 = vld [vmem:[%s6949_s1 + $0x88] sm:$0xff]   ;;  %v5204_v1 = vmov 0   ;;  %v5322_v2 = vld [vmem:[%s6949_s1 + $0x38] sm:$0xff]   ;;  %v5328_v3 = vld [vmem:[%s6949_s1 + $0x80] sm:$0xff]   ;;  %s353_s26 = scalar_select %p352_p10, %s5285_s17, 1  ;;  %vm649_vm0 = vcmask 261120  }
  0x14   : > { %668 = vmatprep.subr.bf16.mxu0 %v5204_v1  ;;  %827 = vmatprep.subr.bf16.mxu1 %v5204_v1  ;;  %v5335_v4 = vld [vmem:[%s6949_s1 + $0x30] sm:$0xff]   ;;  %v5343_v5 = vld [vmem:[%s6949_s1 + $0x78] sm:$0xff]   ;;  %v5350_v6 = vld [vmem:[%s6949_s1 + $0x28] sm:$0xff]   ;;  %vm478_vm1 = vsmask.f32 7424  ;;  %vm1363_vm2 = vcmask 1046528   ;;  %p5144_p12 = pnand %p5143_p11, %p5302_p5 }
  0x15   : > { %669 = vmatpush1.bf16.msra.mxu0 %v5315_v0  ;;  %828 = vmatpush1.bf16.msra.mxu1 %v5322_v2  ;;  %v5358_v7 = vld [vmem:[%s6949_s1 + $0x70] sm:$0xff]   ;;  %v5365_v8 = vld [vmem:[%s6949_s1 + $0x20] sm:$0xff]   ;;  %s4950_s11 = smul.u32 208, %s353_s26  ;;  %v5372_v9 = vld [vmem:[%s6949_s1 + $0x68] sm:$0xff]   ;;  %vm5206_vm3 = vmmov 0   ;;  %vm2683_vm4 = vcmask 1043456   ;;  %s6907_s26 = scalar_lea.hbm %s6958_s10, %s4650_s18 }
  0x16   : > { %670 = vmatprep.subr.bf16.mxu0 %v5204_v1  ;;  %829 = vmatprep.subr.bf16.mxu1 %v5204_v1  ;;  %v5379_v10 = vld [vmem:[%s6949_s1 + $0x18] sm:$0xff]   ;;  %v5391_v11 = vld [vmem:[%s6949_s1 + $0x60] sm:$0xff]   ;;  %v5398_v12 = vld [vmem:[%s6949_s1 + $0x10] sm:$0xff]   ;;  %vm2616_vm5 = vcmask 1045504   ;;  %vm2543_vm6 = vsmask.f32 6400  ;;  %p5145_p13 = pneg %p5144_p12 }
  0x17   : > { %s5385_s27 = scalar_lea.vmem %s6948_s0, %s4950_s11  ;;  %v5413_v17 = vld [vmem:[%s6949_s1 + $0x58] sm:$0xff]   ;;  %v5421_v19 = vld [vmem:[%s6949_s1 + $0x8] sm:$0xff]   ;;  %v5430_v25 = vld [vmem:[%s6949_s1 + $0x50] sm:$0xff]   ;;  %vm2821_vm7 = vcmask 1042432   ;;  %vm2959_vm8 = vcmask 1041408   ;;  %vm4023_vm11 = vcmask 254976  }
  0x18   : > { %v378_v13 = vld [vmem:[%s5385_s27] sm:$0xff]  ;;  %v5403_v14 = vld [vmem:[%s5385_s27 + $0x8] sm:$0xff]  ;;  %v5407_v16 = vld [vmem:[%s5385_s27 + $0x14] ss:$8 sps:$4 sm:$0xff]   ;;  %vm2750_vm9 = vsmask.f32 3328 }
  0x19   : > { %671 = vmatpush1.bf16.msra.mxu0 %v5328_v3  ;;  %830 = vmatpush1.bf16.msra.mxu1 %v5335_v4  ;;  %v4264_v15 = vcombine.high %v378_v13, %v5403_v14  ;;  %v4263_v18 = vcombine.low %v378_v13, %v5403_v14  ;;  %v499_v22 = vshll.u32 %v5407_v16, 16  ;;  %v5433_v26 = vld [vmem:[%s5385_s27 + $0x10] ss:$8 sps:$4 sm:$0xff]   ;;  %v5440_v28 = vld [vmem:[%s6949_s1] sm:$0xff]   ;;  %v5463_v36 = vld [vmem:[%s6949_s1 + $0x48] sm:$0xff]   ;;  %v511_v39 = vshrl.u32 %v5407_v16, 16 }
  0x1a   : > { %672 = vmatprep.subr.bf16.mxu0 %v5204_v1  ;;  %831 = vmatprep.subr.bf16.mxu1 %v5204_v1  ;;  %v5447_v31 = vld [vmem:[%s5385_s27 + $0x24] ss:$8 sps:$4 sm:$0xff]   ;;  %v5453_v32 = vld [vmem:[%s6949_s1 + $0x98] sm:$0xff]   ;;  %v487_v35 = vshll.u32 %v5433_v26, 16  ;;  %v5469_v37 = vld [vmem:[%s6949_s1 + $0x90] sm:$0xff]   ;;  %v503_v48 = vshrl.u32 %v5433_v26, 16 }
  0x1b   : > { %v492_v20 = vshrl.u32 %v4264_v15, 16  ;;  %v494_v21 = vshll.u32 %v4264_v15, 16  ;;  %4303 = vmatprep.mubr.msk.bf16.mxu1 %vm649_vm0, %v4264_v15  ;;  %v501_v24 = vrot.slane %v499_v22, 1  ;;  %v482_v27 = vshll.u32 %v4263_v18, 16  ;;  %v5474_v38 = vld [vmem:[%s6949_s1 + $0x40] sm:$0xff]   ;;  %s5208_s17 = smov [#allocation2]  }
  0x1c   : > { %v480_v33 = vshrl.u32 %v4263_v18, 16  ;;  %v515_v40 = vshll.u32 %v5447_v31, 16  ;;  %v489_v42 = vrot.slane %v487_v35, 1  ;;  %v5480_v43 = vld [vmem:[%s5385_s27 + $0x20] ss:$8 sps:$4 sm:$0xff]   ;;  %v527_v50 = vshrl.u32 %v5447_v31, 16 }
  0x1d   : > { %673 = vmatpush1.bf16.msra.mxu0 %v5343_v5  ;;  %832 = vmatpush1.bf16.msra.mxu1 %v5350_v6  ;;  %v496_v23 = vrot.slane %v494_v21, 1  ;;  %v484_v34 = vrot.slane %v482_v27, 1  ;;  %v5486_v44 = vld [vmem:[%s5385_s27 + $0x34] ss:$8 sps:$4 sm:$0xff]   ;;  %v513_v45 = vor.u32 %v511_v39, %v501_v24  ;;  %v507_v49 = vshll.u32 %v5480_v43, 16  ;;  %s5146_s12 = sshll.u32 %s5208_s17, 4  ;;  %s5147_s12 = int_to_ptr.vmem [resolvable:$false] %s5146_s12 }
  0x1e   : > { %674 = vmatprep.subr.bf16.mxu0 %v5204_v1  ;;  %833 = vmatprep.subr.bf16.mxu1 %v5204_v1  ;;  %v517_v46 = vrot.slane %v515_v40, 1  ;;  %v531_v51 = vshll.u32 %v5486_v44, 16  ;;  %v5504_v53 = vld [vmem:[%s5385_s27 + $0x30] ss:$8 sps:$4 sm:$0xff]   ;;  %v505_v54 = vor.u32 %v503_v48, %v489_v42  ;;  %v5508_v56 = vld [vmem:[%s5385_s27 + $0x44] ss:$8 sps:$4 sm:$0xff]   ;;  %p5149_p0 = scmp.lt.s32.totalorder %s6909_s21, %s5147_s12 }
  0x1f   : > { %v497_v29 = vor.u32 %v496_v23, %v492_v20  ;;  %v485_v41 = vor.u32 %v484_v34, %v480_v33  ;;  %v509_v55 = vrot.slane %v507_v49, 1  ;;  %v5513_v57 = vld [vmem:[%s5385_s27 + $0x40] ss:$8 sps:$4 sm:$0xff]   ;;  %v5516_v58 = vld [vmem:[%s5385_s27 + $0x54] ss:$8 sps:$4 sm:$0xff]   ;;  %v519_v62 = vshrl.u32 %v5480_v43, 16 }
  0x20   : > { %v5501_v52 = vsel %vm478_vm1, %v513_v45, %v517_v46  ;;  %v529_v59 = vor.u32 %v527_v50, %v517_v46  ;;  %v533_v60 = vrot.slane %v531_v51, 1  ;;  %v424_v61 = vld [vmem:[%s5385_s27 + $0x60] sm:$0x11]  ;;  %v523_v63 = vshll.u32 %v5504_v53, 16  ;;  %v5550_v27 = vld [vmem:[%s5385_s27 + $0x70] sm:$0xff]  ;;  %s5148_s11 = scalar_lea.vmem %s5147_s12, 32 }
  0x21   : > { %675 = vmatpush1.bf16.msra.mxu0 %v5358_v7  ;;  %834 = vmatpush1.bf16.msra.mxu1 %v5365_v8  ;;  %v5444_v30 = vsel %vm478_vm1, %v497_v29, %v501_v24  ;;  %v5490_v47 = vsel %vm478_vm1, %v485_v41, %v489_v42  ;;  %v547_v13 = vshll.u32 %v5508_v56, 16  ;;  %v5536_v15 = vcombine.high %v424_v61, %v424_v61  ;;  %v4309_v24 = vld [vmem:[%s5385_s27 + $0x68] sm:$0xff]  ;;  %v5553_v29 = vld [vmem:[%s5385_s27 + $0x7c] ss:$8 sps:$4 sm:$0xff]   ;;  %v5566_v42 = vld [vmem:[%s5385_s27 + $0x78] ss:$8 sps:$4 sm:$0xff]   ;;  %p5150_p1 = scmp.lt.s32.totalorder %s5148_s11, %s5142_s29 }
  0x22   : > { %676 = vmatprep.subr.bf16.mxu0 %v5204_v1  ;;  %835 = vmatprep.subr.bf16.mxu1 %v5204_v1  ;;  %v539_v20 = vshll.u32 %v5513_v57, 16  ;;  %v563_v21 = vshll.u32 %v5516_v58, 16  ;;  %v525_v22 = vrot.slane %v523_v63, 1  ;;  %v5546_v23 = vcombine.low %v424_v61, %v424_v61  ;;  %v5599_v63 = vld [vmem:[%s5385_s27 + $0x8c] ss:$8 sps:$4 sm:$0xff]  }
  0x23   : > { %4287 = vmatprep.mubr.msk.bf16.mxu0 %vm649_vm0, %v5444_v30  ;;  %v535_v33 = vshrl.u32 %v5504_v53, 16  ;;  %v549_v35 = vrot.slane %v547_v13, 1  ;;  %v559_v39 = vshrl.u32 %v5508_v56, 16  ;;  %v551_v40 = vshrl.u32 %v5513_v57, 16  ;;  %p5151_p2 = por %p5150_p1, %p5149_p0 }
  0x24   : > { %v579_v41 = vshll.u32 %v5536_v15, 16  ;;  %v5573_v45 = vrot.slane %v563_v21, 1  ;;  %v5576_v46 = vcombine.high %v4309_v24, %v5550_v27  ;;  %v575_v49 = vshrl.u32 %v5516_v58, 16 }
  0x25   : > { %677 = vmatpush1.bf16.msra.mxu0 %v5372_v9  ;;  %836 = vmatpush1.bf16.msra.mxu1 %v5379_v10  ;;  %v571_v50 = vshll.u32 %v5546_v23, 16  ;;  %v537_v61 = vor.u32 %v535_v33, %v525_v22  ;;  %v5617_v33 = vld [vmem:[%s5385_s27 + $0x9c] ss:$8 sps:$4 sm:$0xff]   ;;  %vm2888_vm10 = vsmask.f32 2304  ;;  %p5152_p3 = pnand %p5151_p2, %p5145_p13 }
  0x26   : > { %678 = vmatprep.subr.bf16.mxu0 %v5204_v1  ;;  %837 = vmatprep.subr.bf16.mxu1 %v5204_v1 }
  0x29   : > { %679 = vmatpush1.bf16.msra.mxu0 %v5391_v11  ;;  %838 = vmatpush1.bf16.msra.mxu1 %v5398_v12 }
  0x2a   : > { %680 = vmatprep.subr.bf16.mxu0 %v5204_v1  ;;  %839 = vmatprep.subr.bf16.mxu1 %v5204_v1 }
  0x2d   : > { %681 = vmatpush1.bf16.msra.mxu0 %v5413_v17  ;;  %840 = vmatpush1.bf16.msra.mxu1 %v5421_v19 }
  0x2e   : > { %682 = vmatprep.subr.bf16.mxu0 %v5204_v1  ;;  %841 = vmatprep.subr.bf16.mxu1 %v5204_v1 }
  0x31   : > { %683 = vmatpush1.bf16.msra.mxu0 %v5430_v25  ;;  %842 = vmatpush1.bf16.msra.mxu1 %v5440_v28 }
  0x32   : > { %696 = vmatprep.subr.bf16.mxu0 %v5204_v1  ;;  %855 = vmatprep.subr.bf16.mxu1 %v5204_v1 }
  0x35   : > { %697 = vmatpush2.bf16.msra.mxu0 %v5453_v32  ;;  %856 = vmatpush2.bf16.msra.mxu1 %v5463_v36 }
  0x36   : > { %698 = vmatprep.subr.bf16.mxu0 %v5204_v1  ;;  %857 = vmatprep.subr.bf16.mxu1 %v5204_v1 }
  0x39   : > { %699 = vmatpush2.bf16.msra.mxu0 %v5469_v37  ;;  %858 = vmatpush2.bf16.msra.mxu1 %v5474_v38 }
  0x3a   : > { %1102 = vmatprep.subr.bf16.mxu0 %v5204_v1  ;;  %1255 = vmatprep.subr.bf16.mxu1 %v5204_v1 }
  0x3c   : > { %701 = vmatmul.mubr.bf16.vlgmr.msra.gmra.mxu0 %v5490_v47  ;;  %860 = vmatmul.mubr.bf16.vlgmr.msra.gmra.mxu1 %v4263_v18  ;;  %v543_v18 = vshrl.u32 %v5486_v44, 16 }
  0x3d   : > { %1103 = vmatpush1.bf16.msra.mxu0 %v5315_v0  ;;  %1256 = vmatpush1.bf16.msra.mxu1 %v5322_v2  ;;  %v5528_v0 = vsel %vm478_vm1, %v505_v54, %v509_v55  ;;  %v5531_v2 = vld [vmem:[%s5385_s27 + $0x50] ss:$8 sps:$4 sm:$0xff]   ;;  %v1384_v54 = vrot.slane %v5516_v58, 1 }
  0x3e   : > { %1104 = vmatprep.subr.bf16.mxu0 %v5204_v1  ;;  %1257 = vmatprep.subr.bf16.mxu1 %v5204_v1  ;;  %v555_v34 = vshll.u32 %v5531_v2, 16 }
  0x3f   : > { %4288 = vmatprep.mubr.msk.bf16.mxu0 %vm649_vm0, %v5501_v52  ;;  %4304 = vmatprep.mubr.msk.bf16.mxu1 %vm649_vm0, %v5407_v16 }
  0x40   : > { %v5585_v51 = vrot.slane %v555_v34, 1 }
  0x41   : > { %1105 = vmatpush1.bf16.msra.mxu0 %v5328_v3  ;;  %1258 = vmatpush1.bf16.msra.mxu1 %v5335_v4  ;;  %v5540_v3 = vsel %vm478_vm1, %v529_v59, %v533_v60  ;;  %v521_v4 = vor.u32 %v519_v62, %v509_v55  ;;  %v5589_v55 = vcombine.low %v4309_v24, %v5550_v27  ;;  %v994_v59 = vshll.u32 %v5553_v29, 16 }
  0x42   : > { %1106 = vmatprep.subr.bf16.mxu0 %v5204_v1  ;;  %1259 = vmatprep.subr.bf16.mxu1 %v5204_v1  ;;  %v5595_v62 = vrot.slane %v579_v41, 1  ;;  %v1365_v41 = vrot.slane %v5433_v26, 1  ;;  %v1378_v24 = vrot.slane %v5513_v57, 1 }
  0x43   : > { %v5580_v48 = vsel %vm478_vm1, %v521_v4, %v525_v22  ;;  %v1368_v4 = vrot.slane %v5407_v16, 1  ;;  %v5613_v22 = vrot.slane %v571_v50, 1  ;;  %v977_v16 = vshll.u32 %v5589_v55, 16 }
  0x44   : > { %709 = vmatmul.mubr.bf16.gmra.mxu0 %v5528_v0  ;;  %868 = vmatmul.mubr.bf16.gmra.mxu1 %v5433_v26 }
  0x45   : > { %1107 = vmatpush1.bf16.msra.mxu0 %v5343_v5  ;;  %1260 = vmatpush1.bf16.msra.mxu1 %v5350_v6  ;;  %v545_v5 = vor.u32 %v543_v18, %v533_v60  ;;  %v5571_v6 = vrot.slane %v539_v20, 1  ;;  %v1357_v60 = vld [vmem:[%s5385_s27] sm:$0xee]  ;;  %v989_v20 = vshll.u32 %v5576_v46, 16 }
  0x46   : > { %4289 = vmatprep.mubr.msk.bf16.mxu0 %vm649_vm0, %v5540_v3  ;;  %4305 = vmatprep.mubr.msk.bf16.mxu1 %vm649_vm0, %v5447_v31  ;;  %v4380_v13 = vcombine.low %v1357_v60, %v5403_v14  ;;  %v4381_v21 = vcombine.high %v1357_v60, %v5403_v14  ;;  %v561_v60 = vor.u32 %v559_v39, %v549_v35  ;;  %v1370_v39 = vrot.slane %v5480_v43, 1 }
  0x47   : > { %1108 = vmatprep.subr.bf16.mxu0 %v5204_v1  ;;  %1261 = vmatprep.subr.bf16.mxu1 %v5204_v1  ;;  %v5604_v18 = vsel %vm478_vm1, %v545_v5, %v549_v35  ;;  %v5622_v5 = vrot.slane %v994_v59, 1  ;;  %v5638_v59 = vrot.slane %v989_v20, 1 }
  0x48   : > { %v1364_v34 = vrot.slane %v4380_v13, 1  ;;  %v1367_v50 = vrot.slane %v4381_v21, 1  ;;  %v5642_v21 = vld [vmem:[%s5385_s27 + $0x98] ss:$8 sps:$4 sm:$0xff]  }
  0x49   : > { %1109 = vmatpush1.bf16.msra.mxu0 %v5358_v7  ;;  %1262 = vmatpush1.bf16.msra.mxu1 %v5365_v8  ;;  %v982_v7 = vshll.u32 %v5566_v42, 16  ;;  %v5608_v8 = vld [vmem:[%s5385_s27 + $0x88] ss:$8 sps:$4 sm:$0xff]  }
  0x4a   : > { %1110 = vmatprep.subr.bf16.mxu0 %v5204_v1  ;;  %1263 = vmatprep.subr.bf16.mxu1 %v5204_v1  ;;  %v5632_v26 = vsel %vm1363_vm2, %v1364_v34, %v1365_v41  ;;  %v5645_v35 = vsel %vm1363_vm2, %v1367_v50, %v1368_v4  ;;  %v1376_v34 = vrot.slane %v5486_v44, 1  ;;  %v1380_v50 = vrot.slane %v5508_v56, 1 }
  0x4b   : > { %v5629_v13 = vrot.slane %v982_v7, 1  ;;  %v5650_v7 = vsel %vm478_vm1, %v537_v61, %v5571_v6  ;;  %v1374_v61 = vrot.slane %v5504_v53, 1 }
  0x4c   : > { %717 = vmatmul.mubr.bf16.gmra.mxu0 %v5580_v48  ;;  %876 = vmatmul.mubr.bf16.gmra.mxu1 %v5480_v43  ;;  %v5662_v43 = vsel %vm1363_vm2, %v1365_v41, %v1370_v39  ;;  %v5678_v41 = vsel %vm478_vm1, %v561_v60, %v5573_v45  ;;  %v1018_v60 = vshll.u32 %v5642_v21, 16 }
  0x4d   : > { %1111 = vmatpush1.bf16.msra.mxu0 %v5372_v9  ;;  %1264 = vmatpush1.bf16.msra.mxu1 %v5379_v10  ;;  %v1372_v9 = vrot.slane %v5447_v31, 1  ;;  %v1010_v31 = vshll.u32 %v5599_v63, 16  ;;  %v1002_v10 = vshll.u32 %v5608_v8, 16  ;;  %v5681_v14 = vsel %vm1363_vm2, %v1370_v39, %v1374_v61 }
  0x4e   : > { %4290 = vmatprep.mubr.msk.bf16.mxu0 %vm649_vm0, %v5604_v18  ;;  %4306 = vmatprep.mubr.msk.bf16.mxu1 %vm649_vm0, %v5486_v44  ;;  %v1026_v44 = vshll.u32 %v5617_v33, 16  ;;  %v5699_v39 = vsel %vm1363_vm2, %v1374_v61, %v1378_v24 }
  0x4f   : > { %1112 = vmatprep.subr.bf16.mxu0 %v5204_v1  ;;  %1265 = vmatprep.subr.bf16.mxu1 %v5204_v1  ;;  %v5655_v20 = vsel %vm1363_vm2, %v1368_v4, %v1372_v9  ;;  %v553_v4 = vor.u32 %v551_v40, %v5571_v6  ;;  %v5685_v40 = vrot.slane %v1010_v31, 1  ;;  %v1022_v6 = vshrl.u32 %v5599_v63, 16 }
  0x50   : > { %v1382_v31 = vrot.slane %v5531_v2, 1 }
  0x51   : > { %1113 = vmatpush1.bf16.msra.mxu0 %v5391_v11  ;;  %1266 = vmatpush1.bf16.msra.mxu1 %v5398_v12  ;;  %v5672_v11 = vsel %vm1363_vm2, %v1372_v9, %v1376_v34  ;;  %v979_v12 = vrot.slane %v977_v16, 1  ;;  %v5689_v9 = vsel %vm1363_vm2, %v1376_v34, %v1380_v50  ;;  %v577_v16 = vor.u32 %v575_v49, %v5573_v45 }
  0x52   : > { %1114 = vmatprep.subr.bf16.mxu0 %v5204_v1  ;;  %1267 = vmatprep.subr.bf16.mxu1 %v5204_v1  ;;  %v5710_v34 = vsel %vm1363_vm2, %v1380_v50, %v1384_v54  ;;  %v1388_v45 = vrot.slane %v5536_v15, 1  ;;  %v5721_v61 = vsel %vm1363_vm2, %v1378_v24, %v1382_v31  ;;  %v5726_v50 = vld [vmem:[%s5385_s27 + $0xa8] ss:$8 sps:$4 sm:$0xff]   ;;  %v1038_v24 = vshrl.u32 %v5617_v33, 16 }
  0x54   : > { %725 = vmatmul.mubr.bf16.gmra.mxu0 %v5650_v7  ;;  %884 = vmatmul.mubr.bf16.gmra.mxu1 %v5504_v53  ;;  %v5705_v53 = vrot.slane %v1002_v10, 1  ;;  %v1386_v10 = vrot.slane %v5546_v23, 1  ;;  %v5729_v15 = vsel %vm1363_vm2, %v1384_v54, %v1388_v45  ;;  %v5745_v23 = vsel %vm478_vm1, %v577_v16, %v5595_v62 }
  0x55   : > { %1115 = vmatpush1.bf16.msra.mxu0 %v5413_v17  ;;  %1268 = vmatpush1.bf16.msra.mxu1 %v5421_v19  ;;  %v5707_v17 = vrot.slane %v1026_v44, 1  ;;  %v5718_v19 = vld [vmem:[%s5385_s27 + $0xac] ss:$8 sps:$4 sm:$0xff]   ;;  %v5736_v44 = vrot.slane %v1018_v60, 1  ;;  %v1030_v62 = vshrl.u32 %v5642_v21, 16 }
  0x56   : > { %4291 = vmatprep.mubr.msk.bf16.mxu0 %vm649_vm0, %v5678_v41  ;;  %4307 = vmatprep.mubr.msk.bf16.mxu1 %vm649_vm0, %v5508_v56  ;;  %v5733_v56 = vsel %vm478_vm1, %v553_v4, %v5585_v51  ;;  %v5740_v49 = vsel %vm1363_vm2, %v1382_v31, %v1386_v10  ;;  %v1034_v4 = vshll.u32 %v5726_v50, 16  ;;  %v1054_v16 = vshrl.u32 %v5718_v19, 16  ;;  %v5769_v60 = vld [vmem:[%s5385_s27 + $0xbc] ss:$8 sps:$4 sm:$0xff]  }
  0x57   : > { %1116 = vmatprep.subr.bf16.mxu0 %v5204_v1  ;;  %1269 = vmatprep.subr.bf16.mxu1 %v5204_v1 }
  0x59   : > { %1117 = vmatpush1.bf16.msra.mxu0 %v5430_v25  ;;  %1270 = vmatpush1.bf16.msra.mxu1 %v5440_v28  ;;  %v6961_v25 = vshrl.u32 %v5531_v2, 16  ;;  %v1042_v28 = vshll.u32 %v5718_v19, 16 }
  0x5a   : > { %1130 = vmatprep.subr.bf16.mxu0 %v5204_v1  ;;  %1283 = vmatprep.subr.bf16.mxu1 %v5204_v1 }
  0x5b   : > { %v569_v54 = vor.u32 %v6961_v25, %v5585_v51  ;;  %v6962_v51 = vshrl.u32 %v5576_v46, 16  ;;  %v5039_v25 = vld [vmem:[%s6949_s1 + $0xd0] sm:$0xff]  }
  0x5c   : > { %733 = vmatmul.mubr.bf16.gmra.mxu0 %v5733_v56  ;;  %892 = vmatmul.mubr.bf16.gmra.mxu1 %v5513_v57 }
  0x5d   : > { %4292 = vmatprep.mubr.msk.bf16.mxu0 %vm649_vm0, %v5745_v23  ;;  %4308 = vmatprep.mubr.msk.bf16.mxu1 %vm649_vm0, %v5516_v58  ;;  %v992_v57 = vor.u32 %v5638_v59, %v6962_v51  ;;  %v5774_v31 = vsel %vm478_vm1, %v569_v54, %v5613_v22  ;;  %v5790_v22 = vrot.slane %v1034_v4, 1  ;;  %v1046_v59 = vshrl.u32 %v5726_v50, 16  ;;  %v4321_v4 = vld [vmem:[%s5385_s27 + $0xc8] sm:$0x11]  ;;  %v5821_v51 = vld [vmem:[%s5385_s27 + $0xb8] ss:$8 sps:$4 sm:$0xff]  }
  0x5e   : > { %1131 = vmatpush2.bf16.msra.mxu0 %v5453_v32  ;;  %1284 = vmatpush2.bf16.msra.mxu1 %v5463_v36  ;;  %v6963_v36 = vshrl.u32 %v5589_v55, 16 }
  0x5f   : > { %1132 = vmatprep.subr.bf16.mxu0 %v5204_v1  ;;  %1285 = vmatprep.subr.bf16.mxu1 %v5204_v1  ;;  %v5779_v32 = vsel %vm478_vm1, %v992_v57, %v5622_v5  ;;  %v5043_v57 = vld [vmem:[%s6949_s1 + $0xc8] sm:$0xff]  }
  0x60   : > { %v980_v58 = vor.u32 %v979_v12, %v6963_v36  ;;  %v5038_v12 = vld [vmem:[%s6949_s1 + $0xd8] sm:$0xff]   ;;  %v1024_v36 = vor.u32 %v1022_v6, %v5685_v40  ;;  %v1050_v6 = vshll.u32 %v5821_v51, 16 }
  0x62   : > { %1133 = vmatpush2.bf16.msra.mxu0 %v5469_v37  ;;  %1286 = vmatpush2.bf16.msra.mxu1 %v5474_v38  ;;  %v1044_v37 = vrot.slane %v1042_v28, 1  ;;  %v1058_v38 = vshll.u32 %v5769_v60, 16  ;;  %v5804_v10 = vsel %vm478_vm1, %v980_v58, %v5629_v13  ;;  %v5838_v58 = vcombine.high %v4321_v4, %v4321_v4 }
  0x63   : > { %1474 = vmatprep.subr.bf16.mxu0 %v5204_v1  ;;  %1623 = vmatprep.subr.bf16.mxu1 %v5204_v1 }
  0x64   : > { %741 = vmatmul.mubr.bf16.gmra.mxu0 %v5774_v31  ;;  %900 = vmatmul.mubr.bf16.gmra.mxu1 %v5531_v2  ;;  %v6964_v2 = vshrl.u32 %v5553_v29, 16 }
  0x65   : > { %4336 = vmatprep.mubr.msk.bf16.mxu0 %vm649_vm0, %v5779_v32  ;;  %4354 = vmatprep.mubr.msk.bf16.mxu1 %vm649_vm0, %v5576_v46 }
  0x66   : > { %v1008_v45 = vor.u32 %v6964_v2, %v5622_v5  ;;  %v6965_v5 = vshrl.u32 %v5566_v42, 16  ;;  %v1070_v2 = vshrl.u32 %v5769_v60, 16 }
  0x68   : > { %v5812_v54 = vsel %vm478_vm1, %v1008_v45, %v5685_v40  ;;  %v1000_v28 = vor.u32 %v6965_v5, %v5629_v13  ;;  %v5047_v40 = vld [vmem:[%s6949_s1 + $0xc0] sm:$0xff]   ;;  %v6966_v45 = vshrl.u32 %v5608_v8, 16  ;;  %v1060_v5 = vrot.slane %v1058_v38, 1 }
  0x6a   : > { %v5836_v13 = vsel %vm478_vm1, %v1000_v28, %v5705_v53  ;;  %v1074_v28 = vshll.u32 %v5838_v58, 16 }
  0x6c   : > { %1135 = vmatmul.mubr.bf16.vlgmr.msra.gmra.mxu0 %v5804_v10  ;;  %1288 = vmatmul.mubr.bf16.vlgmr.msra.gmra.mxu1 %v5589_v55 }
  0x6d   : > { %1475 = vmatpush1.bf16.msra.mxu0 %v5038_v12  ;;  %1624 = vmatpush1.bf16.msra.mxu1 %v5038_v12  ;;  %v5844_v12 = vsel %vm478_vm1, %v1024_v36, %v5707_v17  ;;  %v5048_v36 = vld [vmem:[%s6949_s1 + $0xb8] sm:$0xff]  }
  0x6e   : > { %1476 = vmatprep.subr.bf16.mxu0 %v5204_v1  ;;  %1625 = vmatprep.subr.bf16.mxu1 %v5204_v1 }
  0x6f   : > { %4337 = vmatprep.mubr.msk.bf16.mxu0 %vm649_vm0, %v5812_v54  ;;  %4355 = vmatprep.mubr.msk.bf16.mxu1 %vm649_vm0, %v5553_v29 }
  0x71   : > { %1477 = vmatpush1.bf16.msra.mxu0 %v5039_v25  ;;  %1626 = vmatpush1.bf16.msra.mxu1 %v5039_v25  ;;  %v1016_v25 = vor.u32 %v6966_v45, %v5705_v53  ;;  %v1040_v53 = vor.u32 %v1038_v24, %v5707_v17  ;;  %v5052_v45 = vld [vmem:[%s6949_s1 + $0xb0] sm:$0xff]   ;;  %v1032_v17 = vor.u32 %v1030_v62, %v5736_v44  ;;  %v5053_v24 = vld [vmem:[%s6949_s1 + $0xa8] sm:$0xff]  }
  0x72   : > { %1478 = vmatprep.subr.bf16.mxu0 %v5204_v1  ;;  %1627 = vmatprep.subr.bf16.mxu1 %v5204_v1 }
  0x73   : > { %v5871_v38 = vsel %vm478_vm1, %v1016_v25, %v5736_v44  ;;  %v5899_v44 = vsel %vm478_vm1, %v1032_v17, %v5790_v22  ;;  %v5057_v25 = vld [vmem:[%s6949_s1 + $0xa0] sm:$0xff]  }
  0x74   : > { %1143 = vmatmul.mubr.bf16.gmra.mxu0 %v5836_v13  ;;  %1296 = vmatmul.mubr.bf16.gmra.mxu1 %v5566_v42 }
  0x75   : > { %1479 = vmatpush1.bf16.msra.mxu0 %v5043_v57  ;;  %1628 = vmatpush1.bf16.msra.mxu1 %v5043_v57  ;;  %v5876_v57 = vsel %vm478_vm1, %v1040_v53, %v1044_v37  ;;  %v1072_v53 = vor.u32 %v1070_v2, %v1060_v5 }
  0x76   : > { %4338 = vmatprep.mubr.msk.bf16.mxu0 %vm649_vm0, %v5844_v12  ;;  %4356 = vmatprep.mubr.msk.bf16.mxu1 %vm649_vm0, %v5599_v63 }
  0x77   : > { %1480 = vmatprep.subr.bf16.mxu0 %v5204_v1  ;;  %1629 = vmatprep.subr.bf16.mxu1 %v5204_v1 }
  0x79   : > { %1481 = vmatpush1.bf16.msra.mxu0 %v5047_v40  ;;  %1630 = vmatpush1.bf16.msra.mxu1 %v5047_v40  ;;  %v1056_v40 = vor.u32 %v1054_v16, %v1044_v37  ;;  %v1048_v16 = vor.u32 %v1046_v59, %v5790_v22  ;;  %v1052_v37 = vrot.slane %v1050_v6, 1  ;;  %v4398_v22 = vld [vmem:[%s5385_s27 + $0x68] sm:$0xee] }
  0x7a   : > { %1482 = vmatprep.subr.bf16.mxu0 %v5204_v1  ;;  %1631 = vmatprep.subr.bf16.mxu1 %v5204_v1 }
  0x7b   : > { %v5904_v62 = vsel %vm478_vm1, %v1056_v40, %v1060_v5  ;;  %v5924_v59 = vsel %vm478_vm1, %v1048_v16, %v1052_v37  ;;  %v5060_v5 = vld [vmem:[%s6949_s1 + $0xe8] sm:$0xff]   ;;  %v5061_v40 = vld [vmem:[%s6949_s1 + $0xe0] sm:$0xff]  }
  0x7c   : > { %1151 = vmatmul.mubr.bf16.gmra.mxu0 %v5871_v38  ;;  %1304 = vmatmul.mubr.bf16.gmra.mxu1 %v5608_v8 }
  0x7d   : > { %1483 = vmatpush1.bf16.msra.mxu0 %v5048_v36  ;;  %1632 = vmatpush1.bf16.msra.mxu1 %v5048_v36  ;;  %v5914_v36 = vcombine.low %v4321_v4, %v4321_v4  ;;  %v1062_v4 = vshrl.u32 %v5821_v51, 16 }
  0x7e   : > { %4339 = vmatprep.mubr.msk.bf16.mxu0 %vm649_vm0, %v5876_v57  ;;  %4357 = vmatprep.mubr.msk.bf16.mxu1 %vm649_vm0, %v5617_v33 }
  0x7f   : > { %1484 = vmatprep.subr.bf16.mxu0 %v5204_v1  ;;  %1633 = vmatprep.subr.bf16.mxu1 %v5204_v1  ;;  %v1066_v6 = vshll.u32 %v5914_v36, 16  ;;  %v1064_v17 = vor.u32 %v1062_v4, %v1052_v37  ;;  %v4399_v37 = vcombine.low %v4398_v22, %v5550_v27  ;;  %v1574_v4 = vrot.slane %v5566_v42, 1 }
  0x80   : > { %v1579_v42 = vrot.slane %v5608_v8, 1 }
  0x81   : > { %1485 = vmatpush1.bf16.msra.mxu0 %v5052_v45  ;;  %1634 = vmatpush1.bf16.msra.mxu1 %v5052_v45  ;;  %v1076_v45 = vrot.slane %v1074_v28, 1  ;;  %v4400_v28 = vcombine.high %v4398_v22, %v5550_v27  ;;  %v5066_v27 = vld [vmem:[%s6950_s2 + $0x38] sm:$0xff]   ;;  %v1581_v22 = vrot.slane %v5599_v63, 1 }
  0x82   : > { %1486 = vmatprep.subr.bf16.mxu0 %v5204_v1  ;;  %1635 = vmatprep.subr.bf16.mxu1 %v5204_v1 }
  0x83   : > { %v5929_v2 = vsel %vm478_vm1, %v1072_v53, %v1076_v45  ;;  %v1576_v16 = vrot.slane %v4400_v28, 1 }
  0x84   : > { %1159 = vmatmul.mubr.bf16.gmra.mxu0 %v5899_v44  ;;  %1312 = vmatmul.mubr.bf16.gmra.mxu1 %v5642_v21 }
  0x85   : > { %1487 = vmatpush1.bf16.msra.mxu0 %v5053_v24  ;;  %1636 = vmatpush1.bf16.msra.mxu1 %v5053_v24  ;;  %v1068_v24 = vrot.slane %v1066_v6, 1 }
  0x86   : > { %4340 = vmatprep.mubr.msk.bf16.mxu0 %vm649_vm0, %v5904_v62  ;;  %4358 = vmatprep.mubr.msk.bf16.mxu1 %vm649_vm0, %v5718_v19 }
  0x87   : > { %1488 = vmatprep.subr.bf16.mxu0 %v5204_v1  ;;  %1637 = vmatprep.subr.bf16.mxu1 %v5204_v1  ;;  %v5950_v53 = vsel %vm478_vm1, %v1064_v17, %v1068_v24  ;;  %v1585_v17 = vrot.slane %v5617_v33, 1  ;;  %v5068_v24 = vld [vmem:[%s6950_s2 + $0x28] sm:$0xff]  }
  0x89   : > { %1489 = vmatpush1.bf16.msra.mxu0 %v5057_v25  ;;  %1638 = vmatpush1.bf16.msra.mxu1 %v5057_v25  ;;  %v1577_v25 = vrot.slane %v5553_v29, 1  ;;  %v1573_v29 = vrot.slane %v4399_v37, 1  ;;  %v1583_v37 = vrot.slane %v5642_v21, 1 }
  0x8a   : > { %1502 = vmatprep.subr.bf16.mxu0 %v5204_v1  ;;  %1651 = vmatprep.subr.bf16.mxu1 %v5204_v1 }
  0x8b   : > { %v1578_v45 = vsel %vm1363_vm2, %v1576_v16, %v1577_v25  ;;  %v1575_v6 = vsel %vm1363_vm2, %v1573_v29, %v1574_v4  ;;  %v1582_v28 = vsel %vm1363_vm2, %v1577_v25, %v1581_v22  ;;  %v1586_v16 = vsel %vm1363_vm2, %v1581_v22, %v1585_v17  ;;  %v5069_v25 = vld [vmem:[%s6950_s2 + $0x20] sm:$0xff]   ;;  %v5070_v29 = vld [vmem:[%s6950_s2 + $0x18] sm:$0xff]   ;;  %v5071_v22 = vld [vmem:[%s6950_s2 + $0x10] sm:$0xff]  }
  0x8c   : > { %1167 = vmatmul.mubr.bf16.gmra.mxu0 %v5924_v59  ;;  %1320 = vmatmul.mubr.bf16.gmra.mxu1 %v5726_v50 }
  0x8d   : > { %4341 = vmatprep.mubr.msk.bf16.mxu0 %vm649_vm0, %v5929_v2  ;;  %4359 = vmatprep.mubr.msk.bf16.mxu1 %vm649_vm0, %v5769_v60 }
  0x8e   : > { %1503 = vmatpush2.bf16.msra.mxu0 %v5060_v5  ;;  %1652 = vmatpush2.bf16.msra.mxu1 %v5060_v5  ;;  %v5067_v5 = vld [vmem:[%s6950_s2 + $0x30] sm:$0xff]  }
  0x8f   : > { %1504 = vmatprep.subr.bf16.mxu0 %v5204_v1  ;;  %1653 = vmatprep.subr.bf16.mxu1 %v5204_v1 }
  0x92   : > { %1505 = vmatpush2.bf16.msra.mxu0 %v5061_v40  ;;  %1654 = vmatpush2.bf16.msra.mxu1 %v5061_v40  ;;  %v1580_v40 = vsel %vm1363_vm2, %v1574_v4, %v1579_v42  ;;  %v1584_v4 = vsel %vm1363_vm2, %v1579_v42, %v1583_v37 }
  0x93   : > { %1796 = vmatprep.subr.bf16.mxu0 %v5204_v1  ;;  %1889 = vmatprep.subr.bf16.mxu1 %v5204_v1 }
  0x94   : > { %1175 = vmatmul.mubr.bf16.gmra.mxu0 %v5950_v53  ;;  %1328 = vmatmul.mubr.bf16.gmra.mxu1 %v5821_v51 }
  0x95   : > { %4392 = vmatprep.mubr.msk.bf16.mxu0 %vm649_vm0, %v5645_v35  ;;  %4401 = vmatprep.mubr.msk.bf16.mxu1 %vm649_vm0, %v1578_v45  ;;  %v1589_v45 = vrot.slane %v5718_v19, 1 }
  0x9c   : > { %1507 = vmatmul.mubr.bf16.vlgmr.msra.gmra.mxu0 %v5632_v26  ;;  %1656 = vmatmul.mubr.bf16.vlgmr.msra.gmra.mxu1 %v1575_v6  ;;  %v1587_v6 = vrot.slane %v5726_v50, 1 }
  0x9d   : > { %1797 = vmatpush1.bf16.msra.mxu0 %v5066_v27  ;;  %1890 = vmatpush1.bf16.msra.mxu1 %v5066_v27  ;;  %v1590_v27 = vsel %vm1363_vm2, %v1585_v17, %v1589_v45 }
  0x9e   : > { %1798 = vmatprep.subr.bf16.mxu0 %v5204_v1  ;;  %1891 = vmatprep.subr.bf16.mxu1 %v5204_v1  ;;  %v1588_v42 = vsel %vm1363_vm2, %v1583_v37, %v1587_v6  ;;  %v5074_v37 = vld [vmem:[%s6950_s2 + $0x48] sm:$0xff]  }
  0x9f   : > { %4393 = vmatprep.mubr.msk.bf16.mxu0 %vm649_vm0, %v5655_v20  ;;  %4402 = vmatprep.mubr.msk.bf16.mxu1 %vm649_vm0, %v1582_v28  ;;  %v5072_v28 = vld [vmem:[%s6950_s2 + $0x8] sm:$0xff]  }
  0xa1   : > { %1799 = vmatpush1.bf16.msra.mxu0 %v5067_v5  ;;  %1892 = vmatpush1.bf16.msra.mxu1 %v5067_v5  ;;  %v1593_v5 = vrot.slane %v5769_v60, 1 }
  0xa2   : > { %1800 = vmatprep.subr.bf16.mxu0 %v5204_v1  ;;  %1893 = vmatprep.subr.bf16.mxu1 %v5204_v1 }
  0xa3   : > { %v1594_v17 = vsel %vm1363_vm2, %v1589_v45, %v1593_v5 }
  0xa4   : > { %1515 = vmatmul.mubr.bf16.gmra.mxu0 %v5662_v43  ;;  %1664 = vmatmul.mubr.bf16.gmra.mxu1 %v1580_v40  ;;  %v1591_v40 = vrot.slane %v5821_v51, 1 }
  0xa5   : > { %1801 = vmatpush1.bf16.msra.mxu0 %v5068_v24  ;;  %1894 = vmatpush1.bf16.msra.mxu1 %v5068_v24  ;;  %v5073_v24 = vld [vmem:[%s6950_s2] sm:$0xff]  }
  0xa6   : > { %4394 = vmatprep.mubr.msk.bf16.mxu0 %vm649_vm0, %v5672_v11  ;;  %4403 = vmatprep.mubr.msk.bf16.mxu1 %vm649_vm0, %v1586_v16  ;;  %v1597_v16 = vrot.slane %v5838_v58, 1  ;;  %v1595_v58 = vrot.slane %v5914_v36, 1  ;;  %v5076_v36 = vld [vmem:[%s6950_s2 + $0x88] sm:$0xff]  }
  0xa7   : > { %1802 = vmatprep.subr.bf16.mxu0 %v5204_v1  ;;  %1895 = vmatprep.subr.bf16.mxu1 %v5204_v1 }
  0xa8   : > { %v1598_v45 = vsel %vm1363_vm2, %v1593_v5, %v1597_v16 }
  0xa9   : > { %1803 = vmatpush1.bf16.msra.mxu0 %v5069_v25  ;;  %1896 = vmatpush1.bf16.msra.mxu1 %v5069_v25  ;;  %v1592_v25 = vsel %vm1363_vm2, %v1587_v6, %v1591_v40 }
  0xaa   : > { %1804 = vmatprep.subr.bf16.mxu0 %v5204_v1  ;;  %1897 = vmatprep.subr.bf16.mxu1 %v5204_v1 }
  0xac   : > { %1523 = vmatmul.mubr.bf16.gmra.mxu0 %v5681_v14  ;;  %1672 = vmatmul.mubr.bf16.gmra.mxu1 %v1584_v4  ;;  %v1596_v4 = vsel %vm1363_vm2, %v1591_v40, %v1595_v58 }
  0xad   : > { %1805 = vmatpush1.bf16.msra.mxu0 %v5070_v29  ;;  %1898 = vmatpush1.bf16.msra.mxu1 %v5070_v29  ;;  %v5075_v29 = vld [vmem:[%s6950_s2 + $0x40] sm:$0xff]  }
  0xae   : > { %4395 = vmatprep.mubr.msk.bf16.mxu0 %vm649_vm0, %v5689_v9  ;;  %4404 = vmatprep.mubr.msk.bf16.mxu1 %vm649_vm0, %v1590_v27  ;;  %v5077_v27 = vld [vmem:[%s6950_s2 + $0x80] sm:$0xff]  }
  0xaf   : > { %1806 = vmatprep.subr.bf16.mxu0 %v5204_v1  ;;  %1899 = vmatprep.subr.bf16.mxu1 %v5204_v1 }
  0xb1   : > { %1807 = vmatpush1.bf16.msra.mxu0 %v5071_v22  ;;  %1900 = vmatpush1.bf16.msra.mxu1 %v5071_v22 }
  0xb2   : > { %1808 = vmatprep.subr.bf16.mxu0 %v5204_v1  ;;  %1901 = vmatprep.subr.bf16.mxu1 %v5204_v1 }
  0xb4   : > { %1531 = vmatmul.mubr.bf16.gmra.mxu0 %v5699_v39  ;;  %1680 = vmatmul.mubr.bf16.gmra.mxu1 %v1588_v42 }
  0xb5   : > { %1809 = vmatpush1.bf16.msra.mxu0 %v5072_v28  ;;  %1902 = vmatpush1.bf16.msra.mxu1 %v5072_v28 }
  0xb6   : > { %4396 = vmatprep.mubr.msk.bf16.mxu0 %vm649_vm0, %v5710_v34  ;;  %4405 = vmatprep.mubr.msk.bf16.mxu1 %vm649_vm0, %v1594_v17 }
  0xb7   : > { %1810 = vmatprep.subr.bf16.mxu0 %v5204_v1  ;;  %1903 = vmatprep.subr.bf16.mxu1 %v5204_v1 }
  0xb9   : > { %1811 = vmatpush1.bf16.msra.mxu0 %v5073_v24  ;;  %1904 = vmatpush1.bf16.msra.mxu1 %v5073_v24 }
  0xba   : > { %1824 = vmatprep.subr.bf16.mxu0 %v5204_v1  ;;  %1917 = vmatprep.subr.bf16.mxu1 %v5204_v1 }
  0xbc   : > { %1539 = vmatmul.mubr.bf16.gmra.mxu0 %v5721_v61  ;;  %1688 = vmatmul.mubr.bf16.gmra.mxu1 %v1592_v25 }
  0xbd   : > { %4397 = vmatprep.mubr.msk.bf16.mxu0 %vm649_vm0, %v5729_v15  ;;  %4406 = vmatprep.mubr.msk.bf16.mxu1 %vm649_vm0, %v1598_v45 }
  0xbe   : > { %1825 = vmatpush2.bf16.msra.mxu0 %v5074_v37  ;;  %1918 = vmatpush2.bf16.msra.mxu1 %v5074_v37 }
  0xbf   : > { %1826 = vmatprep.subr.bf16.mxu0 %v5204_v1  ;;  %1919 = vmatprep.subr.bf16.mxu1 %v5204_v1 }
  0xc2   : > { %1827 = vmatpush2.bf16.msra.mxu0 %v5075_v29  ;;  %1920 = vmatpush2.bf16.msra.mxu1 %v5075_v29 }
  0xc3   : > { %2063 = vmatprep.subr.bf16.mxu0 %v5204_v1  ;;  %2156 = vmatprep.subr.bf16.mxu1 %v5204_v1 }
  0xc4   : > { %1547 = vmatmul.mubr.bf16.gmra.mxu0 %v5740_v49  ;;  %1696 = vmatmul.mubr.bf16.gmra.mxu1 %v1596_v4 }
  0xc5   : > { %4417 = vmatprep.mubr.msk.bf16.mxu0 %vm649_vm0, %v5576_v46  ;;  %4423 = vmatprep.mubr.msk.bf16.mxu1 %vm649_vm0, %v5444_v30  ;;  %v5140_v30 = vld [vmem:[%s5385_s27 + $0x7c] ss:$8 sps:$4 sm:$0xff]   ;;  %v5141_v46 = vld [vmem:[%s5385_s27 + $0x78] ss:$8 sps:$4 sm:$0xff]  }
  0xcc   : > { %1829 = vmatmul.mubr.bf16.vlgmr.msra.gmra.mxu0 %v5589_v55  ;;  %1922 = vmatmul.mubr.bf16.vlgmr.msra.gmra.mxu1 %v5490_v47  ;;  %v5078_v47 = vld [vmem:[%s6950_s2 + $0x78] sm:$0xff]   ;;  %v5079_v55 = vld [vmem:[%s6950_s2 + $0x70] sm:$0xff]  }
  0xcd   : > { %2064 = vmatpush1.bf16.msra.mxu0 %v5076_v36  ;;  %2157 = vmatpush1.bf16.msra.mxu1 %v5076_v36 }
  0xce   : > { %2065 = vmatprep.subr.bf16.mxu0 %v5204_v1  ;;  %2158 = vmatprep.subr.bf16.mxu1 %v5204_v1 }
  0xcf   : > { %4418 = vmatprep.mubr.msk.bf16.mxu0 %vm649_vm0, %v5140_v30  ;;  %4424 = vmatprep.mubr.msk.bf16.mxu1 %vm649_vm0, %v5501_v52  ;;  %v5080_v52 = vld [vmem:[%s6950_s2 + $0x68] sm:$0xff]  }
  0xd1   : > { %2066 = vmatpush1.bf16.msra.mxu0 %v5077_v27  ;;  %2159 = vmatpush1.bf16.msra.mxu1 %v5077_v27 }
  0xd2   : > { %2067 = vmatprep.subr.bf16.mxu0 %v5204_v1  ;;  %2160 = vmatprep.subr.bf16.mxu1 %v5204_v1 }
  0xd4   : > { %1837 = vmatmul.mubr.bf16.gmra.mxu0 %v5141_v46  ;;  %1930 = vmatmul.mubr.bf16.gmra.mxu1 %v5528_v0  ;;  %v5081_v0 = vld [vmem:[%s6950_s2 + $0x60] sm:$0xff]  }
  0xd5   : > { %2068 = vmatpush1.bf16.msra.mxu0 %v5078_v47  ;;  %2161 = vmatpush1.bf16.msra.mxu1 %v5078_v47 }
  0xd6   : > { %4419 = vmatprep.mubr.msk.bf16.mxu0 %vm649_vm0, %v5599_v63  ;;  %4425 = vmatprep.mubr.msk.bf16.mxu1 %vm649_vm0, %v5540_v3  ;;  %v5082_v3 = vld [vmem:[%s6950_s2 + $0x58] sm:$0xff]  }
  0xd7   : > { %2069 = vmatprep.subr.bf16.mxu0 %v5204_v1  ;;  %2162 = vmatprep.subr.bf16.mxu1 %v5204_v1  ;;  %v5084_v63 = vld [vmem:[%s6950_s2 + $0x98] sm:$0xff]  }
  0xd9   : > { %2070 = vmatpush1.bf16.msra.mxu0 %v5079_v55  ;;  %2163 = vmatpush1.bf16.msra.mxu1 %v5079_v55 }
  0xda   : > { %2071 = vmatprep.subr.bf16.mxu0 %v5204_v1  ;;  %2164 = vmatprep.subr.bf16.mxu1 %v5204_v1 }
  0xdc   : > { %1845 = vmatmul.mubr.bf16.gmra.mxu0 %v5608_v8  ;;  %1938 = vmatmul.mubr.bf16.gmra.mxu1 %v5580_v48  ;;  %v5083_v48 = vld [vmem:[%s6950_s2 + $0x50] sm:$0xff]  }
  0xdd   : > { %2072 = vmatpush1.bf16.msra.mxu0 %v5080_v52  ;;  %2165 = vmatpush1.bf16.msra.mxu1 %v5080_v52 }
  0xde   : > { %4420 = vmatprep.mubr.msk.bf16.mxu0 %vm649_vm0, %v5617_v33  ;;  %4426 = vmatprep.mubr.msk.bf16.mxu1 %vm649_vm0, %v5604_v18  ;;  %v5085_v18 = vld [vmem:[%s6950_s2 + $0x90] sm:$0xff]  }
  0xdf   : > { %2073 = vmatprep.subr.bf16.mxu0 %v5204_v1  ;;  %2166 = vmatprep.subr.bf16.mxu1 %v5204_v1 }
  0xe1   : > { %2074 = vmatpush1.bf16.msra.mxu0 %v5081_v0  ;;  %2167 = vmatpush1.bf16.msra.mxu1 %v5081_v0 }
  0xe2   : > { %2075 = vmatprep.subr.bf16.mxu0 %v5204_v1  ;;  %2168 = vmatprep.subr.bf16.mxu1 %v5204_v1 }
  0xe4   : > { %1853 = vmatmul.mubr.bf16.gmra.mxu0 %v5642_v21  ;;  %1946 = vmatmul.mubr.bf16.gmra.mxu1 %v5650_v7 }
  0xe5   : > { %2076 = vmatpush1.bf16.msra.mxu0 %v5082_v3  ;;  %2169 = vmatpush1.bf16.msra.mxu1 %v5082_v3 }
  0xe6   : > { %4421 = vmatprep.mubr.msk.bf16.mxu0 %vm649_vm0, %v5718_v19  ;;  %4427 = vmatprep.mubr.msk.bf16.mxu1 %vm649_vm0, %v5678_v41 }
  0xe7   : > { %2077 = vmatprep.subr.bf16.mxu0 %v5204_v1  ;;  %2170 = vmatprep.subr.bf16.mxu1 %v5204_v1 }
  0xe9   : > { %2078 = vmatpush1.bf16.msra.mxu0 %v5083_v48  ;;  %2171 = vmatpush1.bf16.msra.mxu1 %v5083_v48 }
  0xea   : > { %2091 = vmatprep.subr.bf16.mxu0 %v5204_v1  ;;  %2184 = vmatprep.subr.bf16.mxu1 %v5204_v1 }
  0xec   : > { %1861 = vmatmul.mubr.bf16.gmra.mxu0 %v5726_v50  ;;  %1954 = vmatmul.mubr.bf16.gmra.mxu1 %v5733_v56 }
  0xed   : > { %4422 = vmatprep.mubr.msk.bf16.mxu0 %vm649_vm0, %v5769_v60  ;;  %4428 = vmatprep.mubr.msk.bf16.mxu1 %vm649_vm0, %v5745_v23 }
  0xee   : > { %2092 = vmatpush2.bf16.msra.mxu0 %v5084_v63  ;;  %2185 = vmatpush2.bf16.msra.mxu1 %v5084_v63 }
  0xef   : > { %2093 = vmatprep.subr.bf16.mxu0 %v5204_v1  ;;  %2186 = vmatprep.subr.bf16.mxu1 %v5204_v1 }
  0xf2   : > { %2094 = vmatpush2.bf16.msra.mxu0 %v5085_v18  ;;  %2187 = vmatpush2.bf16.msra.mxu1 %v5085_v18 }
  0xf4   : > { %1869 = vmatmul.mubr.bf16.gmra.mxu0 %v5821_v51  ;;  %1962 = vmatmul.mubr.bf16.gmra.mxu1 %v5774_v31 }
  0xf5   : > { %4459 = vmatprep.mubr.msk.bf16.mxu0 %vm649_vm0, %v5779_v32  ;;  %4465 = vmatprep.mubr.msk.bf16.mxu1 %vm649_vm0, %v5645_v35 }
  0xfc   : > { %v702_v8 = vpop.f32.mrf.mxu0  ;;  %2096 = vmatmul.mubr.bf16.vlgmr.msra.gmra.mxu0 %v5804_v10  ;;  %v861_v33 = vpop.f32.mrf.mxu1  ;;  %2189 = vmatmul.mubr.bf16.vlgmr.msra.gmra.mxu1 %v5632_v26 }
  0xfd   : > { %4460 = vmatprep.mubr.msk.bf16.mxu0 %vm649_vm0, %v5812_v54  ;;  %v6146_v21 = vadd.f32 %v861_v33, %v702_v8  ;;  %4466 = vmatprep.mubr.msk.bf16.mxu1 %vm649_vm0, %v5655_v20 }
  0xfe   : > { %v704_v7 = vpop.f32.mrf.mxu0  ;;  %v863_v41 = vpop.f32.mrf.mxu1 }
 0x100   : > { %v705_v19 = vpop.f32.mrf.mxu0  ;;  %v864_v50 = vpop.f32.mrf.mxu1 }
 0x101   : > { %v6150_v56 = vadd.f32 %v864_v50, %v705_v19 }
 0x102   : > { %v707_v35 = vpop.f32.mrf.mxu0  ;;  %v866_v23 = vpop.f32.mrf.mxu1 }
 0x104   : > { %v710_v60 = vpop.f32.mrf.mxu0  ;;  %2104 = vmatmul.mubr.bf16.gmra.mxu0 %v5836_v13  ;;  %v869_v26 = vpop.f32.mrf.mxu1  ;;  %2197 = vmatmul.mubr.bf16.gmra.mxu1 %v5662_v43 }
 0x105   : > { %4461 = vmatprep.mubr.msk.bf16.mxu0 %vm649_vm0, %v5844_v12  ;;  %v6156_v31 = vadd.f32 %v869_v26, %v710_v60  ;;  %4467 = vmatprep.mubr.msk.bf16.mxu1 %vm649_vm0, %v5672_v11 }
 0x106   : > { %v712_v32 = vpop.f32.mrf.mxu0  ;;  %v871_v20 = vpop.f32.mrf.mxu1 }
 0x108   : > { %v713_v10 = vpop.f32.mrf.mxu0  ;;  %v872_v54 = vpop.f32.mrf.mxu1 }
 0x109   : > { %v6160_v51 = vadd.f32 %v872_v54, %v713_v10 }
 0x10a   : > { %v715_v22 = vpop.f32.mrf.mxu0  ;;  %v874_v6 = vpop.f32.mrf.mxu1 }
 0x10c   : > { %v718_v13 = vpop.f32.mrf.mxu0  ;;  %2112 = vmatmul.mubr.bf16.gmra.mxu0 %v5871_v38  ;;  %v877_v43 = vpop.f32.mrf.mxu1  ;;  %2205 = vmatmul.mubr.bf16.gmra.mxu1 %v5681_v14 }
 0x10d   : > { %4462 = vmatprep.mubr.msk.bf16.mxu0 %vm649_vm0, %v5876_v57  ;;  %v6166_v12 = vadd.f32 %v877_v43, %v718_v13  ;;  %4468 = vmatprep.mubr.msk.bf16.mxu1 %vm649_vm0, %v5689_v9 }
 0x10e   : > { %v720_v5 = vpop.f32.mrf.mxu0  ;;  %v879_v11 = vpop.f32.mrf.mxu1 }
 0x10f   : > { %v5205_v5 = vmov 0.0  }
 0x110   : > { %v721_v28 = vpop.f32.mrf.mxu0  ;;  %v880_v42 = vpop.f32.mrf.mxu1  ;;  %4734 = vmatprep.subr.bf16.mxu0 %v5205_v5  ;;  %4742 = vmatprep.subr.bf16.mxu1 %v5205_v5 }
 0x111   : > { %v6170_v17 = vadd.f32 %v880_v42, %v721_v28 }
 0x112   : > { %v723_v24 = vpop.f32.mrf.mxu0  ;;  %v882_v40 = vpop.f32.mrf.mxu1 }
 0x114   : > { %v726_v38 = vpop.f32.mrf.mxu0  ;;  %2120 = vmatmul.mubr.bf16.gmra.mxu0 %v5899_v44  ;;  %v885_v14 = vpop.f32.mrf.mxu1  ;;  %2213 = vmatmul.mubr.bf16.gmra.mxu1 %v5699_v39 }
 0x115   : > { %4463 = vmatprep.mubr.msk.bf16.mxu0 %vm649_vm0, %v5904_v62  ;;  %v6176_v57 = vadd.f32 %v885_v14, %v726_v38  ;;  %4469 = vmatprep.mubr.msk.bf16.mxu1 %vm649_vm0, %v5710_v34 }
 0x116   : > { %v728_v16 = vpop.f32.mrf.mxu0  ;;  %v887_v9 = vpop.f32.mrf.mxu1 }
 0x118   : > { %v729_v25 = vpop.f32.mrf.mxu0  ;;  %v888_v37 = vpop.f32.mrf.mxu1 }
 0x119   : > { %v6180_v45 = vadd.f32 %v888_v37, %v729_v25 }
 0x11a   : > { %v731_v58 = vpop.f32.mrf.mxu0  ;;  %v890_v29 = vpop.f32.mrf.mxu1 }
 0x11c   : > { %v734_v44 = vpop.f32.mrf.mxu0  ;;  %2128 = vmatmul.mubr.bf16.gmra.mxu0 %v5924_v59  ;;  %v893_v39 = vpop.f32.mrf.mxu1  ;;  %2221 = vmatmul.mubr.bf16.gmra.mxu1 %v5721_v61 }
 0x11d   : > { %4464 = vmatprep.mubr.msk.bf16.mxu0 %vm649_vm0, %v5929_v2  ;;  %v6186_v62 = vadd.f32 %v893_v39, %v734_v44  ;;  %4470 = vmatprep.mubr.msk.bf16.mxu1 %vm649_vm0, %v5729_v15  ;;  %v5086_v44 = vld [vmem:[%s6952_s4 + $0x18] sm:$0xff]  }
 0x11e   : > { %v736_v4 = vpop.f32.mrf.mxu0  ;;  %v895_v34 = vpop.f32.mrf.mxu1  ;;  %4735 = vmatpush3.bf16.msra.mxu0 %v5086_v44 }
 0x11f   : > { %4736 = vmatprep.subr.bf16.mxu0 %v5205_v5 }
 0x120   : > { %v737_v36 = vpop.f32.mrf.mxu0  ;;  %v896_v27 = vpop.f32.mrf.mxu1 }
 0x121   : > { %v6190_v30 = vadd.f32 %v896_v27, %v737_v36 }
 0x122   : > { %v739_v47 = vpop.f32.mrf.mxu0  ;;  %v898_v46 = vpop.f32.mrf.mxu1 }
 0x123   : > { %v5087_v46 = vld [vmem:[%s6952_s4 + $0x8] sm:$0xff]  }
 0x124   : > { %v742_v59 = vpop.f32.mrf.mxu0  ;;  %2136 = vmatmul.mubr.bf16.gmra.mxu0 %v5950_v53  ;;  %v901_v61 = vpop.f32.mrf.mxu1  ;;  %2229 = vmatmul.mubr.bf16.gmra.mxu1 %v5740_v49 }
 0x125   : > { %v6194_v2 = vadd.f32 %v901_v61, %v742_v59  ;;  %4743 = vmatpush3.bf16.msra.mxu1 %v5087_v46  ;;  %4746 = vmatprep.mubr.msk.bf16.mxu1 %vm5206_vm3, %v5205_v5 }
 0x126   : > { %v744_v55 = vpop.f32.mrf.mxu0  ;;  %v903_v52 = vpop.f32.mrf.mxu1  ;;  %4744 = vmatprep.subr.bf16.mxu1 %v5205_v5  ;;  %4738 = vmatprep.mubr.msk.bf16.mxu0 %vm5206_vm3, %v5205_v5 }
 0x128   : > { %v745_v0 = vpop.f32.mrf.mxu0  ;;  %v904_v3 = vpop.f32.mrf.mxu1 }
 0x129   : > { %v6196_v15 = vadd.f32 %v904_v3, %v745_v0 }
 0x12a   : > { %v747_v48 = vpop.f32.mrf.mxu0  ;;  %v906_v63 = vpop.f32.mrf.mxu1 }
 0x12c   : > { %v1136_v18 = vpop.f32.mrf.mxu0  ;;  %v1289_v8 = vpop.f32.mrf.mxu1 }
 0x12d   : > { %v6198_v33 = vadd.f32 %v1289_v8, %v1136_v18  ;;  %v5088_v8 = vld [vmem:[%s6952_s4] sm:$0xff]  }
 0x12e   : > { %v1138_v7 = vpop.f32.mrf.mxu0  ;;  %v1291_v41 = vpop.f32.mrf.mxu1  ;;  %4745 = vmatpush3.bf16.msra.mxu1 %v5088_v8 }
 0x12f   : > { %4758 = vmatprep.subr.bf16.mxu1 %v5205_v5 }
 0x130   : > { %v1139_v53 = vpop.f32.mrf.mxu0  ;;  %v1292_v19 = vpop.f32.mrf.mxu1 }
 0x131   : > { %v6200_v50 = vadd.f32 %v1292_v19, %v1139_v53 }
 0x132   : > { %v1141_v49 = vpop.f32.mrf.mxu0  ;;  %v1294_v35 = vpop.f32.mrf.mxu1 }
 0x134   : > { %v1144_v23 = vpop.f32.mrf.mxu0  ;;  %v1297_v60 = vpop.f32.mrf.mxu1 }
 0x135   : > { %v6202_v26 = vadd.f32 %v1297_v60, %v1144_v23 }
 0x136   : > { %v1146_v32 = vpop.f32.mrf.mxu0  ;;  %v1299_v20 = vpop.f32.mrf.mxu1 }
 0x138   : > { %v1147_v10 = vpop.f32.mrf.mxu0  ;;  %v1300_v54 = vpop.f32.mrf.mxu1 }
 0x139   : > { %v6204_v22 = vadd.f32 %v1300_v54, %v1147_v10 }
 0x13a   : > { %v1149_v6 = vpop.f32.mrf.mxu0  ;;  %v1302_v13 = vpop.f32.mrf.mxu1 }
 0x13c   : > { %v1152_v43 = vpop.f32.mrf.mxu0  ;;  %v1305_v11 = vpop.f32.mrf.mxu1 }
 0x13d   : > { %v6208_v28 = vadd.f32 %v1305_v11, %v1152_v43 }
 0x13e   : > { %v1154_v42 = vpop.f32.mrf.mxu0  ;;  %v1307_v24 = vpop.f32.mrf.mxu1 }
 0x13f   : > { %v5089_v42 = vld [vmem:[%s6952_s4 + $0x10] sm:$0xff]  }
 0x140   : > { %v1155_v40 = vpop.f32.mrf.mxu0  ;;  %v1308_v38 = vpop.f32.mrf.mxu1  ;;  %4737 = vmatpush3.bf16.msra.mxu0 %v5089_v42 }
 0x141   : > { %v6210_v14 = vadd.f32 %v1308_v38, %v1155_v40  ;;  %4750 = vmatprep.subr.bf16.mxu0 %v5205_v5 }
 0x142   : > { %v1157_v16 = vpop.f32.mrf.mxu0  ;;  %v1310_v9 = vpop.f32.mrf.mxu1 }
 0x144   : > { %v1160_v25 = vpop.f32.mrf.mxu0  ;;  %v1313_v37 = vpop.f32.mrf.mxu1 }
 0x145   : > { %v6212_v58 = vadd.f32 %v1313_v37, %v1160_v25 }
 0x146   : > { %v1162_v29 = vpop.f32.mrf.mxu0  ;;  %v1315_v39 = vpop.f32.mrf.mxu1 }
 0x148   : > { %v1163_v4 = vpop.f32.mrf.mxu0  ;;  %v1316_v34 = vpop.f32.mrf.mxu1 }
 0x149   : > { %v6218_v36 = vadd.f32 %v1316_v34, %v1163_v4 }
 0x14a   : > { %v1165_v27 = vpop.f32.mrf.mxu0  ;;  %v1318_v47 = vpop.f32.mrf.mxu1 }
 0x14c   : > { %v1168_v59 = vpop.f32.mrf.mxu0  ;;  %v1321_v61 = vpop.f32.mrf.mxu1 }
 0x14d   : > { %v6223_v55 = vadd.f32 %v1321_v61, %v1168_v59 }
 0x14e   : > { %v1170_v52 = vpop.f32.mrf.mxu0  ;;  %v1323_v0 = vpop.f32.mrf.mxu1 }
 0x150   : > { %v1171_v3 = vpop.f32.mrf.mxu0  ;;  %v1324_v48 = vpop.f32.mrf.mxu1 }
 0x151   : > { %v6226_v63 = vadd.f32 %v1324_v48, %v1171_v3 }
 0x152   : > { %v1173_v18 = vpop.f32.mrf.mxu0  ;;  %v1326_v7 = vpop.f32.mrf.mxu1 }
 0x154   : > { %v1176_v41 = vpop.f32.mrf.mxu0  ;;  %v1329_v53 = vpop.f32.mrf.mxu1 }
 0x155   : > { %v6232_v19 = vadd.f32 %v1329_v53, %v1176_v41 }
 0x156   : > { %v1178_v49 = vpop.f32.mrf.mxu0  ;;  %v1331_v35 = vpop.f32.mrf.mxu1 }
 0x158   : > { %v1179_v23 = vpop.f32.mrf.mxu0  ;;  %v1332_v60 = vpop.f32.mrf.mxu1 }
 0x159   : > { %v6238_v32 = vadd.f32 %v1332_v60, %v1179_v23 }
 0x15a   : > { %v1181_v20 = vpop.f32.mrf.mxu0  ;;  %v1334_v10 = vpop.f32.mrf.mxu1 }
 0x15c   : > { %v1508_v54 = vpop.f32.mrf.mxu0  ;;  %v1657_v13 = vpop.f32.mrf.mxu1 }
 0x15d   : > { %v6241_v6 = vadd.f32 %v1508_v54, %v6146_v21  ;;  %v6244_v43 = vadd.f32 %v1657_v13, %v6198_v33 }
 0x15e   : > { %v1510_v11 = vpop.f32.mrf.mxu0  ;;  %v1659_v24 = vpop.f32.mrf.mxu1 }
 0x160   : > { %v1511_v40 = vpop.f32.mrf.mxu0  ;;  %v1660_v16 = vpop.f32.mrf.mxu1 }
 0x161   : > { %v6250_v38 = vadd.f32 %v1511_v40, %v6150_v56  ;;  %v6254_v21 = vadd.f32 %v1660_v16, %v6200_v50 }
 0x162   : > { %v1513_v9 = vpop.f32.mrf.mxu0  ;;  %v1662_v33 = vpop.f32.mrf.mxu1 }
 0x164   : > { %v1516_v25 = vpop.f32.mrf.mxu0  ;;  %v1665_v29 = vpop.f32.mrf.mxu1 }
 0x165   : > { %v6257_v37 = vadd.f32 %v1516_v25, %v6156_v31  ;;  %v6260_v44 = vadd.f32 %v1665_v29, %v6202_v26 }
 0x166   : > { %v1518_v39 = vpop.f32.mrf.mxu0  ;;  %v1667_v4 = vpop.f32.mrf.mxu1 }
 0x168   : > { %v1519_v56 = vpop.f32.mrf.mxu0  ;;  %v1668_v27 = vpop.f32.mrf.mxu1 }
 0x169   : > { %v6263_v34 = vadd.f32 %v1519_v56, %v6160_v51  ;;  %v6266_v50 = vadd.f32 %v1668_v27, %v6204_v22 }
 0x16a   : > { %v1521_v47 = vpop.f32.mrf.mxu0  ;;  %v1670_v46 = vpop.f32.mrf.mxu1 }
 0x16c   : > { %v1524_v59 = vpop.f32.mrf.mxu0  ;;  %v1673_v61 = vpop.f32.mrf.mxu1 }
 0x16d   : > { %v6269_v31 = vadd.f32 %v1524_v59, %v6166_v12  ;;  %v6272_v26 = vadd.f32 %v1673_v61, %v6208_v28 }
 0x16e   : > { %v1526_v52 = vpop.f32.mrf.mxu0  ;;  %v1675_v0 = vpop.f32.mrf.mxu1 }
 0x170   : > { %v1527_v3 = vpop.f32.mrf.mxu0  ;;  %v1676_v48 = vpop.f32.mrf.mxu1 }
 0x171   : > { %v6275_v51 = vadd.f32 %v1527_v3, %v6170_v17  ;;  %v6278_v22 = vadd.f32 %v1676_v48, %v6210_v14 }
 0x172   : > { %v1529_v18 = vpop.f32.mrf.mxu0  ;;  %v1678_v8 = vpop.f32.mrf.mxu1 }
 0x174   : > { %v1532_v7 = vpop.f32.mrf.mxu0  ;;  %v1681_v41 = vpop.f32.mrf.mxu1 }
 0x175   : > { %v6281_v12 = vadd.f32 %v1532_v7, %v6176_v57  ;;  %v6284_v28 = vadd.f32 %v1681_v41, %v6212_v58 }
 0x176   : > { %v1534_v53 = vpop.f32.mrf.mxu0  ;;  %v1683_v49 = vpop.f32.mrf.mxu1 }
 0x178   : > { %v1535_v35 = vpop.f32.mrf.mxu0  ;;  %v1684_v23 = vpop.f32.mrf.mxu1 }
 0x179   : > { %v6287_v17 = vadd.f32 %v1535_v35, %v6180_v45  ;;  %v6290_v14 = vadd.f32 %v1684_v23, %v6218_v36 }
 0x17a   : > { %v1537_v60 = vpop.f32.mrf.mxu0  ;;  %v1686_v20 = vpop.f32.mrf.mxu1 }
 0x17c   : > { %v1540_v10 = vpop.f32.mrf.mxu0  ;;  %v1689_v54 = vpop.f32.mrf.mxu1 }
 0x17d   : > { %v1563_v57 = vadd.f32 %v1540_v10, %v6186_v62  ;;  %v1712_v13 = vadd.f32 %v1689_v54, %v6223_v55 }
 0x17e   : > { %v1542_v58 = vpop.f32.mrf.mxu0  ;;  %v1691_v11 = vpop.f32.mrf.mxu1 }
 0x180   : > { %v1543_v42 = vpop.f32.mrf.mxu0  ;;  %v1692_v40 = vpop.f32.mrf.mxu1 }
 0x181   : > { %v1564_v24 = vadd.f32 %v1543_v42, %v6190_v30  ;;  %v1713_v45 = vadd.f32 %v1692_v40, %v6226_v63 }
 0x182   : > { %v1545_v16 = vpop.f32.mrf.mxu0  ;;  %v1694_v9 = vpop.f32.mrf.mxu1 }
 0x184   : > { %v1548_v36 = vpop.f32.mrf.mxu0  ;;  %v1697_v25 = vpop.f32.mrf.mxu1 }
 0x185   : > { %v1565_v33 = vadd.f32 %v1548_v36, %v6194_v2  ;;  %v1714_v29 = vadd.f32 %v1697_v25, %v6232_v19 }
 0x186   : > { %v1550_v62 = vpop.f32.mrf.mxu0  ;;  %v1699_v39 = vpop.f32.mrf.mxu1 }
 0x188   : > { %v1551_v4 = vpop.f32.mrf.mxu0  ;;  %v1700_v56 = vpop.f32.mrf.mxu1 }
 0x189   : > { %v1566_v55 = vadd.f32 %v1551_v4, %v6196_v15  ;;  %v1715_v27 = vadd.f32 %v1700_v56, %v6238_v32 }
 0x18a   : > { %v1553_v30 = vpop.f32.mrf.mxu0  ;;  %v1702_v47 = vpop.f32.mrf.mxu1 }
 0x18c   : > { %v1830_v46 = vpop.f32.mrf.mxu0  ;;  %v1923_v63 = vpop.f32.mrf.mxu1 }
 0x18e   : > { %v1832_v59 = vpop.f32.mrf.mxu0  ;;  %v1925_v61 = vpop.f32.mrf.mxu1 }
 0x190   : > { %v1833_v52 = vpop.f32.mrf.mxu0  ;;  %v1926_v0 = vpop.f32.mrf.mxu1 }
 0x192   : > { %v1835_v2 = vpop.f32.mrf.mxu0  ;;  %v1928_v3 = vpop.f32.mrf.mxu1 }
 0x194   : > { %v6300_v48 = vpop.f32.mrf.mxu0  ;;  %v6302_v19 = vpop.f32.mrf.mxu1 }
 0x196   : > { %v1840_v18 = vpop.f32.mrf.mxu0  ;;  %v1933_v8 = vpop.f32.mrf.mxu1 }
 0x198   : > { %v6304_v15 = vpop.f32.mrf.mxu0  ;;  %v6306_v7 = vpop.f32.mrf.mxu1 }
 0x19a   : > { %v1843_v32 = vpop.f32.mrf.mxu0  ;;  %v1936_v41 = vpop.f32.mrf.mxu1 }
 0x19c   : > { %v6308_v53 = vpop.f32.mrf.mxu0  ;;  %v6310_v49 = vpop.f32.mrf.mxu1 }
 0x19e   : > { %v1848_v35 = vpop.f32.mrf.mxu0  ;;  %v1941_v23 = vpop.f32.mrf.mxu1 }
 0x1a0   : > { %v6312_v60 = vpop.f32.mrf.mxu0  ;;  %v6314_v20 = vpop.f32.mrf.mxu1 }
 0x1a2   : > { %v1851_v10 = vpop.f32.mrf.mxu0  ;;  %v1944_v54 = vpop.f32.mrf.mxu1 }
 0x1a4   : > { %v6316_v58 = vpop.f32.mrf.mxu0  ;;  %v6318_v11 = vpop.f32.mrf.mxu1 }
 0x1a6   : > { %v1856_v42 = vpop.f32.mrf.mxu0  ;;  %v1949_v40 = vpop.f32.mrf.mxu1 }
 0x1a8   : > { %v6320_v16 = vpop.f32.mrf.mxu0  ;;  %v6322_v9 = vpop.f32.mrf.mxu1 }
 0x1aa   : > { %v1859_v36 = vpop.f32.mrf.mxu0  ;;  %v1952_v25 = vpop.f32.mrf.mxu1 }
 0x1ab   : > { %v1970_v25 = vadd.f32 %v1923_v63, %v6244_v43 }
 0x1ac   : > { %v1862_v62 = vpop.f32.mrf.mxu0  ;;  %v1955_v4 = vpop.f32.mrf.mxu1 }
 0x1ad   : > { %v6324_v39 = vadd.f32 %v1862_v62, %v1563_v57  ;;  %v6326_v56 = vadd.f32 %v1955_v4, %v1712_v13 }
 0x1ae   : > { %v1864_v30 = vpop.f32.mrf.mxu0  ;;  %v1957_v47 = vpop.f32.mrf.mxu1 }
 0x1af   : > { %v1878_v47 = vadd.f32 %v1833_v52, %v6250_v38  ;;  %v1972_v52 = vadd.f32 %v6302_v19, %v6260_v44 }
 0x1b0   : > { %v1865_v59 = vpop.f32.mrf.mxu0  ;;  %v1958_v2 = vpop.f32.mrf.mxu1 }
 0x1b1   : > { %v6328_v61 = vadd.f32 %v1865_v59, %v1564_v24  ;;  %v6330_v3 = vadd.f32 %v1958_v2, %v1713_v45  ;;  %v1877_v45 = vadd.f32 %v1830_v46, %v6241_v6  ;;  %v1971_v6 = vadd.f32 %v1926_v0, %v6254_v21 }
 0x1b2   : > { %v1867_v18 = vpop.f32.mrf.mxu0  ;;  %v1960_v8 = vpop.f32.mrf.mxu1 }
 0x1b4   : > { %v1870_v32 = vpop.f32.mrf.mxu0  ;;  %v1963_v35 = vpop.f32.mrf.mxu1 }
 0x1b5   : > { %v6332_v41 = vadd.f32 %v1870_v32, %v1565_v33  ;;  %v6334_v23 = vadd.f32 %v1963_v35, %v1714_v29  ;;  %v6345_v33 = vld [vmem:[%s6951_s3] ss:$0 sm:$0xff] }
 0x1b6   : > { %v1872_v57 = vpop.f32.mrf.mxu0  ;;  %v1965_v10 = vpop.f32.mrf.mxu1 }
 0x1b7   : > { %v1879_v57 = vadd.f32 %v6300_v48, %v6257_v37 }
 0x1b8   : > { %v1873_v13 = vpop.f32.mrf.mxu0  ;;  %v1966_v42 = vpop.f32.mrf.mxu1 }
 0x1b9   : > { %v6336_v54 = vadd.f32 %v1873_v13, %v1566_v55  ;;  %v6338_v40 = vadd.f32 %v1966_v42, %v1715_v27 }
 0x1ba   : > { %v1875_v24 = vpop.f32.mrf.mxu0  ;;  %v1968_v36 = vpop.f32.mrf.mxu1 }
 0x1bc   : > { %v2097_v62 = vpop.f32.mrf.mxu0  ;;  %v2190_v4 = vpop.f32.mrf.mxu1 }
 0x1bd   : > { %v2144_v29 = vadd.f32 %v2097_v62, %v1877_v45  ;;  %v2237_v30 = vadd.f32 %v2190_v4, %v1970_v25  ;;  %v1973_v4 = vadd.f32 %v6306_v7, %v6266_v50 }
 0x1be   : > { %v2099_v55 = vpop.f32.mrf.mxu0  ;;  %v2192_v59 = vpop.f32.mrf.mxu1 }
 0x1bf   : > { %v2256_v27 = vadd.f32 %v6345_v33, %v2144_v29  ;;  %v2280_v46 = vadd.f32 %v6345_v33, %v2237_v30  ;;  %v1880_v29 = vadd.f32 %v6304_v15, %v6263_v34  ;;  %v1881_v15 = vadd.f32 %v6308_v53, %v6269_v31 }
 0x1c0   : > { %v2100_v43 = vpop.f32.mrf.mxu0  ;;  %v2193_v18 = vpop.f32.mrf.mxu1  ;;  %v1882_v31 = vadd.f32 %v6312_v60, %v6275_v51  ;;  %v1883_v60 = vadd.f32 %v6316_v58, %v6281_v12 }
 0x1c1   : > { %v2268_v63 = vmax.f32 %v2256_v27, 0.0  ;;  %v2145_v2 = vadd.f32 %v2100_v43, %v1878_v47  ;;  %v2292_v8 = vmax.f32 %v2280_v46, 0.0  ;;  %v2238_v32 = vadd.f32 %v2193_v18, %v1971_v6 }
 0x1c2   : > { %v2102_v35 = vpop.f32.mrf.mxu0  ;;  %v2195_v38 = vpop.f32.mrf.mxu1 }
 0x1c3   : > { %v2257_v10 = vadd.f32 %v6345_v33, %v2145_v2  ;;  %v2304_v13 = vmax.f32 %v2268_v63, %v2292_v8  ;;  %v2281_v21 = vadd.f32 %v6345_v33, %v2238_v32  ;;  %v1974_v2 = vadd.f32 %v6310_v49, %v6272_v26 }
 0x1c4   : > { %v2105_v0 = vpop.f32.mrf.mxu0  ;;  %v2198_v45 = vpop.f32.mrf.mxu1 }
 0x1c5   : > { %v2269_v42 = vmax.f32 %v2257_v10, 0.0  ;;  %v2146_v24 = vadd.f32 %v2105_v0, %v1879_v57  ;;  %v2293_v36 = vmax.f32 %v2281_v21, 0.0  ;;  %v2239_v25 = vadd.f32 %v2198_v45, %v1972_v52 }
 0x1c6   : > { %v2107_v62 = vpop.f32.mrf.mxu0  ;;  %v2200_v48 = vpop.f32.mrf.mxu1  ;;  %v2316_v59 = vsel %vm649_vm0, %v2304_v13, -inf  ;;  %v1975_v0 = vadd.f32 %v6314_v20, %v6278_v22 }
 0x1c7   : > { %v2258_v37 = vadd.f32 %v6345_v33, %v2146_v24  ;;  %v2305_v44 = vmax.f32 %v2269_v42, %v2293_v36  ;;  %v2282_v19 = vadd.f32 %v6345_v33, %v2239_v25 }
 0x1c8   : > { %v2108_v30 = vpop.f32.mrf.mxu0  ;;  %v2201_v27 = vpop.f32.mrf.mxu1 }
 0x1c9   : > { %v2270_v55 = vmax.f32 %v2258_v37, 0.0  ;;  %v2147_v47 = vadd.f32 %v2108_v30, %v1880_v29  ;;  %v2317_v6 = vsel %vm649_vm0, %v2305_v44, -inf  ;;  %v2294_v46 = vmax.f32 %v2282_v19, 0.0 }
 0x1ca   : > { %v2240_v43 = vadd.f32 %v2201_v27, %v1973_v4  ;;  %v2110_v34 = vpop.f32.mrf.mxu0  ;;  %v2318_v63 = vmax.f32 %v2316_v59, %v2317_v6  ;;  %v2203_v7 = vpop.f32.mrf.mxu1  ;;  %v1976_v4 = vadd.f32 %v6318_v11, %v6284_v28 }
 0x1cb   : > { %v2259_v50 = vadd.f32 %v6345_v33, %v2147_v47  ;;  %v2306_v18 = vmax.f32 %v2270_v55, %v2294_v46  ;;  %v5090_v55 = vld [vmem:[%s6952_s4 + $0x38] sm:$0xff]   ;;  %v1977_v34 = vadd.f32 %v6322_v9, %v6290_v14  ;;  %v5091_v7 = vld [vmem:[%s6952_s4 + $0x30] sm:$0xff]  }
 0x1cc   : > { %v2283_v8 = vadd.f32 %v6345_v33, %v2240_v43  ;;  %v2113_v32 = vpop.f32.mrf.mxu0  ;;  %v2206_v10 = vpop.f32.mrf.mxu1  ;;  %v1884_v43 = vadd.f32 %v6320_v16, %v6287_v17 }
 0x1cd   : > { %v2271_v35 = vmax.f32 %v2259_v50, 0.0  ;;  %v2148_v57 = vadd.f32 %v2113_v32, %v1881_v15  ;;  %v2241_v52 = vadd.f32 %v2206_v10, %v1974_v2  ;;  %v2319_v25 = vsel %vm649_vm0, %v2306_v18, -inf }
 0x1ce   : > { %v2295_v38 = vmax.f32 %v2283_v8, 0.0  ;;  %v2115_v13 = vpop.f32.mrf.mxu0  ;;  %v2208_v21 = vpop.f32.mrf.mxu1 }
 0x1cf   : > { %v2260_v53 = vadd.f32 %v6345_v33, %v2148_v57  ;;  %v2284_v49 = vadd.f32 %v6345_v33, %v2241_v52 }
 0x1d0   : > { %v2307_v26 = vmax.f32 %v2271_v35, %v2295_v38  ;;  %v2116_v42 = vpop.f32.mrf.mxu0  ;;  %v2209_v36 = vpop.f32.mrf.mxu1 }
 0x1d1   : > { %v2272_v24 = vmax.f32 %v2260_v53, 0.0  ;;  %v2149_v45 = vadd.f32 %v2116_v42, %v1882_v31  ;;  %v2296_v29 = vmax.f32 %v2284_v49, 0.0  ;;  %v2242_v37 = vadd.f32 %v2209_v36, %v1975_v0 }
 0x1d2   : > { %v2320_v62 = vsel %vm649_vm0, %v2307_v26, -inf  ;;  %v2118_v51 = vpop.f32.mrf.mxu0  ;;  %v2211_v20 = vpop.f32.mrf.mxu1 }
 0x1d3   : > { %v2321_v48 = vmax.f32 %v2319_v25, %v2320_v62  ;;  %v2261_v22 = vadd.f32 %v6345_v33, %v2149_v45  ;;  %v2308_v44 = vmax.f32 %v2272_v24, %v2296_v29  ;;  %v2285_v19 = vadd.f32 %v6345_v33, %v2242_v37 }
 0x1d4   : > { %v2121_v30 = vpop.f32.mrf.mxu0  ;;  %v2214_v12 = vpop.f32.mrf.mxu1 }
 0x1d5   : > { %v6388_v47 = vpack.c.bf16 %v2321_v48, %v2318_v63  ;;  %v2273_v27 = vmax.f32 %v2261_v22, 0.0  ;;  %v2150_v59 = vadd.f32 %v2121_v30, %v1883_v60  ;;  %v2297_v58 = vmax.f32 %v2285_v19, 0.0 }
 0x1d6   : > { %v2243_v6 = vadd.f32 %v2214_v12, %v1976_v4  ;;  %v2123_v46 = vpop.f32.mrf.mxu0  ;;  %v2216_v11 = vpop.f32.mrf.mxu1  ;;  %v2322_v14 = vsel %vm649_vm0, %v2308_v44, -inf }
 0x1d7   : > { %v2262_v28 = vadd.f32 %v6345_v33, %v2150_v59  ;;  %4747 = vmatmul.mubr.msk.bf16.vlgmr.msra.gmra.mxu1 %vm649_vm0, %v6388_v47  ;;  %v2309_v15 = vmax.f32 %v2273_v27, %v2297_v58  ;;  %v6405_v18 = vshll.u32 %v6388_v47, 16  ;;  %v6411_v52 = vshrl.u32 %v6388_v47, 16 }
 0x1d8   : > { %v2286_v63 = vadd.f32 %v6345_v33, %v2243_v6  ;;  %v2124_v50 = vpop.f32.mrf.mxu0  ;;  %4759 = vmatpush3.bf16.msra.mxu1 %v5090_v55  ;;  %4762 = vmatprep.mubr.msk.bf16.mxu1 %vm5206_vm3, %v5205_v5  ;;  %v2217_v2 = vpop.f32.mrf.mxu1  ;;  %v2477_v60 = vrot.slane %v6388_v47, 1  ;;  %v2684_v48 = vrot.slane %v6388_v47, 4  ;;  %v2617_v44 = vrot.slane %v6388_v47, 2 }
 0x1d9   : > { %v2274_v17 = vmax.f32 %v2262_v28, 0.0  ;;  %v2151_v16 = vadd.f32 %v2124_v50, %v1884_v43  ;;  %4760 = vmatprep.subr.bf16.mxu1 %v5205_v5  ;;  %v2323_v9 = vsel %vm649_vm0, %v2309_v15, -inf  ;;  %v2244_v32 = vadd.f32 %v2217_v2, %v1977_v34 }
 0x1da   : > { %v2298_v8 = vmax.f32 %v2286_v63, 0.0  ;;  %v2126_v35 = vpop.f32.mrf.mxu0  ;;  %v2324_v57 = vmax.f32 %v2322_v14, %v2323_v9  ;;  %v2219_v38 = vpop.f32.mrf.mxu1  ;;  %v2352_v49 = vrot.slane %v6405_v18, 1  ;;  %v2544_v62 = vrot.slane %v6411_v52, 1 }
 0x1db   : > { %v2263_v10 = vadd.f32 %v6345_v33, %v2151_v16  ;;  %v2287_v31 = vadd.f32 %v6345_v33, %v2244_v32  ;;  %v2545_v29 = vrot.slane %v6405_v18, 2  ;;  %v2822_v46 = vrot.slane %v6388_v47, 5 }
 0x1dc   : > { %v2310_v13 = vmax.f32 %v2274_v17, %v2298_v8  ;;  %v2129_v53 = vpop.f32.mrf.mxu0  ;;  %4761 = vmatpush3.bf16.msra.mxu1 %v5091_v7  ;;  %v2222_v26 = vpop.f32.mrf.mxu1  ;;  %v2353_v4 = vor.u32 %v2352_v49, %v6411_v52  ;;  %v2751_v34 = vrot.slane %v6411_v52, 4  ;;  %v2752_v15 = vrot.slane %v6405_v18, 5 }
 0x1dd   : > { %v2275_v21 = vmax.f32 %v2263_v10, 0.0  ;;  %v2152_v0 = vadd.f32 %v2129_v53, %v6324_v39  ;;  %4774 = vmatprep.subr.bf16.mxu1 %v5205_v5  ;;  %v2299_v42 = vmax.f32 %v2287_v31, 0.0  ;;  %v2245_v24 = vadd.f32 %v2222_v26, %v6326_v56 }
 0x1de   : > { %v2131_v45 = vpop.f32.mrf.mxu0  ;;  %v2224_v25 = vpop.f32.mrf.mxu1  ;;  %v2325_v19 = vsel %vm649_vm0, %v2310_v13, -inf  ;;  %v2889_v17 = vrot.slane %v6411_v52, 5  ;;  %v2890_v8 = vrot.slane %v6405_v18, 6  ;;  %v3886_v52 = vrot.slane %v5204_v1, 2 }
 0x1df   : > { %v2264_v36 = vadd.f32 %v6345_v33, %v2152_v0  ;;  %v2311_v37 = vmax.f32 %v2275_v21, %v2299_v42  ;;  %v2288_v51 = vadd.f32 %v6345_v33, %v2245_v24  ;;  %v5092_v42 = vld [vmem:[%s6952_s4 + $0x28] sm:$0xff]  }
 0x1e0   : > { %v2132_v39 = vpop.f32.mrf.mxu0  ;;  %v2225_v56 = vpop.f32.mrf.mxu1 }
 0x1e1   : > { %v2276_v22 = vmax.f32 %v2264_v36, 0.0  ;;  %v2153_v20 = vadd.f32 %v2132_v39, %v6328_v61  ;;  %v2326_v30 = vsel %vm649_vm0, %v2311_v37, -inf  ;;  %v2300_v55 = vmax.f32 %v2288_v51, 0.0 }
 0x1e2   : > { %v2246_v27 = vadd.f32 %v2225_v56, %v6330_v3  ;;  %v2134_v59 = vpop.f32.mrf.mxu0  ;;  %v2327_v12 = vmax.f32 %v2325_v19, %v2326_v30  ;;  %v2227_v6 = vpop.f32.mrf.mxu1  ;;  %v2546_v61 = vor.u32 %v2545_v29, %v2544_v62  ;;  %v5093_v19 = vld [vmem:[%s6952_s4 + $0x58] sm:$0xff]  }
 0x1e3   : > { %v2265_v58 = vadd.f32 %v6345_v33, %v2153_v20  ;;  %v2312_v43 = vmax.f32 %v2276_v22, %v2300_v55 }
 0x1e4   : > { %v2289_v28 = vadd.f32 %v6345_v33, %v2246_v27  ;;  %v2137_v11 = vpop.f32.mrf.mxu0  ;;  %v6435_v3 = vpack.c.bf16 %v2327_v12, %v2324_v57  ;;  %v2230_v7 = vpop.f32.mrf.mxu1 }
 0x1e5   : > { %v2277_v63 = vmax.f32 %v2265_v58, 0.0  ;;  %v2154_v50 = vadd.f32 %v2137_v11, %v6332_v41  ;;  %v6440_v16 = vsel %vm649_vm0, %v2312_v43, -inf  ;;  %v2247_v14 = vadd.f32 %v2230_v7, %v6334_v23  ;;  %v5095_v11 = vld [vmem:[%s6952_s4 + $0x50] sm:$0xff]  }
 0x1e6   : > { %v2301_v2 = vmax.f32 %v2289_v28, 0.0  ;;  %v2139_v9 = vpop.f32.mrf.mxu0  ;;  %v2232_v35 = vpop.f32.mrf.mxu1  ;;  %v6446_v57 = vshll.u32 %v6435_v3, 16  ;;  %v6449_v41 = vshrl.u32 %v6435_v3, 16  ;;  %v2478_v10 = vrot.slane %v6435_v3, 1 }
 0x1e7   : > { %v2266_v32 = vadd.f32 %v6345_v33, %v2154_v50  ;;  %v2290_v13 = vadd.f32 %v6345_v33, %v2247_v14  ;;  %v2685_v31 = vrot.slane %v6435_v3, 4  ;;  %v2618_v53 = vrot.slane %v6435_v3, 2 }
 0x1e8   : > { %v2313_v38 = vmax.f32 %v2277_v63, %v2301_v2  ;;  %v2140_v23 = vpop.f32.mrf.mxu0  ;;  %v2233_v26 = vpop.f32.mrf.mxu1  ;;  %v2357_v49 = vrot.slane %v6446_v57, 1  ;;  %v2549_v24 = vrot.slane %v6449_v41, 1  ;;  %v2550_v62 = vrot.slane %v6446_v57, 2  ;;  %v5096_v63 = vld [vmem:[%s6952_s4 + $0x48] sm:$0xff]  }
 0x1e9   : > { %v2278_v21 = vmax.f32 %v2266_v32, 0.0  ;;  %v2155_v0 = vadd.f32 %v2140_v23, %v6336_v54  ;;  %v2302_v36 = vmax.f32 %v2290_v13, 0.0  ;;  %v2248_v25 = vadd.f32 %v2233_v26, %v6338_v40  ;;  %v5099_v26 = vld [vmem:[%s6952_s4 + $0x70] sm:$0xff]  }
 0x1ea   : > { %v2329_v45 = vsel %vm649_vm0, %v2313_v38, -inf  ;;  %v2142_v29 = vpop.f32.mrf.mxu0  ;;  %v2358_v51 = vsel %vm478_vm1, %v2353_v4, %v2357_v49  ;;  %v2479_v39 = vsel %vm1363_vm2, %v2477_v60, %v2478_v10  ;;  %v2235_v22 = vpop.f32.mrf.mxu1  ;;  %v6476_v56 = vor.u32 %v2550_v62, %v2549_v24 }
 0x1eb   : > { %v2330_v37 = vmax.f32 %v6440_v16, %v2329_v45  ;;  %v2267_v54 = vadd.f32 %v6345_v33, %v2155_v0  ;;  %v2314_v20 = vmax.f32 %v2278_v21, %v2302_v36  ;;  %v2291_v40 = vadd.f32 %v6345_v33, %v2248_v25  ;;  %4739 = vmatmul.mubr.msk.bf16.vlgmr.msra.gmra.mxu0 %vm649_vm0, %v2358_v51  ;;  %v5094_v33 = vld [vmem:[%s6952_s4 + $0x20] sm:$0xff]   ;;  %v5100_v25 = vld [vmem:[%s6952_s4 + $0x68] sm:$0xff]  }
 0x1ec   : > { %v2686_v4 = vsel %vm2683_vm4, %v2684_v48, %v2685_v31  ;;  %4751 = vmatpush3.bf16.msra.mxu0 %v5092_v42  ;;  %4754 = vmatprep.mubr.msk.bf16.mxu0 %vm5206_vm3, %v5205_v5  ;;  %v6496_v60 = vsel %vm2616_vm5, %v2617_v44, %v2618_v53  ;;  %v2823_v55 = vrot.slane %v6435_v3, 5  ;;  %v2754_v48 = vrot.slane %v6449_v41, 4 }
 0x1ed   : > { %v2279_v30 = vmax.f32 %v2267_v54, 0.0  ;;  %v2303_v27 = vmax.f32 %v2291_v40, 0.0  ;;  %v2552_v59 = vsel %vm2543_vm6, %v2546_v61, %v6476_v56  ;;  %4752 = vmatprep.subr.bf16.mxu0 %v5205_v5  ;;  %v2755_v12 = vrot.slane %v6446_v57, 5 }
 0x1ee   : > { %v2960_v58 = vrot.slane %v6388_v47, 6  ;;  %4763 = vmatmul.mubr.msk.bf16.vlgmr.msra.gmra.mxu1 %vm649_vm0, %v2552_v59  ;;  %v6511_v44 = vsel %vm2821_vm7, %v2822_v46, %v2823_v55  ;;  %v2961_v6 = vrot.slane %v6435_v3, 6  ;;  %v2892_v43 = vrot.slane %v6449_v41, 5  ;;  %v5104_v59 = vld [vmem:[%s6952_s4 + $0x88] sm:$0xff]  }
 0x1ef   : > { %v2893_v61 = vrot.slane %v6446_v57, 6  ;;  %v2315_v28 = vmax.f32 %v2279_v30, %v2303_v27  ;;  %4775 = vmatpush3.bf16.msra.mxu1 %v5093_v19  ;;  %4778 = vmatprep.mubr.msk.bf16.mxu1 %vm5206_vm3, %v5205_v5  ;;  %v2753_v47 = vor.u32 %v2752_v15, %v2751_v34  ;;  %v6525_v46 = vor.u32 %v2755_v12, %v2754_v48  ;;  %v5102_v19 = vld [vmem:[%s6952_s4 + $0x60] sm:$0xff]   ;;  %v5105_v12 = vld [vmem:[%s6952_s4 + $0xb8] sm:$0xff]  }
 0x1f0   : > { %4753 = vmatpush3.bf16.msra.mxu0 %v5094_v33  ;;  %4776 = vmatprep.subr.bf16.mxu1 %v5205_v5  ;;  %v6534_v50 = vsel %vm2959_vm8, %v2960_v58, %v2961_v6  ;;  %v2891_v34 = vor.u32 %v2890_v8, %v2889_v17  ;;  %v6543_v7 = vrot.slane %v5204_v1, 1  ;;  %v2331_v16 = vsel %vm649_vm0, %v2314_v20, -inf  ;;  %v5097_v17 = vld [vmem:[%s6952_s4 + $0x78] sm:$0xff]   ;;  %v5098_v1 = vld [vmem:[%s6952_s4 + $0x40] sm:$0xff]  }
 0x1f1   : > { %v6540_v15 = vor.u32 %v2893_v61, %v2892_v43  ;;  %v2332_v2 = vsel %vm649_vm0, %v2315_v28, -inf  ;;  %4766 = vmatprep.subr.bf16.mxu0 %v5205_v5  ;;  %v6550_v14 = vsel %vm2750_vm9, %v2753_v47, %v6525_v46  ;;  %v5207_v35 = vmov 0.0|0.0   ;;  %v5106_v58 = vld [vmem:[%s6952_s4 + $0x80] sm:$0xff]   ;;  %v5109_v43 = vld [vmem:[%s6952_s4 + $0xd8] sm:$0xff]   ;;  %v5111_v28 = vld [vmem:[%s6952_s4 + $0xd0] sm:$0xff]  }
 0x1f2   : > { %v2333_v9 = vmax.f32 %v2331_v16, %v2332_v2  ;;  %v3887_v32 = vor.u32 %v3886_v52, %v6543_v7  ;;  %v3952_v38 = vrot.slane %v5207_v35, 2  ;;  %v3088_v42 = vor.u32 %v6449_v41, %v2357_v49  ;;  %v5110_v61 = vld [vmem:[%s6952_s4 + $0xa0] sm:$0xff]   ;;  %v5113_v47 = vld [vmem:[%s6952_s4 + $0xf8] sm:$0xff]   ;;  %v5120_v16 = vld [vmem:[%s6952_s4 + $0x108] sm:$0xff]  }
 0x1f3   : > { %v6555_v18 = vsel %vm2888_vm10, %v2891_v34, %v6540_v15  ;;  %4777 = vmatpush3.bf16.msra.mxu1 %v5095_v11  ;;  %4755 = vmatmul.mubr.msk.bf16.vlgmr.msra.gmra.mxu0 %vm649_vm0, %v2479_v39  ;;  %v5112_v11 = vld [vmem:[%s6952_s4 + $0xc8] sm:$0xff]   ;;  %v5118_v34 = vld [vmem:[%s6952_s4 + $0xe0] sm:$0xff]   ;;  %v5121_v2 = vld [vmem:[%s6952_s4 + $0x138] sm:$0xff]  }
 0x1f4   : > { %v6561_v8 = vpack.c.bf16 %v2333_v9, %v2330_v37  ;;  %4767 = vmatpush3.bf16.msra.mxu0 %v5096_v63  ;;  %4790 = vmatprep.subr.bf16.mxu1 %v5205_v5  ;;  %v5116_v63 = vld [vmem:[%s6952_s4 + $0xe8] sm:$0xff]   ;;  %v5123_v52 = vld [vmem:[%s6952_s4 + $0x130] sm:$0xff]  }
 0x1f5   : > { %4768 = vmatprep.subr.bf16.mxu0 %v5205_v5  ;;  %4770 = vmatprep.mubr.msk.bf16.mxu0 %vm5206_vm3, %v5205_v5  ;;  %v5124_v9 = vld [vmem:[%s6952_s4 + $0x128] sm:$0xff]  }
 0x1f6   : > { %4779 = vmatmul.mubr.msk.bf16.vlgmr.msra.gmra.mxu1 %vm649_vm0, %v2686_v4  ;;  %v6574_v13 = vshll.u32 %v6561_v8, 16  ;;  %v6577_v23 = vshrl.u32 %v6561_v8, 16  ;;  %v3158_v21 = vrot.slane %v6561_v8, 1  ;;  %v3357_v0 = vrot.slane %v6561_v8, 4 }
 0x1f7   : > { %4791 = vmatpush3.bf16.msra.mxu1 %v5097_v17  ;;  %4794 = vmatprep.mubr.msk.bf16.mxu1 %vm5206_vm3, %v5205_v5  ;;  %v3292_v24 = vrot.slane %v6561_v8, 2  ;;  %v3489_v45 = vrot.slane %v6561_v8, 5  ;;  %v3621_v36 = vrot.slane %v6561_v8, 6  ;;  %v5126_v17 = vld [vmem:[%s6952_s4 + $0x120] sm:$0xff]  }
 0x1f8   : > { %4769 = vmatpush3.bf16.msra.mxu0 %v5098_v1  ;;  %4792 = vmatprep.subr.bf16.mxu1 %v5205_v5  ;;  %v3092_v62 = vrot.slane %v6574_v13, 1  ;;  %v3225_v29 = vrot.slane %v6577_v23, 1  ;;  %v3226_v57 = vrot.slane %v6574_v13, 2  ;;  %v6604_v41 = vsel %vm1363_vm2, %v2478_v10, %v3158_v21  ;;  %v5127_v1 = vld [vmem:[%s6952_s4 + $0x150] sm:$0xff]  }
 0x1f9   : > { %4782 = vmatprep.subr.bf16.mxu0 %v5205_v5  ;;  %v6610_v49 = vsel %vm2683_vm4, %v2685_v31, %v3357_v0  ;;  %v6615_v37 = vsel %vm2616_vm5, %v2618_v53, %v3292_v24  ;;  %v6620_v54 = vsel %vm2821_vm7, %v2823_v55, %v3489_v45  ;;  %v3422_v10 = vrot.slane %v6577_v23, 4  ;;  %v5101_v53 = vld [vmem:[%s6952_s4 + $0x98] sm:$0xff]   ;;  %v5134_v45 = vld [vmem:[%s6952_s4 + $0x188] sm:$0xff]  }
 0x1fa   : > { %v3093_v51 = vsel %vm478_vm1, %v3088_v42, %v3092_v62  ;;  %v3227_v39 = vor.u32 %v3226_v57, %v3225_v29  ;;  %v3423_v31 = vrot.slane %v6574_v13, 5  ;;  %v6630_v22 = vsel %vm2959_vm8, %v2961_v6, %v3621_v36  ;;  %v5108_v6 = vld [vmem:[%s6952_s4 + $0xa8] sm:$0xff]   ;;  %v5129_v0 = vld [vmem:[%s6952_s4 + $0x178] sm:$0xff]   ;;  %v5133_v42 = vld [vmem:[%s6952_s4 + $0x160] sm:$0xff]  }
 0x1fb   : > { %4793 = vmatpush3.bf16.msra.mxu1 %v5099_v26  ;;  %4771 = vmatmul.mubr.msk.bf16.vlgmr.msra.gmra.mxu0 %vm649_vm0, %v6496_v60  ;;  %v3554_v20 = vrot.slane %v6577_v23, 5  ;;  %v3555_v40 = vrot.slane %v6574_v13, 6  ;;  %v6652_v55 = vsel %vm2616_vm5, %v3292_v24, %v3952_v38  ;;  %v3748_v38 = vor.u32 %v6577_v23, %v3092_v62  ;;  %v5130_v26 = vld [vmem:[%s6952_s4 + $0x140] sm:$0xff]   ;;  %v5131_v23 = vld [vmem:[%s6952_s4 + $0x170] sm:$0xff]   ;;  %v5136_v29 = vld [vmem:[%s6954_s6 + $0x8] sm:$0xff]  }
 0x1fc   : > { %4783 = vmatpush3.bf16.msra.mxu0 %v5100_v25  ;;  %4806 = vmatprep.subr.bf16.mxu1 %v5205_v5  ;;  %v3228_v4 = vsel %vm2543_vm6, %v6476_v56, %v3227_v39  ;;  %v3424_v30 = vor.u32 %v3423_v31, %v3422_v10  ;;  %v6646_v33 = vsel %vm2543_vm6, %v3227_v39, %v3887_v32  ;;  %v5103_v56 = vld [vmem:[%s6952_s4 + $0x90] sm:$0xff]   ;;  %v5128_v32 = vld [vmem:[%s6952_s4 + $0x148] sm:$0xff]   ;;  %v3818_v24 = vrot.slane %v5207_v35, 1  ;;  %v5135_v35 = vld [vmem:[%s6952_s4 + $0x180] sm:$0xff]  }
 0x1fd   : > { %4784 = vmatprep.subr.bf16.mxu0 %v5205_v5  ;;  %4786 = vmatprep.mubr.msk.bf16.mxu0 %vm5206_vm3, %v5205_v5  ;;  %v3556_v60 = vor.u32 %v3555_v40, %v3554_v20  ;;  %v3753_v13 = vsel %vm478_vm1, %v3748_v38, %v6543_v7  ;;  %v5132_v7 = vld [vmem:[%s6952_s4 + $0x168] sm:$0xff]   ;;  %v5137_v57 = vld [vmem:[%s6954_s6] sm:$0xff]  }
 0x1fe   : > { %4795 = vmatmul.mubr.msk.bf16.vlgmr.msra.gmra.mxu1 %vm649_vm0, %v6511_v44  ;;  %v6658_v48 = vsel %vm2750_vm9, %v6525_v46, %v3424_v30  ;;  %v5107_v44 = vld [vmem:[%s6952_s4 + $0xb0] sm:$0xff]   ;;  %v5114_v46 = vld [vmem:[%s6952_s4 + $0xc0] sm:$0xff]   ;;  %v3819_v36 = vsel %vm1363_vm2, %v3158_v21, %v3818_v24 }
 0x1ff   : > { %4807 = vmatpush3.bf16.msra.mxu1 %v5101_v53  ;;  %4810 = vmatprep.mubr.msk.bf16.mxu1 %vm5206_vm3, %v5205_v5  ;;  %v6667_v27 = vsel %vm2888_vm10, %v6540_v15, %v3556_v60  ;;  %v5119_v15 = vld [vmem:[%s6952_s4 + $0x110] sm:$0xff]  }
 0x200   : > { %4785 = vmatpush3.bf16.msra.mxu0 %v5102_v19  ;;  %4808 = vmatprep.subr.bf16.mxu1 %v5205_v5 }
 0x201   : > { %4798 = vmatprep.subr.bf16.mxu0 %v5205_v5 }
 0x203   : > { %4809 = vmatpush3.bf16.msra.mxu1 %v5103_v56  ;;  %4787 = vmatmul.mubr.msk.bf16.vlgmr.msra.gmra.mxu0 %vm649_vm0, %v6550_v14  ;;  %v5122_v14 = vld [vmem:[%s6952_s4 + $0x100] sm:$0xff]  }
 0x204   : > { %4799 = vmatpush3.bf16.msra.mxu0 %v5104_v59  ;;  %4822 = vmatprep.subr.bf16.mxu1 %v5205_v5 }
 0x205   : > { %4800 = vmatprep.subr.bf16.mxu0 %v5205_v5  ;;  %4802 = vmatprep.mubr.msk.bf16.mxu0 %vm5206_vm3, %v5205_v5 }
 0x206   : > { %4811 = vmatmul.mubr.msk.bf16.vlgmr.msra.gmra.mxu1 %vm649_vm0, %v6534_v50  ;;  %v5117_v50 = vld [vmem:[%s6952_s4 + $0x118] sm:$0xff]  }
 0x207   : > { %4823 = vmatpush3.bf16.msra.mxu1 %v5105_v12  ;;  %4826 = vmatprep.mubr.msk.bf16.mxu1 %vm5206_vm3, %v5205_v5 }
 0x208   : > { %4801 = vmatpush3.bf16.msra.mxu0 %v5106_v58  ;;  %4824 = vmatprep.subr.bf16.mxu1 %v5205_v5 }
 0x209   : > { %4814 = vmatprep.subr.bf16.mxu0 %v5205_v5 }
 0x20b   : > { %4825 = vmatpush3.bf16.msra.mxu1 %v5107_v44  ;;  %4803 = vmatmul.mubr.msk.bf16.vlgmr.msra.gmra.mxu0 %vm649_vm0, %v6555_v18  ;;  %v5125_v18 = vld [vmem:[%s6952_s4 + $0x158] sm:$0xff]  }
 0x20c   : > { %4815 = vmatpush3.bf16.msra.mxu0 %v5108_v6  ;;  %4838 = vmatprep.subr.bf16.mxu1 %v5205_v5 }
 0x20d   : > { %4816 = vmatprep.subr.bf16.mxu0 %v5205_v5  ;;  %4818 = vmatprep.mubr.msk.bf16.mxu0 %vm5206_vm3, %v5205_v5 }
 0x20e   : > { %4827 = vmatmul.mubr.msk.bf16.vlgmr.msra.gmra.mxu1 %vm649_vm0, %v3093_v51 }
 0x20f   : > { %4839 = vmatpush3.bf16.msra.mxu1 %v5109_v43  ;;  %4842 = vmatprep.mubr.msk.bf16.mxu1 %vm5206_vm3, %v5205_v5 }
 0x210   : > { %4817 = vmatpush3.bf16.msra.mxu0 %v5110_v61  ;;  %4840 = vmatprep.subr.bf16.mxu1 %v5205_v5 }
 0x211   : > { %4830 = vmatprep.subr.bf16.mxu0 %v5205_v5 }
 0x213   : > { %4841 = vmatpush3.bf16.msra.mxu1 %v5111_v28  ;;  %4819 = vmatmul.mubr.msk.bf16.vlgmr.msra.gmra.mxu0 %vm649_vm0, %v6435_v3  ;;  %v5115_v3 = vld [vmem:[%s6952_s4 + $0xf0] sm:$0xff]  }
 0x214   : > { %4831 = vmatpush3.bf16.msra.mxu0 %v5112_v11  ;;  %4854 = vmatprep.subr.bf16.mxu1 %v5205_v5 }
 0x215   : > { %4832 = vmatprep.subr.bf16.mxu0 %v5205_v5  ;;  %4834 = vmatprep.mubr.msk.bf16.mxu0 %vm5206_vm3, %v5205_v5 }
 0x216   : > { %4843 = vmatmul.mubr.msk.bf16.vlgmr.msra.gmra.mxu1 %vm649_vm0, %v3228_v4 }
 0x217   : > { %4855 = vmatpush3.bf16.msra.mxu1 %v5113_v47  ;;  %4858 = vmatprep.mubr.msk.bf16.mxu1 %vm5206_vm3, %v5205_v5 }
 0x218   : > { %4833 = vmatpush3.bf16.msra.mxu0 %v5114_v46  ;;  %4856 = vmatprep.subr.bf16.mxu1 %v5205_v5 }
 0x219   : > { %4846 = vmatprep.subr.bf16.mxu0 %v5205_v5 }
 0x21b   : > { %4857 = vmatpush3.bf16.msra.mxu1 %v5115_v3  ;;  %4835 = vmatmul.mubr.msk.bf16.vlgmr.msra.gmra.mxu0 %vm649_vm0, %v6604_v41 }
 0x21c   : > { %4847 = vmatpush3.bf16.msra.mxu0 %v5116_v63  ;;  %4870 = vmatprep.subr.bf16.mxu1 %v5205_v5 }
 0x21d   : > { %4848 = vmatprep.subr.bf16.mxu0 %v5205_v5  ;;  %4850 = vmatprep.mubr.msk.bf16.mxu0 %vm5206_vm3, %v5205_v5 }
 0x21e   : > { %4859 = vmatmul.mubr.msk.bf16.vlgmr.msra.gmra.mxu1 %vm649_vm0, %v6610_v49 }
 0x21f   : > { %4871 = vmatpush3.bf16.msra.mxu1 %v5117_v50  ;;  %4874 = vmatprep.mubr.msk.bf16.mxu1 %vm5206_vm3, %v5205_v5 }
 0x220   : > { %4849 = vmatpush3.bf16.msra.mxu0 %v5118_v34  ;;  %4872 = vmatprep.subr.bf16.mxu1 %v5205_v5 }
 0x221   : > { %4862 = vmatprep.subr.bf16.mxu0 %v5205_v5 }
 0x223   : > { %4873 = vmatpush3.bf16.msra.mxu1 %v5119_v15  ;;  %4851 = vmatmul.mubr.msk.bf16.vlgmr.msra.gmra.mxu0 %vm649_vm0, %v6615_v37 }
 0x224   : > { %4863 = vmatpush3.bf16.msra.mxu0 %v5120_v16  ;;  %4886 = vmatprep.subr.bf16.mxu1 %v5205_v5 }
 0x225   : > { %4864 = vmatprep.subr.bf16.mxu0 %v5205_v5  ;;  %4866 = vmatprep.mubr.msk.bf16.mxu0 %vm5206_vm3, %v5205_v5 }
 0x226   : > { %4875 = vmatmul.mubr.msk.bf16.vlgmr.msra.gmra.mxu1 %vm649_vm0, %v6620_v54 }
 0x227   : > { %4887 = vmatpush3.bf16.msra.mxu1 %v5121_v2  ;;  %4890 = vmatprep.mubr.msk.bf16.mxu1 %vm5206_vm3, %v5205_v5 }
 0x228   : > { %4865 = vmatpush3.bf16.msra.mxu0 %v5122_v14  ;;  %4888 = vmatprep.subr.bf16.mxu1 %v5205_v5 }
 0x229   : > { %4878 = vmatprep.subr.bf16.mxu0 %v5205_v5 }
 0x22b   : > { %4889 = vmatpush3.bf16.msra.mxu1 %v5123_v52  ;;  %4867 = vmatmul.mubr.msk.bf16.vlgmr.msra.gmra.mxu0 %vm649_vm0, %v6658_v48 }
 0x22c   : > { %4879 = vmatpush3.bf16.msra.mxu0 %v5124_v9  ;;  %4902 = vmatprep.subr.bf16.mxu1 %v5205_v5 }
 0x22d   : > { %4880 = vmatprep.subr.bf16.mxu0 %v5205_v5  ;;  %4882 = vmatprep.mubr.msk.bf16.mxu0 %vm5206_vm3, %v5205_v5 }
 0x22e   : > { %4891 = vmatmul.mubr.msk.bf16.vlgmr.msra.gmra.mxu1 %vm649_vm0, %v6630_v22 }
 0x22f   : > { %4903 = vmatpush3.bf16.msra.mxu1 %v5125_v18  ;;  %4906 = vmatprep.mubr.msk.bf16.mxu1 %vm5206_vm3, %v5205_v5 }
 0x230   : > { %4881 = vmatpush3.bf16.msra.mxu0 %v5126_v17  ;;  %4904 = vmatprep.subr.bf16.mxu1 %v5205_v5 }
 0x231   : > { %4894 = vmatprep.subr.bf16.mxu0 %v5205_v5 }
 0x233   : > { %4905 = vmatpush3.bf16.msra.mxu1 %v5127_v1  ;;  %4883 = vmatmul.mubr.msk.bf16.vlgmr.msra.gmra.mxu0 %vm649_vm0, %v6667_v27 }
 0x234   : > { %4895 = vmatpush3.bf16.msra.mxu0 %v5128_v32  ;;  %4918 = vmatprep.subr.bf16.mxu1 %v5205_v5 }
 0x235   : > { %4896 = vmatprep.subr.bf16.mxu0 %v5205_v5  ;;  %4898 = vmatprep.mubr.msk.bf16.mxu0 %vm5206_vm3, %v5205_v5 }
 0x236   : > { %4907 = vmatmul.mubr.msk.bf16.vlgmr.msra.gmra.mxu1 %vm649_vm0, %v3753_v13 }
 0x237   : > { %4919 = vmatpush3.bf16.msra.mxu1 %v5129_v0  ;;  %4922 = vmatprep.mubr.msk.bf16.mxu1 %vm5206_vm3, %v5205_v5 }
 0x238   : > { %4897 = vmatpush3.bf16.msra.mxu0 %v5130_v26  ;;  %4920 = vmatprep.subr.bf16.mxu1 %v5205_v5 }
 0x239   : > { %4910 = vmatprep.subr.bf16.mxu0 %v5205_v5 }
 0x23b   : > { %4921 = vmatpush3.bf16.msra.mxu1 %v5131_v23  ;;  %4899 = vmatmul.mubr.msk.bf16.vlgmr.msra.gmra.mxu0 %vm649_vm0, %v6561_v8 }
 0x23c   : > { %4911 = vmatpush3.bf16.msra.mxu0 %v5132_v7  ;;  %4914 = vmatprep.mubr.msk.bf16.mxu0 %vm5206_vm3, %v5205_v5 }
 0x23d   : > { %4912 = vmatprep.subr.bf16.mxu0 %v5205_v5  ;;  %4934 = vmatprep.subr.bf16.mxu1 %v5205_v5 }
 0x23e   : > { %4923 = vmatmul.mubr.msk.bf16.vlgmr.msra.gmra.mxu1 %vm649_vm0, %v6646_v33 }
 0x23f   : > { %4938 = vmatprep.mubr.msk.bf16.mxu1 %vm5206_vm3, %v5205_v5  ;;  %4935 = vmatpush3.bf16.msra.mxu1 %v5136_v29 }
 0x240   : > { %4913 = vmatpush3.bf16.msra.mxu0 %v5133_v42  ;;  %4936 = vmatprep.subr.bf16.mxu1 %v5205_v5 }
 0x241   : > { %4926 = vmatprep.subr.bf16.mxu0 %v5205_v5 }
 0x243   : > { %4915 = vmatmul.mubr.msk.bf16.vlgmr.msra.gmra.mxu0 %vm649_vm0, %v3819_v36  ;;  %4937 = vmatpush3.bf16.msra.mxu1 %v5137_v57 }
 0x244   : > { %4927 = vmatpush3.bf16.msra.mxu0 %v5134_v45  ;;  %4930 = vmatprep.mubr.msk.bf16.mxu0 %vm5206_vm3, %v5205_v5 }
 0x245   : > { %4928 = vmatprep.subr.bf16.mxu0 %v5205_v5 }
 0x248   : > { %4929 = vmatpush3.bf16.msra.mxu0 %v5135_v35 }
 0x249   : > { %4942 = vmatprep.subr.bf16.mxu0 %v5205_v5 }
 0x24b   : > { %4931 = vmatmul.mubr.msk.bf16.vlgmr.msra.gmra.mxu0 %vm649_vm0, %v6652_v55 }
 0x24c   : > { %4946 = vmatprep.mubr.msk.bf16.mxu0 %vm5206_vm3, %v5205_v5 }
 0x297   : > { %v2463_v8 = vpop.f32.mrf.mxu1 }
 0x299   : > { %v4748_v21 = vpop.f32.mrf.mxu1 }
 0x29b   : > { %v2466_v25 = vpop.f32.mrf.mxu1 }
 0x29d   : > { %v4749_v62 = vpop.f32.mrf.mxu1 }
 0x2ab   : > { %v2408_v41 = vpop.f32.mrf.mxu0 }
 0x2ac   : > { %v2464_v28 = vadd.f32 %v2463_v8, %v2408_v41 }
 0x2ad   : > { %v4740_v49 = vpop.f32.mrf.mxu0 }
 0x2ae   : > { %v2602_v37 = vpop.f32.mrf.mxu1 }
 0x2af   : > { %v2411_v54 = vpop.f32.mrf.mxu0 }
 0x2b0   : > { %v4764_v10 = vpop.f32.mrf.mxu1  ;;  %v2467_v50 = vadd.f32 %v2466_v25, %v2411_v54 }
 0x2b1   : > { %v4741_v51 = vpop.f32.mrf.mxu0 }
 0x2b2   : > { %v2605_v39 = vpop.f32.mrf.mxu1 }
 0x2b3   : > { %v2529_v31 = vpop.f32.mrf.mxu0 }
 0x2b4   : > { %v4765_v22 = vpop.f32.mrf.mxu1  ;;  %v2536_v46 = vadd.f32 %v2529_v31, %v2464_v28 }
 0x2b5   : > { %v4756_v53 = vpop.f32.mrf.mxu0 }
 0x2b6   : > { %v2736_v20 = vpop.f32.mrf.mxu1  ;;  %v2609_v2 = vadd.f32 %v2602_v37, %v2536_v46 }
 0x2b7   : > { %v2532_v40 = vpop.f32.mrf.mxu0 }
 0x2b8   : > { %v4780_v19 = vpop.f32.mrf.mxu1  ;;  %v2537_v16 = vadd.f32 %v2532_v40, %v2467_v50 }
 0x2b9   : > { %v4757_v4 = vpop.f32.mrf.mxu0 }
 0x2ba   : > { %v2739_v30 = vpop.f32.mrf.mxu1  ;;  %v2610_v1 = vadd.f32 %v2605_v39, %v2537_v16 }
 0x2bb   : > { %v2669_v33 = vpop.f32.mrf.mxu0 }
 0x2bc   : > { %v4781_v60 = vpop.f32.mrf.mxu1  ;;  %v2676_v9 = vadd.f32 %v2669_v33, %v2609_v2 }
 0x2bd   : > { %v4772_v55 = vpop.f32.mrf.mxu0 }
 0x2be   : > { %v2874_v48 = vpop.f32.mrf.mxu1  ;;  %v2743_v26 = vadd.f32 %v2736_v20, %v2676_v9 }
 0x2bf   : > { %v2672_v56 = vpop.f32.mrf.mxu0 }
 0x2c0   : > { %v4796_v27 = vpop.f32.mrf.mxu1  ;;  %v2677_v0 = vadd.f32 %v2672_v56, %v2610_v1 }
 0x2c1   : > { %v4773_v59 = vpop.f32.mrf.mxu0 }
 0x2c2   : > { %v2877_v12 = vpop.f32.mrf.mxu1  ;;  %v2744_v45 = vadd.f32 %v2739_v30, %v2677_v0 }
 0x2c3   : > { %v2807_v58 = vpop.f32.mrf.mxu0 }
 0x2c4   : > { %v4797_v44 = vpop.f32.mrf.mxu1  ;;  %v2814_v7 = vadd.f32 %v2807_v58, %v2743_v26 }
 0x2c5   : > { %v4788_v6 = vpop.f32.mrf.mxu0 }
 0x2c6   : > { %v3012_v43 = vpop.f32.mrf.mxu1  ;;  %v2881_v21 = vadd.f32 %v2874_v48, %v2814_v7 }
 0x2c7   : > { %v2810_v61 = vpop.f32.mrf.mxu0 }
 0x2c8   : > { %v4812_v11 = vpop.f32.mrf.mxu1  ;;  %v2815_v8 = vadd.f32 %v2810_v61, %v2744_v45 }
 0x2c9   : > { %v4789_v47 = vpop.f32.mrf.mxu0 }
 0x2ca   : > { %v3015_v3 = vpop.f32.mrf.mxu1  ;;  %v2882_v49 = vadd.f32 %v2877_v12, %v2815_v8 }
 0x2cb   : > { %v2945_v63 = vpop.f32.mrf.mxu0 }
 0x2cc   : > { %v4813_v34 = vpop.f32.mrf.mxu1  ;;  %v2952_v29 = vadd.f32 %v2945_v63, %v2881_v21 }
 0x2cd   : > { %v4804_v15 = vpop.f32.mrf.mxu0 }
 0x2ce   : > { %v3143_v14 = vpop.f32.mrf.mxu1  ;;  %v3019_v51 = vadd.f32 %v3012_v43, %v2952_v29 }
 0x2cf   : > { %v2948_v52 = vpop.f32.mrf.mxu0 }
 0x2d0   : > { %v4828_v18 = vpop.f32.mrf.mxu1  ;;  %v2953_v10 = vadd.f32 %v2948_v52, %v2882_v49 }
 0x2d1   : > { %v4805_v17 = vpop.f32.mrf.mxu0 }
 0x2d2   : > { %v3146_v32 = vpop.f32.mrf.mxu1  ;;  %v3020_v40 = vadd.f32 %v3015_v3, %v2953_v10 }
 0x2d3   : > { %v3074_v38 = vpop.f32.mrf.mxu0 }
 0x2d4   : > { %v4829_v13 = vpop.f32.mrf.mxu1  ;;  %v3081_v22 = vadd.f32 %v3074_v38, %v3019_v51 }
 0x2d5   : > { %v4820_v23 = vpop.f32.mrf.mxu0 }
 0x2d6   : > { %v3278_v42 = vpop.f32.mrf.mxu1  ;;  %v3150_v33 = vadd.f32 %v3143_v14, %v3081_v22 }
 0x2d7   : > { %v3077_v24 = vpop.f32.mrf.mxu0 }
 0x2d8   : > { %v4844_v36 = vpop.f32.mrf.mxu1  ;;  %v3082_v30 = vadd.f32 %v3077_v24, %v3020_v40 }
 0x2d9   : > { %v4821_v35 = vpop.f32.mrf.mxu0 }
 0x2da   : > { %v3281_v25 = vpop.f32.mrf.mxu1  ;;  %v3151_v59 = vadd.f32 %v3146_v32, %v3082_v30 }
 0x2db   : > { %v3209_v62 = vpop.f32.mrf.mxu0 }
 0x2dc   : > { %v4845_v57 = vpop.f32.mrf.mxu1  ;;  %v3216_v48 = vadd.f32 %v3209_v62, %v3150_v33 }
 0x2dd   : > { %v4836_v41 = vpop.f32.mrf.mxu0 }
 0x2de   : > { %v3408_v37 = vpop.f32.mrf.mxu1  ;;  %v3285_v6 = vadd.f32 %v3278_v42, %v3216_v48 }
 0x2df   : > { %v3212_v54 = vpop.f32.mrf.mxu0 }
 0x2e0   : > { %v4860_v39 = vpop.f32.mrf.mxu1  ;;  %v3217_v44 = vadd.f32 %v3212_v54, %v3151_v59 }
 0x2e1   : > { %v4837_v31 = vpop.f32.mrf.mxu0 }
 0x2e2   : > { %v3411_v53 = vpop.f32.mrf.mxu1  ;;  %v3286_v46 = vadd.f32 %v3281_v25, %v3217_v44 }
 0x2e3   : > { %v3343_v20 = vpop.f32.mrf.mxu0 }
 0x2e4   : > { %v4861_v19 = vpop.f32.mrf.mxu1  ;;  %v3350_v28 = vadd.f32 %v3343_v20, %v3285_v6 }
 0x2e5   : > { %v4852_v4 = vpop.f32.mrf.mxu0  ;;  %v4643_v19 = vld [vmem:[%s6953_s5] ss:$0 sm:$0xff] }
 0x2e6   : > { %v3540_v60 = vpop.f32.mrf.mxu1  ;;  %v3415_v34 = vadd.f32 %v3408_v37, %v3350_v28 }
 0x2e7   : > { %v3346_v55 = vpop.f32.mrf.mxu0 }
 0x2e8   : > { %v4876_v56 = vpop.f32.mrf.mxu1  ;;  %v3351_v50 = vadd.f32 %v3346_v55, %v3286_v46 }
 0x2e9   : > { %v4853_v27 = vpop.f32.mrf.mxu0 }
 0x2ea   : > { %v3543_v12 = vpop.f32.mrf.mxu1  ;;  %v3416_v9 = vadd.f32 %v3411_v53, %v3351_v50  ;;  %v5138_v50 = vld [vmem:[%s6956_s8 + $0x8] sm:$0xff]  }
 0x2eb   : > { %v3475_v58 = vpop.f32.mrf.mxu0  ;;  %4943 = vmatpush3.bf16.msra.mxu0 %v5138_v50 }
 0x2ec   : > { %v4877_v43 = vpop.f32.mrf.mxu1  ;;  %v3482_v2 = vadd.f32 %v3475_v58, %v3415_v34  ;;  %v5139_v34 = vld [vmem:[%s6956_s8] sm:$0xff]   ;;  %4944 = vmatprep.subr.bf16.mxu0 %v5205_v5 }
 0x2ed   : > { %v4868_v61 = vpop.f32.mrf.mxu0  ;;  %v4101_v5 = vld [vmem:[%s6957_s9] sm:$0x1] }
 0x2ee   : > { %v3672_v11 = vpop.f32.mrf.mxu1  ;;  %v3547_v32 = vadd.f32 %v3540_v60, %v3482_v2 }
 0x2ef   : > { %v3478_v47 = vpop.f32.mrf.mxu0  ;;  %4945 = vmatpush3.bf16.msra.mxu0 %v5139_v34 }
 0x2f0   : > { %v4892_v3 = vpop.f32.mrf.mxu1  ;;  %v3483_v1 = vadd.f32 %v3478_v47, %v3416_v9 }
 0x2f1   : > { %v4869_v63 = vpop.f32.mrf.mxu0 }
 0x2f2   : > { %v3675_v15 = vpop.f32.mrf.mxu1  ;;  %v3548_v7 = vadd.f32 %v3543_v12, %v3483_v1 }
 0x2f3   : > { %v3607_v16 = vpop.f32.mrf.mxu0 }
 0x2f4   : > { %v4893_v14 = vpop.f32.mrf.mxu1  ;;  %v3614_v26 = vadd.f32 %v3607_v16, %v3547_v32 }
 0x2f5   : > { %v4884_v52 = vpop.f32.mrf.mxu0 }
 0x2f6   : > { %v3803_v18 = vpop.f32.mrf.mxu1  ;;  %v3679_v36 = vadd.f32 %v3672_v11, %v3614_v26 }
 0x2f7   : > { %v3610_v17 = vpop.f32.mrf.mxu0 }
 0x2f8   : > { %v4908_v38 = vpop.f32.mrf.mxu1  ;;  %v3615_v45 = vadd.f32 %v3610_v17, %v3548_v7 }
 0x2f9   : > { %v4885_v0 = vpop.f32.mrf.mxu0 }
 0x2fa   : > { %v3806_v13 = vpop.f32.mrf.mxu1  ;;  %v3680_v29 = vadd.f32 %v3675_v15, %v3615_v45  ;;  %v4039_v15 = vld [vmem:[%s6955_s7] sm:$0x1] }
 0x2fb   : > { %v3734_v23 = vpop.f32.mrf.mxu0 }
 0x2fc   : > { %v4909_v42 = vpop.f32.mrf.mxu1  ;;  %v3741_v21 = vadd.f32 %v3734_v23, %v3679_v36 }
 0x2fd   : > { %v4900_v24 = vpop.f32.mrf.mxu0 }
 0x2fe   : > { %v3938_v35 = vpop.f32.mrf.mxu1  ;;  %v3810_v37 = vadd.f32 %v3803_v18, %v3741_v21 }
 0x2ff   : > { %v3737_v8 = vpop.f32.mrf.mxu0 }
 0x300   : > { %v4924_v25 = vpop.f32.mrf.mxu1  ;;  %v3742_v49 = vadd.f32 %v3737_v8, %v3680_v29 }
 0x301   : > { %v4901_v62 = vpop.f32.mrf.mxu0 }
 0x302   : > { %v3941_v57 = vpop.f32.mrf.mxu1  ;;  %v3811_v31 = vadd.f32 %v3806_v13, %v3742_v49 }
 0x303   : > { %v3869_v41 = vpop.f32.mrf.mxu0 }
 0x304   : > { %v4925_v54 = vpop.f32.mrf.mxu1  ;;  %v3876_v51 = vadd.f32 %v3869_v41, %v3810_v37 }
 0x305   : > { %v4916_v10 = vpop.f32.mrf.mxu0 }
 0x306   : > { %v3945_v20 = vadd.f32 %v3938_v35, %v3876_v51 }
 0x307   : > { %v3872_v39 = vpop.f32.mrf.mxu0 }
 0x308   : > { %v3877_v53 = vadd.f32 %v3872_v39, %v3811_v31 }
 0x309   : > { %v4917_v22 = vpop.f32.mrf.mxu0 }
 0x30a   : > { %v3946_v60 = vadd.f32 %v3941_v57, %v3877_v53 }
 0x30b   : > { %v4003_v40 = vpop.f32.mrf.mxu0 }
 0x30c   : > { %v4010_v4 = vadd.f32 %v4003_v40, %v3945_v20 }
 0x30d   : > { %v4932_v30 = vpop.f32.mrf.mxu0 }
 0x30e   : > { %v4019_v33 = vadd.f32 %v4643_v19, %v4010_v4 }
 0x30f   : > { %v4006_v55 = vpop.f32.mrf.mxu0 }
 0x310   : > { %v4011_v48 = vadd.f32 %v4006_v55, %v3946_v60  ;;  %v4021_v27 = vmax.f32 %v4019_v33, 0.0 }
 0x311   : > { %v4933_v56 = vpop.f32.mrf.mxu0 }
 0x312   : > { %v4020_v59 = vadd.f32 %v4643_v19, %v4011_v48  ;;  %v4024_v58 = vsel %vm4023_vm11, %v4021_v27, 0.0 }
 0x314   : > { %v4022_v12 = vmax.f32 %v4020_v59, 0.0 }
 0x316   : > { %v4025_v44 = vsel %vm4023_vm11, %v4022_v12, 0.0 }
 0x317   : > { %v4026_v6 = vadd.f32 %v4025_v44, %v4024_v58 }
 0x319   : > { %v4027_v43 = vrot.slane %v4026_v6, 4 }
 0x31b   : > { %v4028_v61 = vadd.f32 %v4027_v43, %v4026_v6 }
 0x31d   : > { %v4029_v28 = vrot.slane %v4028_v61, 2 }
 0x31f   : > { %v4030_v11 = vadd.f32 %v4029_v28, %v4028_v61 }
 0x321   : > { %v4031_v47 = vrot.slane %v4030_v11, 1 }
 0x323   : > { %v4032_v46 = vadd.f32 %v4031_v47, %v4030_v11 }
 0x325   : > { %v4033_v3 = vmul.f32 0.25, %v4032_v46 }
 0x327   : > { %v4034_v63 = vpack.c.bf16 %v4033_v3, %v4033_v3 }
 0x329   : > { %4939 = vmatmul.mubr.msk.bf16.vlgmr.msra.gmra.mxu1 %vm649_vm0, %v4034_v63 }
 0x3e9   : > { %v4089_v16 = vpop.f32.mrf.mxu1 }
 0x3ea   : > { %v4090_v2 = vadd.f32 %v4089_v16, %v4039_v15 }
 0x3eb   : > { %v4940_v14 = vpop.f32.mrf.mxu1 }
 0x3ec   : > { %v4095_v52 = vmax.f32 %v4090_v2, 0.0 }
 0x3ed   : > { %v4092_v9 = vpop.f32.mrf.mxu1 }
 0x3ee   : > { %v4096_v18 = vpack.c.bf16 %v4095_v52, %v4095_v52 }
 0x3ef   : > { %v4941_v17 = vpop.f32.mrf.mxu1 }
 0x3f0   : > { %4947 = vmatmul.mubr.msk.bf16.vlgmr.msra.gmra.mxu0 %vm649_vm0, %v4096_v18 }
 0x4b0   : > { %v4151_v1 = vpop.f32.mrf.mxu0 }
 0x4b1   : > { %v4152_v32 = vadd.f32 %v4151_v1, %v4101_v5 }
 0x4b2   : > { %v4948_v38 = vpop.f32.mrf.mxu0 }
 0x4b3   : > { %4157 = vst [vmem:[%s351_s20] sm:$0x1] %v4152_v32 }
 0x4b4   : > { %v4154_v0 = vpop.f32.mrf.mxu0 }
 0x4b5   : > { %5155 = shalt.err (!%p5152_p3)
}
 0x4b6   : > { %s5156_s18 = scalar_lea.hbm %s6907_s26, 16  ;;  %s5160_s27 = scalar_lea.hbm %s6958_s10, 32 }
 0x4b7   : > { %p5157_p4 = scmp.ne.s32.totalorder %s6907_s26, %s5156_s18  ;;  %p5161_p9 = scmp.lt.s32.totalorder %s6907_s26, %s6958_s10 }
 0x4b8   : > { %p5162_p10 = scmp.lt.s32.totalorder %s5160_s27, %s5156_s18 }
 0x4b9   : > { %p5158_p7 = pnand %p5157_p4, %p5302_p5 }
 0x4ba   : > { %p5163_p11 = por %p5162_p10, %p5161_p9 }
 0x4bb   : > { %p5159_p8 = pneg %p5158_p7 }
 0x4bd   : > { %p5164_p12 = pnand %p5163_p11, %p5159_p8 }
 0x4bf   : > { %5167 = shalt.err (!%p5164_p12)
}
 0x4c0   : > { %4951 = dma.vmem_to_hbm [thread:$0]  (%p5302_p5), %s6909_s21, 16, %s6907_s26, %s4159_s28   ;;  %v4949_v26 = vpop.f32.mrf.mxu0 }
 0x4c1 PF: > { %p4957_p13 = scmp.ge.s32.totalorder %s5202_s16, 2  ;;  %s4183_s29 = sand.u32 1, %s5190_s13  }
 0x4c2   : > { %s4184_s12 = scalar_lea.sflag [#allocation3], %s4183_s29 }
 0x4c3   : > { %p4954_p0 = pnand %p4957_p13, %p5306_p6 }
 0x4c5   : > { %p4955_p1 = pneg %p4954_p0 }
 0x4c7   : > { %5185 = dma.done.wait (%p4955_p1), %s4184_s12, 16  }
 0x4c8   : > { %5187 = vsyncadd (%p4955_p1), %s4184_s12, 4294967280  ;;  %p20_p2 = scmp.ge.s32.totalorder %s5289_s19, 4   ;;  %s6967_s13 = smov %s5194_s14 }
 0x4c9   : > { %s6968_s14 = smov %s5198_s15  ;;  %s6969_s15 = smov %s5300_s22 }
 0x4ca   : > { %s6970_s16 = smov %s5289_s19  ;;  %22 = sbr.rel (!%p20_p2) target bundleno = 3 (0x3), region = 123 }
 0x4cf   :  { %4188 = vsyncpa [#allocation3], 1 }
 0x4d0   :  { %4190 = vsyncpa [#allocation3 + $0x1], 1 }

</bundles_post_ra>
